<compile_context>
chip_gen: v6e
topology: v6e:2x2x1
jax: 0.10.0
libtpu: 0.0.40
codegen_flags: <defaults>
</compile_context>

<pallas_src>
import functools

import jax
import jax.numpy as jnp
from jax.experimental import pallas as pl
from jax.experimental.pallas import tpu as pltpu


def _round_up(x, m):
    return ((x + m - 1) // m) * m


def _head_kernel(x_ref, w1_ref, b1_ref, w2_ref, b2_ref, o_ref):
    # x_ref:  (TB, D)  bf16  VMEM  (batch tile)
    # w1_ref: (D, H)   bf16  VMEM  (resident: constant index_map across grid)
    # b1_ref: (1, H)   f32   VMEM
    # w2_ref: (1, H)   bf16  VMEM  (second-layer weight as a row)
    # b2_ref: (1,)     f32   SMEM  (scalar)
    # o_ref:  (TB, 1)  f32   VMEM
    #
    # Layer 1: MXU matmul (bf16 inputs, f32 accumulation) + bias + ReLU.
    # Dropout layers are identity in eval mode.
    h = jnp.dot(x_ref[...], w1_ref[...], preferred_element_type=jnp.float32)
    h = jnp.maximum(h + b1_ref[...], 0.0)

    # Layer 2 (H -> 1): elementwise multiply (VPU) + cross-lane sum (XLU)
    # rather than a degenerate (H, 1) MXU matmul.
    w2 = w2_ref[...].astype(jnp.float32)                   # (1, H), broadcasts
    logit = jnp.sum(h * w2, axis=-1, keepdims=True) + b2_ref[0]
    o_ref[...] = jax.nn.sigmoid(logit).astype(o_ref.dtype)


@functools.partial(jax.jit, static_argnames=("block_b",))
def counterfactual_task_head(features, w1, b1, w2, b2, *, block_b=256):
    """features: (B, input_dim) -> (B,) probabilities (f32)."""
    B, D = features.shape
    H = w1.shape[1]

    # Clamp the batch tile for tiny batches; always a multiple of 8 (sublanes).
    bb = min(block_b, _round_up(B, 8))
    nb = pl.cdiv(B, bb)
    b_pad = nb * bb

    # bf16 operands for the MXU; accumulation stays f32 inside the kernel.
    xb = features.astype(jnp.bfloat16)
    w1b = w1.astype(jnp.bfloat16)
    w2b = w2.reshape(1, H).astype(jnp.bfloat16)
    b1r = b1.reshape(1, H).astype(jnp.float32)
    b2r = b2.reshape(-1).astype(jnp.float32)               # (1,), SMEM scalar

    out2d = pl.pallas_call(
        _head_kernel,
        out_shape=jax.ShapeDtypeStruct((b_pad, 1), jnp.float32),
        grid_spec=pltpu.PrefetchScalarGridSpec(
            num_scalar_prefetch=0,
            grid=(nb,),
            in_specs=[
                pl.BlockSpec((bb, D), lambda i: (i, 0)),         # x tile
                pl.BlockSpec((D, H), lambda i: (0, 0)),          # W1 (resident)
                pl.BlockSpec((1, H), lambda i: (0, 0)),          # b1
                pl.BlockSpec((1, H), lambda i: (0, 0)),          # w2 row
                pl.BlockSpec(memory_space=pltpu.MemorySpace.SMEM),  # b2 scalar
            ],
            out_specs=pl.BlockSpec((bb, 1), lambda i: (i, 0)),
        ),
        compiler_params=pltpu.CompilerParams(
            dimension_semantics=("parallel",),
            vmem_limit_bytes=32 * 1024 * 1024,
        ),
    )(xb, w1b, b1r, w2b, b2r)
    # TODO(synk): a lane-dense (1, b_pad) output layout would avoid the masked
    # (bb, 1) column stores, but the output volume (4*B bytes) is negligible here.
    return out2d.reshape(-1)[:B]


def init_params(key, input_dim=768 * 2, hidden=1024):
    """Deterministic init mimicking PyTorch's default U(-1/sqrt(fan_in), ...)."""
    k1, k2, k3, k4 = jax.random.split(key, 4)
    lim1 = 1.0 / jnp.sqrt(jnp.float32(input_dim))
    lim2 = 1.0 / jnp.sqrt(jnp.float32(hidden))
    w1 = jax.random.uniform(k1, (input_dim, hidden), jnp.float32, -lim1, lim1)
    b1 = jax.random.uniform(k2, (1, hidden), jnp.float32, -lim1, lim1)
    w2 = jax.random.uniform(k3, (hidden, 1), jnp.float32, -lim2, lim2)
    b2 = jax.random.uniform(k4, (1, 1), jnp.float32, -lim2, lim2)
    return w1, b1, w2, b2


if __name__ == "__main__":
    key = jax.random.PRNGKey(0)
    k_feat, k_params = jax.random.split(key)

    B = 8
    INPUT_DIM = 768 * 2  # module default
    features = jax.random.normal(k_feat, (B, INPUT_DIM), dtype=jnp.float32)
    w1, b1, w2, b2 = init_params(k_params, input_dim=INPUT_DIM, hidden=1024)

    out = counterfactual_task_head(features, w1, b1, w2, b2)
    out = jax.block_until_ready(out)

    # Reference in plain f32 JAX (eval-mode dropout == identity).
    ref = jax.nn.sigmoid(
        jnp.maximum(features @ w1 + b1, 0.0) @ w2 + b2
    ).reshape(-1)
    assert out.shape == (B,), out.shape
    # bf16 matmul inputs with f32 accumulation -> relaxed tolerance.
    assert jnp.allclose(out, ref, atol=2e-2, rtol=2e-2), (
        jnp.max(jnp.abs(out - ref)))

    print("KERNEL_OK")
</pallas_src>

<mosaic_0001>
module attributes {stable_mosaic.version = 11 : i64} {
  func.func @_head_kernel(%arg0: i32, %arg1: memref<8x1536xbf16, #tpu.memory_space<vmem>>, %arg2: memref<1536x1024xbf16, #tpu.memory_space<vmem>>, %arg3: memref<1x1024xf32, #tpu.memory_space<vmem>>, %arg4: memref<1x1024xbf16, #tpu.memory_space<vmem>>, %arg5: memref<1xf32, #tpu.memory_space<smem>>, %arg6: memref<8x1xf32, #tpu.memory_space<vmem>>) attributes {dimension_semantics = [#tpu.dimension_semantics<parallel>], iteration_bounds = array<i64: 1>, scalar_prefetch = 0 : i64, scratch_operands = 0 : i64, tpu.core_type = #tpu.core_type<tc>, window_params = [{transform_indices = @transform_0, window_bounds = array<i64: 8, 1536>}, {pipeline_mode = #tpu.pipeline_mode<synchronous>, transform_indices = @transform_1, window_bounds = array<i64: 1536, 1024>}, {pipeline_mode = #tpu.pipeline_mode<synchronous>, transform_indices = @transform_2, window_bounds = array<i64: 1, 1024>}, {pipeline_mode = #tpu.pipeline_mode<synchronous>, transform_indices = @transform_3, window_bounds = array<i64: 1, 1024>}, {transform_indices = @transform_4, window_bounds = array<i64: 1>}, {transform_indices = @transform_5, window_bounds = array<i64: 8, 1>}]} {
    %c0 = arith.constant 0 : index
    %c0_0 = arith.constant 0 : index
    %0 = vector.load %arg1[%c0, %c0_0] : memref<8x1536xbf16, #tpu.memory_space<vmem>>, vector<8x1536xbf16>
    %c0_1 = arith.constant 0 : index
    %c0_2 = arith.constant 0 : index
    %1 = vector.load %arg2[%c0_1, %c0_2] : memref<1536x1024xbf16, #tpu.memory_space<vmem>>, vector<1536x1024xbf16>
    %cst = arith.constant dense<0.000000e+00> : vector<8x1024xf32>
    %2 = tpu.matmul %0, %1, %cst {dimension_numbers = #tpu.dot_dimension_numbers<[1], [0], [0], [1], [0, 0, 1, 1], [], []>} : vector<8x1536xbf16>, vector<1536x1024xbf16>, vector<8x1024xf32> -> vector<8x1024xf32>
    %c0_3 = arith.constant 0 : index
    %c0_4 = arith.constant 0 : index
    %3 = vector.load %arg3[%c0_3, %c0_4] : memref<1x1024xf32, #tpu.memory_space<vmem>>, vector<1x1024xf32>
    %4 = vector.broadcast %3 : vector<1x1024xf32> to vector<8x1024xf32>
    %5 = arith.addf %2, %4 : vector<8x1024xf32>
    %cst_5 = arith.constant 0.000000e+00 : f32
    %6 = vector.broadcast %cst_5 : f32 to vector<8x1024xf32>
    %7 = arith.maximumf %5, %6 : vector<8x1024xf32>
    %c0_6 = arith.constant 0 : index
    %c0_7 = arith.constant 0 : index
    %8 = vector.load %arg4[%c0_6, %c0_7] : memref<1x1024xbf16, #tpu.memory_space<vmem>>, vector<1x1024xbf16>
    %9 = arith.extf %8 : vector<1x1024xbf16> to vector<1x1024xf32>
    %10 = vector.broadcast %9 : vector<1x1024xf32> to vector<8x1024xf32>
    %11 = arith.mulf %7, %10 : vector<8x1024xf32>
    %cst_8 = arith.constant dense<0.000000e+00> : vector<8xf32>
    %12 = vector.multi_reduction <add>, %11, %cst_8 [1] : vector<8x1024xf32> to vector<8xf32>
    %13 = vector.shape_cast %12 : vector<8xf32> to vector<8x1xf32>
    %c0_9 = arith.constant 0 : index
    %14 = memref.load %arg5[%c0_9] : memref<1xf32, #tpu.memory_space<smem>>
    %15 = vector.broadcast %14 : f32 to vector<8x1xf32>
    %16 = arith.addf %13, %15 : vector<8x1xf32>
    %17 = arith.negf %16 : vector<8x1xf32>
    %18 = math.exp %17 : vector<8x1xf32>
    %cst_10 = arith.constant 1.000000e+00 : f32
    %19 = vector.broadcast %cst_10 : f32 to vector<8x1xf32>
    %20 = arith.addf %19, %18 : vector<8x1xf32>
    %21 = arith.divf %19, %20 : vector<8x1xf32>
    %c0_11 = arith.constant 0 : index
    %c0_12 = arith.constant 0 : index
    %22 = vector.load %arg6[%c0_11, %c0_12] : memref<8x1xf32, #tpu.memory_space<vmem>>, vector<8x1xf32>
    tpu.vector_store %arg6[%c0_11, %c0_12], %21 {strides = array<i32>} : memref<8x1xf32, #tpu.memory_space<vmem>>, vector<8x1xf32>,
    return
  }
  func.func @transform_0(%arg0: i32) -> (i32, i32) {
    %c0_i32 = arith.constant 0 : i32
    %c0_i32_0 = arith.constant 0 : i32
    return %arg0, %c0_i32 : i32, i32
  }
  func.func @transform_1(%arg0: i32) -> (i32, i32) {
    %c0_i32 = arith.constant 0 : i32
    %c0_i32_0 = arith.constant 0 : i32
    %c0_i32_1 = arith.constant 0 : i32
    return %c0_i32, %c0_i32_0 : i32, i32
  }
  func.func @transform_2(%arg0: i32) -> (i32, i32) {
    %c0_i32 = arith.constant 0 : i32
    %c0_i32_0 = arith.constant 0 : i32
    %c0_i32_1 = arith.constant 0 : i32
    return %c0_i32, %c0_i32_0 : i32, i32
  }
  func.func @transform_3(%arg0: i32) -> (i32, i32) {
    %c0_i32 = arith.constant 0 : i32
    %c0_i32_0 = arith.constant 0 : i32
    %c0_i32_1 = arith.constant 0 : i32
    return %c0_i32, %c0_i32_0 : i32, i32
  }
  func.func @transform_4(%arg0: i32) -> i32 {
    %c0_i32 = arith.constant 0 : i32
    %c0_i32_0 = arith.constant 0 : i32
    return %c0_i32 : i32
  }
  func.func @transform_5(%arg0: i32) -> (i32, i32) {
    %c0_i32 = arith.constant 0 : i32
    %c0_i32_0 = arith.constant 0 : i32
    return %arg0, %c0_i32 : i32, i32
  }
}

</mosaic_0001>

<bundles_post_ra>
// kernel: counterfactual_task_head.1
= control target key start
LH: loop header
LB: loop body
LE: loop exit
PB: predicated region body
PF: predicated region fallthrough
CT: control target
= control target key end

     0   :  { %vm5814_vm0 = vcmask 7168   ;;  %s9199_s1 = inlined_call_operand.vmem [shape: bf16[1536,1024], index: 1, kind: input, shape index: {}]   ;;  %s9200_s0 = inlined_call_operand.vmem [shape: bf16[8,1536], index: 0, kind: input, shape index: {}]   ;;  %s9201_s2 = inlined_call_operand.vmem [shape: f32[1,1024], index: 2, kind: input, shape index: {}]   ;;  %s9202_s3 = inlined_call_operand.vmem [shape: bf16[1,1024], index: 3, kind: input, shape index: {}]   ;;  %s9203_s4 = inlined_call_operand.<no memory space> [shape: f32[1], index: 4, kind: input, shape index: {}]   ;;  %s9204_s5 = inlined_call_operand.vmem [shape: f32[8,1], index: 5, kind: output, shape index: {}]  }
   0x1   :  { %v83_v0 = vld [vmem:[%s9199_s1 + $0x1c0] sm:$0xff]  ;;  %v6742_v54 = vld [vmem:[%s9200_s0 + $0x8] sm:$0xff] }
   0x2   :  { %v87_v1 = vld [vmem:[%s9199_s1 + $0x1e0] sm:$0xff]  ;;  %v6756_v59 = vcombine.high %v6742_v54, %v6742_v54 }
   0x3   :  { %v211_v2 = vld [vmem:[%s9199_s1 + $0x5c0] sm:$0xff]  ;;  %v5889_v3 = vcombine.high %v83_v0, %v87_v1  ;;  %v5888_v5 = vcombine.low %v83_v0, %v87_v1 }
   0x4   :  { %v215_v4 = vld [vmem:[%s9199_s1 + $0x5e0] sm:$0xff]  ;;  %4792 = vmatprep.mubr.bf16.mxu1 %v6756_v59 }
   0x5   :  { %v75_v6 = vld [vmem:[%s9199_s1 + $0x180] sm:$0xff]  ;;  %v6017_v8 = vcombine.high %v211_v2, %v215_v4  ;;  %v6016_v9 = vcombine.low %v211_v2, %v215_v4  ;;  %4719 = vmatprep.subr.bf16.mxu0 %v5889_v3 }
   0x6   :  { %v79_v7 = vld [vmem:[%s9199_s1 + $0x1a0] sm:$0xff]  ;;  %4720 = vmatpush1.bf16.msra.mxu0 %v5888_v5 }
   0x7   :  { %v5881_v10 = vcombine.high %v75_v6, %v79_v7  ;;  %v203_v11 = vld [vmem:[%s9199_s1 + $0x580] sm:$0xff]  ;;  %4760 = vmatprep.subr.bf16.mxu1 %v6017_v8  ;;  %v5880_v18 = vcombine.low %v75_v6, %v79_v7 }
   0x8   :  { %v207_v12 = vld [vmem:[%s9199_s1 + $0x5a0] sm:$0xff]  ;;  %4761 = vmatpush1.bf16.msra.mxu1 %v6016_v9 }
   0x9   :  { %v67_v13 = vld [vmem:[%s9199_s1 + $0x140] sm:$0xff]  ;;  %v6009_v14 = vcombine.high %v203_v11, %v207_v12  ;;  %4721 = vmatprep.subr.bf16.mxu0 %v5881_v10  ;;  %v6008_v19 = vcombine.low %v203_v11, %v207_v12 }
   0xa   :  { %v71_v15 = vld [vmem:[%s9199_s1 + $0x160] sm:$0xff]  ;;  %4722 = vmatpush1.bf16.msra.mxu0 %v5880_v18 }
   0xb   :  { %v195_v16 = vld [vmem:[%s9199_s1 + $0x540] sm:$0xff]  ;;  %v5873_v20 = vcombine.high %v67_v13, %v71_v15  ;;  %4762 = vmatprep.subr.bf16.mxu1 %v6009_v14  ;;  %v5872_v26 = vcombine.low %v67_v13, %v71_v15 }
   0xc   :  { %v199_v17 = vld [vmem:[%s9199_s1 + $0x560] sm:$0xff]  ;;  %4763 = vmatpush1.bf16.msra.mxu1 %v6008_v19 }
   0xd   :  { %v6001_v21 = vcombine.high %v195_v16, %v199_v17  ;;  %v59_v22 = vld [vmem:[%s9199_s1 + $0x100] sm:$0xff]  ;;  %4723 = vmatprep.subr.bf16.mxu0 %v5873_v20  ;;  %v6000_v27 = vcombine.low %v195_v16, %v199_v17 }
   0xe   :  { %v63_v23 = vld [vmem:[%s9199_s1 + $0x120] sm:$0xff]  ;;  %4724 = vmatpush1.bf16.msra.mxu0 %v5872_v26 }
   0xf   :  { %v187_v24 = vld [vmem:[%s9199_s1 + $0x500] sm:$0xff]  ;;  %v5865_v28 = vcombine.high %v59_v22, %v63_v23  ;;  %4764 = vmatprep.subr.bf16.mxu1 %v6001_v21  ;;  %v5864_v34 = vcombine.low %v59_v22, %v63_v23 }
  0x10   :  { %v191_v25 = vld [vmem:[%s9199_s1 + $0x520] sm:$0xff]  ;;  %4765 = vmatpush1.bf16.msra.mxu1 %v6000_v27 }
  0x11   :  { %v5993_v29 = vcombine.high %v187_v24, %v191_v25  ;;  %v51_v30 = vld [vmem:[%s9199_s1 + $0xc0] sm:$0xff]  ;;  %4725 = vmatprep.subr.bf16.mxu0 %v5865_v28  ;;  %v5992_v35 = vcombine.low %v187_v24, %v191_v25 }
  0x12   :  { %v55_v31 = vld [vmem:[%s9199_s1 + $0xe0] sm:$0xff]  ;;  %4726 = vmatpush1.bf16.msra.mxu0 %v5864_v34 }
  0x13   :  { %v179_v32 = vld [vmem:[%s9199_s1 + $0x4c0] sm:$0xff]  ;;  %v5857_v36 = vcombine.high %v51_v30, %v55_v31  ;;  %4766 = vmatprep.subr.bf16.mxu1 %v5993_v29  ;;  %v5856_v42 = vcombine.low %v51_v30, %v55_v31 }
  0x14   :  { %v183_v33 = vld [vmem:[%s9199_s1 + $0x4e0] sm:$0xff]  ;;  %4767 = vmatpush1.bf16.msra.mxu1 %v5992_v35 }
  0x15   :  { %v5985_v37 = vcombine.high %v179_v32, %v183_v33  ;;  %v43_v38 = vld [vmem:[%s9199_s1 + $0x80] sm:$0xff]  ;;  %4727 = vmatprep.subr.bf16.mxu0 %v5857_v36  ;;  %v5984_v43 = vcombine.low %v179_v32, %v183_v33 }
  0x16   :  { %v47_v39 = vld [vmem:[%s9199_s1 + $0xa0] sm:$0xff]  ;;  %4728 = vmatpush1.bf16.msra.mxu0 %v5856_v42 }
  0x17   :  { %v171_v40 = vld [vmem:[%s9199_s1 + $0x480] sm:$0xff]  ;;  %v5849_v44 = vcombine.high %v43_v38, %v47_v39  ;;  %4768 = vmatprep.subr.bf16.mxu1 %v5985_v37  ;;  %v5848_v50 = vcombine.low %v43_v38, %v47_v39 }
  0x18   :  { %v175_v41 = vld [vmem:[%s9199_s1 + $0x4a0] sm:$0xff]  ;;  %4769 = vmatpush1.bf16.msra.mxu1 %v5984_v43 }
  0x19   :  { %v5977_v45 = vcombine.high %v171_v40, %v175_v41  ;;  %v35_v46 = vld [vmem:[%s9199_s1 + $0x40] sm:$0xff]  ;;  %4729 = vmatprep.subr.bf16.mxu0 %v5849_v44  ;;  %v5976_v51 = vcombine.low %v171_v40, %v175_v41 }
  0x1a   :  { %v39_v47 = vld [vmem:[%s9199_s1 + $0x60] sm:$0xff]  ;;  %4730 = vmatpush1.bf16.msra.mxu0 %v5848_v50 }
  0x1b   :  { %v163_v48 = vld [vmem:[%s9199_s1 + $0x440] sm:$0xff]  ;;  %v5841_v52 = vcombine.high %v35_v46, %v39_v47  ;;  %4770 = vmatprep.subr.bf16.mxu1 %v5977_v45  ;;  %v5840_v62 = vcombine.low %v35_v46, %v39_v47 }
  0x1c   :  { %v167_v49 = vld [vmem:[%s9199_s1 + $0x460] sm:$0xff]  ;;  %4771 = vmatpush1.bf16.msra.mxu1 %v5976_v51 }
  0x1d   :  { %v6737_v53 = vld [vmem:[%s9200_s0] sm:$0xff]  ;;  %v5969_v55 = vcombine.high %v163_v48, %v167_v49  ;;  %4731 = vmatprep.subr.bf16.mxu0 %v5841_v52  ;;  %v5968_v63 = vcombine.low %v163_v48, %v167_v49 }
  0x1e   :  { %v27_v56 = vld [vmem:[%s9199_s1] sm:$0xff]  ;;  %v6752_v58 = vcombine.high %v6737_v53, %v6737_v53  ;;  %4732 = vmatpush1.bf16.msra.mxu0 %v5840_v62 }
  0x1f   :  { %v31_v57 = vld [vmem:[%s9199_s1 + $0x20] sm:$0xff]  ;;  %4772 = vmatprep.subr.bf16.mxu1 %v5969_v55 }
  0x20   :  { %v155_v60 = vld [vmem:[%s9199_s1 + $0x400] sm:$0xff]  ;;  %4751 = vmatprep.mubr.bf16.mxu0 %v6752_v58  ;;  %v5833_v0 = vcombine.high %v27_v56, %v31_v57  ;;  %v5832_v6 = vcombine.low %v27_v56, %v31_v57  ;;  %4773 = vmatpush1.bf16.msra.mxu1 %v5968_v63 }
  0x21   :  { %v159_v61 = vld [vmem:[%s9199_s1 + $0x420] sm:$0xff] }
  0x22   :  { %v5961_v1 = vcombine.high %v155_v60, %v159_v61  ;;  %v147_v2 = vld [vmem:[%s9199_s1 + $0x3c0] sm:$0xff]  ;;  %4733 = vmatprep.subr.bf16.mxu0 %v5833_v0  ;;  %v5960_v7 = vcombine.low %v155_v60, %v159_v61 }
  0x23   :  { %v151_v3 = vld [vmem:[%s9199_s1 + $0x3e0] sm:$0xff]  ;;  %4734 = vmatpush1.bf16.msra.mxu0 %v5832_v6 }
  0x24   :  { %v275_v4 = vld [vmem:[%s9199_s1 + $0x7c0] sm:$0xff]  ;;  %v5953_v8 = vcombine.high %v147_v2, %v151_v3  ;;  %4774 = vmatprep.subr.bf16.mxu1 %v5961_v1  ;;  %v5952_v14 = vcombine.low %v147_v2, %v151_v3 }
  0x25   :  { %v279_v5 = vld [vmem:[%s9199_s1 + $0x7e0] sm:$0xff]  ;;  %4775 = vmatpush1.bf16.msra.mxu1 %v5960_v7 }
  0x26   :  { %v6081_v9 = vcombine.high %v275_v4, %v279_v5  ;;  %v139_v10 = vld [vmem:[%s9199_s1 + $0x380] sm:$0xff]  ;;  %4735 = vmatprep.subr.bf16.mxu0 %v5953_v8  ;;  %v6080_v15 = vcombine.low %v275_v4, %v279_v5 }
  0x27   :  { %v143_v11 = vld [vmem:[%s9199_s1 + $0x3a0] sm:$0xff]  ;;  %4736 = vmatpush2.bf16.msra.mxu0 %v5952_v14 }
  0x28   :  { %v267_v12 = vld [vmem:[%s9199_s1 + $0x780] sm:$0xff]  ;;  %v5945_v16 = vcombine.high %v139_v10, %v143_v11  ;;  %4776 = vmatprep.subr.bf16.mxu1 %v6081_v9  ;;  %v5944_v22 = vcombine.low %v139_v10, %v143_v11 }
  0x29   :  { %v271_v13 = vld [vmem:[%s9199_s1 + $0x7a0] sm:$0xff]  ;;  %4777 = vmatpush2.bf16.msra.mxu1 %v6080_v15 }
  0x2a   :  { %v6073_v17 = vcombine.high %v267_v12, %v271_v13  ;;  %v131_v18 = vld [vmem:[%s9199_s1 + $0x340] sm:$0xff]  ;;  %4737 = vmatprep.subr.bf16.mxu0 %v5945_v16  ;;  %v6072_v23 = vcombine.low %v267_v12, %v271_v13  ;;  %v6882_v16 = vcombine.low %v6737_v53, %v6737_v53 }
  0x2b   :  { %v135_v19 = vld [vmem:[%s9199_s1 + $0x360] sm:$0xff]  ;;  %4738 = vmatpush2.bf16.msra.mxu0 %v5944_v22 }
  0x2c   :  { %v259_v20 = vld [vmem:[%s9199_s1 + $0x740] sm:$0xff]  ;;  %v5937_v24 = vcombine.high %v131_v18, %v135_v19  ;;  %4778 = vmatprep.subr.bf16.mxu1 %v6073_v17  ;;  %v5936_v30 = vcombine.low %v131_v18, %v135_v19  ;;  %v6893_v19 = vld [vmem:[%s9200_s0 + $0x10] sm:$0xff] }
  0x2d   :  { %v263_v21 = vld [vmem:[%s9199_s1 + $0x760] sm:$0xff]  ;;  %4779 = vmatpush2.bf16.msra.mxu1 %v6072_v23 }
  0x2e   :  { %v6065_v25 = vcombine.high %v259_v20, %v263_v21  ;;  %v123_v26 = vld [vmem:[%s9199_s1 + $0x300] sm:$0xff]  ;;  %4739 = vmatprep.subr.bf16.mxu0 %v5937_v24  ;;  %v6064_v31 = vcombine.low %v259_v20, %v263_v21  ;;  %v6897_v20 = vcombine.low %v6742_v54, %v6742_v54  ;;  %v6902_v21 = vld [vmem:[%s9200_s0 + $0x18] sm:$0xff] }
  0x2f   :  { %v127_v27 = vld [vmem:[%s9199_s1 + $0x320] sm:$0xff]  ;;  %4740 = vmatpush2.bf16.msra.mxu0 %v5936_v30 }
  0x30   :  { %v251_v28 = vld [vmem:[%s9199_s1 + $0x700] sm:$0xff]  ;;  %v5929_v32 = vcombine.high %v123_v26, %v127_v27  ;;  %4780 = vmatprep.subr.bf16.mxu1 %v6065_v25  ;;  %v5928_v38 = vcombine.low %v123_v26, %v127_v27  ;;  %v6912_v26 = vcombine.high %v6893_v19, %v6893_v19 }
  0x31   :  { %v255_v29 = vld [vmem:[%s9199_s1 + $0x720] sm:$0xff]  ;;  %4781 = vmatpush2.bf16.msra.mxu1 %v6064_v31 }
  0x32   :  { %v6057_v33 = vcombine.high %v251_v28, %v255_v29  ;;  %v115_v34 = vld [vmem:[%s9199_s1 + $0x2c0] sm:$0xff]  ;;  %4741 = vmatprep.subr.bf16.mxu0 %v5929_v32  ;;  %v6056_v39 = vcombine.low %v251_v28, %v255_v29  ;;  %v6923_v29 = vcombine.high %v6902_v21, %v6902_v21 }
  0x33   :  { %v119_v35 = vld [vmem:[%s9199_s1 + $0x2e0] sm:$0xff]  ;;  %4742 = vmatpush2.bf16.msra.mxu0 %v5928_v38 }
  0x34   :  { %v243_v36 = vld [vmem:[%s9199_s1 + $0x6c0] sm:$0xff]  ;;  %v5921_v40 = vcombine.high %v115_v34, %v119_v35  ;;  %4782 = vmatprep.subr.bf16.mxu1 %v6057_v33  ;;  %v5920_v46 = vcombine.low %v115_v34, %v119_v35 }
  0x35   :  { %v247_v37 = vld [vmem:[%s9199_s1 + $0x6e0] sm:$0xff]  ;;  %4783 = vmatpush2.bf16.msra.mxu1 %v6056_v39 }
  0x36   :  { %v6049_v41 = vcombine.high %v243_v36, %v247_v37  ;;  %v107_v42 = vld [vmem:[%s9199_s1 + $0x280] sm:$0xff]  ;;  %4743 = vmatprep.subr.bf16.mxu0 %v5921_v40  ;;  %v6048_v47 = vcombine.low %v243_v36, %v247_v37 }
  0x37   :  { %v111_v43 = vld [vmem:[%s9199_s1 + $0x2a0] sm:$0xff]  ;;  %4744 = vmatpush2.bf16.msra.mxu0 %v5920_v46 }
  0x38   :  { %v235_v44 = vld [vmem:[%s9199_s1 + $0x680] sm:$0xff]  ;;  %v5913_v48 = vcombine.high %v107_v42, %v111_v43  ;;  %4784 = vmatprep.subr.bf16.mxu1 %v6049_v41  ;;  %v5912_v56 = vcombine.low %v107_v42, %v111_v43 }
  0x39   :  { %v239_v45 = vld [vmem:[%s9199_s1 + $0x6a0] sm:$0xff]  ;;  %4785 = vmatpush2.bf16.msra.mxu1 %v6048_v47 }
  0x3a   :  { %v6041_v49 = vcombine.high %v235_v44, %v239_v45  ;;  %v99_v50 = vld [vmem:[%s9199_s1 + $0x240] sm:$0xff]  ;;  %4745 = vmatprep.subr.bf16.mxu0 %v5913_v48  ;;  %v6040_v57 = vcombine.low %v235_v44, %v239_v45 }
  0x3b   :  { %v103_v51 = vld [vmem:[%s9199_s1 + $0x260] sm:$0xff]  ;;  %4746 = vmatpush2.bf16.msra.mxu0 %v5912_v56 }
  0x3c   :  { %v227_v52 = vld [vmem:[%s9199_s1 + $0x640] sm:$0xff]  ;;  %v5905_v60 = vcombine.high %v99_v50, %v103_v51  ;;  %4786 = vmatprep.subr.bf16.mxu1 %v6041_v49  ;;  %v5904_v2 = vcombine.low %v99_v50, %v103_v51 }
  0x3d   :  { %v231_v55 = vld [vmem:[%s9199_s1 + $0x660] sm:$0xff]  ;;  %4787 = vmatpush2.bf16.msra.mxu1 %v6040_v57 }
  0x3e   :  { %v6033_v61 = vcombine.high %v227_v52, %v231_v55  ;;  %v91_v62 = vld [vmem:[%s9199_s1 + $0x200] sm:$0xff]  ;;  %4747 = vmatprep.subr.bf16.mxu0 %v5905_v60  ;;  %v6032_v3 = vcombine.low %v227_v52, %v231_v55 }
  0x3f   :  { %v95_v63 = vld [vmem:[%s9199_s1 + $0x220] sm:$0xff]  ;;  %4748 = vmatpush2.bf16.msra.mxu0 %v5904_v2 }
  0x40   :  { %v219_v0 = vld [vmem:[%s9199_s1 + $0x600] sm:$0xff]  ;;  %v5897_v4 = vcombine.high %v91_v62, %v95_v63  ;;  %4788 = vmatprep.subr.bf16.mxu1 %v6033_v61  ;;  %v5896_v10 = vcombine.low %v91_v62, %v95_v63 }
  0x41   :  { %v223_v1 = vld [vmem:[%s9199_s1 + $0x620] sm:$0xff]  ;;  %4789 = vmatpush2.bf16.msra.mxu1 %v6032_v3 }
  0x42   :  { %v6025_v5 = vcombine.high %v219_v0, %v223_v1  ;;  %v339_v6 = vld [vmem:[%s9199_s1 + $0x9c0] sm:$0xff]  ;;  %4749 = vmatprep.subr.bf16.mxu0 %v5897_v4  ;;  %v6024_v11 = vcombine.low %v219_v0, %v223_v1 }
  0x43   :  { %v343_v7 = vld [vmem:[%s9199_s1 + $0x9e0] sm:$0xff]  ;;  %4750 = vmatpush2.bf16.msra.mxu0 %v5896_v10 }
  0x44   :  { %v467_v8 = vld [vmem:[%s9199_s1 + $0xdc0] sm:$0xff]  ;;  %v6145_v12 = vcombine.high %v339_v6, %v343_v7  ;;  %4790 = vmatprep.subr.bf16.mxu1 %v6025_v5  ;;  %v6144_v53 = vcombine.low %v339_v6, %v343_v7 }
  0x45   :  { %v471_v9 = vld [vmem:[%s9199_s1 + $0xde0] sm:$0xff]  ;;  %4791 = vmatpush2.bf16.msra.mxu1 %v6024_v11 }
  0x46   :  { %v6273_v13 = vcombine.high %v467_v8, %v471_v9  ;;  %v331_v14 = vld [vmem:[%s9199_s1 + $0x980] sm:$0xff]  ;;  %4801 = vmatprep.subr.bf16.mxu0 %v6145_v12  ;;  %v6272_v22 = vcombine.low %v467_v8, %v471_v9  ;;  %4752 = vmatmul.mubr.bf16.vlgmr.msra.gmra.mxu0 %v6882_v16 }
  0x47   :  { %v335_v15 = vld [vmem:[%s9199_s1 + $0x9a0] sm:$0xff]  ;;  %4802 = vmatpush1.bf16.msra.mxu0 %v6144_v53  ;;  %4833 = vmatprep.mubr.bf16.mxu0 %v6912_v26 }
  0x48   :  { %v459_v17 = vld [vmem:[%s9199_s1 + $0xd80] sm:$0xff]  ;;  %v6137_v23 = vcombine.high %v331_v14, %v335_v15  ;;  %4842 = vmatprep.subr.bf16.mxu1 %v6273_v13  ;;  %4793 = vmatmul.mubr.bf16.vlgmr.msra.gmra.mxu1 %v6897_v20  ;;  %v6136_v30 = vcombine.low %v331_v14, %v335_v15 }
  0x49   :  { %v463_v18 = vld [vmem:[%s9199_s1 + $0xda0] sm:$0xff]  ;;  %4843 = vmatpush1.bf16.msra.mxu1 %v6272_v22  ;;  %4874 = vmatprep.mubr.bf16.mxu1 %v6923_v29 }
  0x4a   :  { %v6265_v24 = vcombine.high %v459_v17, %v463_v18  ;;  %v323_v25 = vld [vmem:[%s9199_s1 + $0x940] sm:$0xff]  ;;  %4803 = vmatprep.subr.bf16.mxu0 %v6137_v23  ;;  %v6264_v31 = vcombine.low %v459_v17, %v463_v18 }
  0x4b   :  { %v327_v54 = vld [vmem:[%s9199_s1 + $0x960] sm:$0xff]  ;;  %4804 = vmatpush1.bf16.msra.mxu0 %v6136_v30 }
  0x4c   :  { %v451_v27 = vld [vmem:[%s9199_s1 + $0xd40] sm:$0xff]  ;;  %v6129_v32 = vcombine.high %v323_v25, %v327_v54  ;;  %4844 = vmatprep.subr.bf16.mxu1 %v6265_v24  ;;  %v6128_v38 = vcombine.low %v323_v25, %v327_v54 }
  0x4d   :  { %v455_v28 = vld [vmem:[%s9199_s1 + $0xd60] sm:$0xff]  ;;  %4845 = vmatpush1.bf16.msra.mxu1 %v6264_v31 }
  0x4e   :  { %v6257_v33 = vcombine.high %v451_v27, %v455_v28  ;;  %v315_v34 = vld [vmem:[%s9199_s1 + $0x900] sm:$0xff]  ;;  %4805 = vmatprep.subr.bf16.mxu0 %v6129_v32  ;;  %v6256_v39 = vcombine.low %v451_v27, %v455_v28 }
  0x4f   :  { %v319_v35 = vld [vmem:[%s9199_s1 + $0x920] sm:$0xff]  ;;  %4806 = vmatpush1.bf16.msra.mxu0 %v6128_v38 }
  0x50   :  { %v443_v36 = vld [vmem:[%s9199_s1 + $0xd00] sm:$0xff]  ;;  %v6121_v40 = vcombine.high %v315_v34, %v319_v35  ;;  %4846 = vmatprep.subr.bf16.mxu1 %v6257_v33  ;;  %v6120_v46 = vcombine.low %v315_v34, %v319_v35 }
  0x51   :  { %v447_v37 = vld [vmem:[%s9199_s1 + $0xd20] sm:$0xff]  ;;  %4847 = vmatpush1.bf16.msra.mxu1 %v6256_v39 }
  0x52   :  { %v6249_v41 = vcombine.high %v443_v36, %v447_v37  ;;  %v307_v42 = vld [vmem:[%s9199_s1 + $0x8c0] sm:$0xff]  ;;  %4807 = vmatprep.subr.bf16.mxu0 %v6121_v40  ;;  %v6248_v47 = vcombine.low %v443_v36, %v447_v37 }
  0x53   :  { %v311_v43 = vld [vmem:[%s9199_s1 + $0x8e0] sm:$0xff]  ;;  %4808 = vmatpush1.bf16.msra.mxu0 %v6120_v46 }
  0x54   :  { %v435_v44 = vld [vmem:[%s9199_s1 + $0xcc0] sm:$0xff]  ;;  %v6113_v48 = vcombine.high %v307_v42, %v311_v43  ;;  %4848 = vmatprep.subr.bf16.mxu1 %v6249_v41  ;;  %v6112_v56 = vcombine.low %v307_v42, %v311_v43 }
  0x55   :  { %v439_v45 = vld [vmem:[%s9199_s1 + $0xce0] sm:$0xff]  ;;  %4849 = vmatpush1.bf16.msra.mxu1 %v6248_v47 }
  0x56   :  { %v6241_v49 = vcombine.high %v435_v44, %v439_v45  ;;  %v299_v50 = vld [vmem:[%s9199_s1 + $0x880] sm:$0xff]  ;;  %4809 = vmatprep.subr.bf16.mxu0 %v6113_v48  ;;  %v6240_v57 = vcombine.low %v435_v44, %v439_v45 }
  0x57   :  { %v303_v51 = vld [vmem:[%s9199_s1 + $0x8a0] sm:$0xff]  ;;  %4810 = vmatpush1.bf16.msra.mxu0 %v6112_v56 }
  0x58   :  { %v427_v52 = vld [vmem:[%s9199_s1 + $0xc80] sm:$0xff]  ;;  %v6105_v60 = vcombine.high %v299_v50, %v303_v51  ;;  %4850 = vmatprep.subr.bf16.mxu1 %v6241_v49  ;;  %v6104_v2 = vcombine.low %v299_v50, %v303_v51 }
  0x59   :  { %v431_v55 = vld [vmem:[%s9199_s1 + $0xca0] sm:$0xff]  ;;  %4851 = vmatpush1.bf16.msra.mxu1 %v6240_v57 }
  0x5a   :  { %v6233_v61 = vcombine.high %v427_v52, %v431_v55  ;;  %v291_v62 = vld [vmem:[%s9199_s1 + $0x840] sm:$0xff]  ;;  %4811 = vmatprep.subr.bf16.mxu0 %v6105_v60  ;;  %v6232_v3 = vcombine.low %v427_v52, %v431_v55 }
  0x5b   :  { %v295_v63 = vld [vmem:[%s9199_s1 + $0x860] sm:$0xff]  ;;  %4812 = vmatpush1.bf16.msra.mxu0 %v6104_v2 }
  0x5c   :  { %v419_v0 = vld [vmem:[%s9199_s1 + $0xc40] sm:$0xff]  ;;  %v6097_v4 = vcombine.high %v291_v62, %v295_v63  ;;  %4852 = vmatprep.subr.bf16.mxu1 %v6233_v61  ;;  %v6096_v10 = vcombine.low %v291_v62, %v295_v63 }
  0x5d   :  { %v423_v1 = vld [vmem:[%s9199_s1 + $0xc60] sm:$0xff]  ;;  %4853 = vmatpush1.bf16.msra.mxu1 %v6232_v3 }
  0x5e   :  { %v6225_v5 = vcombine.high %v419_v0, %v423_v1  ;;  %v283_v6 = vld [vmem:[%s9199_s1 + $0x800] sm:$0xff]  ;;  %4813 = vmatprep.subr.bf16.mxu0 %v6097_v4  ;;  %v6224_v11 = vcombine.low %v419_v0, %v423_v1 }
  0x5f   :  { %v287_v7 = vld [vmem:[%s9199_s1 + $0x820] sm:$0xff]  ;;  %4814 = vmatpush1.bf16.msra.mxu0 %v6096_v10 }
  0x60   :  { %v411_v8 = vld [vmem:[%s9199_s1 + $0xc00] sm:$0xff]  ;;  %v6089_v12 = vcombine.high %v283_v6, %v287_v7  ;;  %4854 = vmatprep.subr.bf16.mxu1 %v6225_v5  ;;  %v6088_v53 = vcombine.low %v283_v6, %v287_v7 }
  0x61   :  { %v415_v9 = vld [vmem:[%s9199_s1 + $0xc20] sm:$0xff]  ;;  %4855 = vmatpush1.bf16.msra.mxu1 %v6224_v11 }
  0x62   :  { %v6217_v13 = vcombine.high %v411_v8, %v415_v9  ;;  %v403_v14 = vld [vmem:[%s9199_s1 + $0xbc0] sm:$0xff]  ;;  %4815 = vmatprep.subr.bf16.mxu0 %v6089_v12  ;;  %v6216_v22 = vcombine.low %v411_v8, %v415_v9 }
  0x63   :  { %v407_v15 = vld [vmem:[%s9199_s1 + $0xbe0] sm:$0xff]  ;;  %4816 = vmatpush1.bf16.msra.mxu0 %v6088_v53 }
  0x64   :  { %v531_v17 = vld [vmem:[%s9199_s1 + $0xfc0] sm:$0xff]  ;;  %v6209_v23 = vcombine.high %v403_v14, %v407_v15  ;;  %4856 = vmatprep.subr.bf16.mxu1 %v6217_v13  ;;  %v6208_v30 = vcombine.low %v403_v14, %v407_v15 }
  0x65   :  { %v535_v18 = vld [vmem:[%s9199_s1 + $0xfe0] sm:$0xff]  ;;  %4857 = vmatpush1.bf16.msra.mxu1 %v6216_v22 }
  0x66   :  { %v6337_v24 = vcombine.high %v531_v17, %v535_v18  ;;  %v395_v25 = vld [vmem:[%s9199_s1 + $0xb80] sm:$0xff]  ;;  %4817 = vmatprep.subr.bf16.mxu0 %v6209_v23  ;;  %v6336_v31 = vcombine.low %v531_v17, %v535_v18 }
  0x67   :  { %v399_v54 = vld [vmem:[%s9199_s1 + $0xba0] sm:$0xff]  ;;  %4818 = vmatpush2.bf16.msra.mxu0 %v6208_v30 }
  0x68   :  { %v523_v27 = vld [vmem:[%s9199_s1 + $0xf80] sm:$0xff]  ;;  %v6201_v32 = vcombine.high %v395_v25, %v399_v54  ;;  %4858 = vmatprep.subr.bf16.mxu1 %v6337_v24  ;;  %v6200_v38 = vcombine.low %v395_v25, %v399_v54 }
  0x69   :  { %v527_v28 = vld [vmem:[%s9199_s1 + $0xfa0] sm:$0xff]  ;;  %4859 = vmatpush2.bf16.msra.mxu1 %v6336_v31 }
  0x6a   :  { %v6329_v33 = vcombine.high %v523_v27, %v527_v28  ;;  %v387_v34 = vld [vmem:[%s9199_s1 + $0xb40] sm:$0xff]  ;;  %4819 = vmatprep.subr.bf16.mxu0 %v6201_v32  ;;  %v6328_v39 = vcombine.low %v523_v27, %v527_v28 }
  0x6b   :  { %v391_v35 = vld [vmem:[%s9199_s1 + $0xb60] sm:$0xff]  ;;  %4820 = vmatpush2.bf16.msra.mxu0 %v6200_v38 }
  0x6c   :  { %v515_v36 = vld [vmem:[%s9199_s1 + $0xf40] sm:$0xff]  ;;  %v6193_v40 = vcombine.high %v387_v34, %v391_v35  ;;  %4860 = vmatprep.subr.bf16.mxu1 %v6329_v33  ;;  %v6192_v46 = vcombine.low %v387_v34, %v391_v35 }
  0x6d   :  { %v519_v37 = vld [vmem:[%s9199_s1 + $0xf60] sm:$0xff]  ;;  %4861 = vmatpush2.bf16.msra.mxu1 %v6328_v39 }
  0x6e   :  { %v6321_v41 = vcombine.high %v515_v36, %v519_v37  ;;  %v379_v42 = vld [vmem:[%s9199_s1 + $0xb00] sm:$0xff]  ;;  %4821 = vmatprep.subr.bf16.mxu0 %v6193_v40  ;;  %v6320_v47 = vcombine.low %v515_v36, %v519_v37  ;;  %v7104_v36 = vcombine.low %v6893_v19, %v6893_v19  ;;  %v7119_v40 = vcombine.low %v6902_v21, %v6902_v21 }
  0x6f   :  { %v383_v43 = vld [vmem:[%s9199_s1 + $0xb20] sm:$0xff]  ;;  %4822 = vmatpush2.bf16.msra.mxu0 %v6192_v46 }
  0x70   :  { %v507_v44 = vld [vmem:[%s9199_s1 + $0xf00] sm:$0xff]  ;;  %v6185_v48 = vcombine.high %v379_v42, %v383_v43  ;;  %4862 = vmatprep.subr.bf16.mxu1 %v6321_v41  ;;  %v6184_v56 = vcombine.low %v379_v42, %v383_v43  ;;  %v7124_v41 = vld [vmem:[%s9200_s0 + $0x28] sm:$0xff] }
  0x71   :  { %v511_v45 = vld [vmem:[%s9199_s1 + $0xf20] sm:$0xff]  ;;  %4863 = vmatpush2.bf16.msra.mxu1 %v6320_v47 }
  0x72   :  { %v6313_v49 = vcombine.high %v507_v44, %v511_v45  ;;  %v371_v50 = vld [vmem:[%s9199_s1 + $0xac0] sm:$0xff]  ;;  %4823 = vmatprep.subr.bf16.mxu0 %v6185_v48  ;;  %v6312_v57 = vcombine.low %v507_v44, %v511_v45 }
  0x73   :  { %v375_v51 = vld [vmem:[%s9199_s1 + $0xae0] sm:$0xff]  ;;  %4824 = vmatpush2.bf16.msra.mxu0 %v6184_v56 }
  0x74   :  { %v499_v52 = vld [vmem:[%s9199_s1 + $0xec0] sm:$0xff]  ;;  %v6177_v60 = vcombine.high %v371_v50, %v375_v51  ;;  %4864 = vmatprep.subr.bf16.mxu1 %v6313_v49  ;;  %v6176_v2 = vcombine.low %v371_v50, %v375_v51  ;;  %v7145_v49 = vcombine.high %v7124_v41, %v7124_v41 }
  0x75   :  { %v503_v55 = vld [vmem:[%s9199_s1 + $0xee0] sm:$0xff]  ;;  %4865 = vmatpush2.bf16.msra.mxu1 %v6312_v57 }
  0x76   :  { %v6305_v61 = vcombine.high %v499_v52, %v503_v55  ;;  %v363_v62 = vld [vmem:[%s9199_s1 + $0xa80] sm:$0xff]  ;;  %4825 = vmatprep.subr.bf16.mxu0 %v6177_v60  ;;  %v6304_v3 = vcombine.low %v499_v52, %v503_v55 }
  0x77   :  { %v367_v63 = vld [vmem:[%s9199_s1 + $0xaa0] sm:$0xff]  ;;  %4826 = vmatpush2.bf16.msra.mxu0 %v6176_v2 }
  0x78   :  { %v491_v0 = vld [vmem:[%s9199_s1 + $0xe80] sm:$0xff]  ;;  %v6169_v4 = vcombine.high %v363_v62, %v367_v63  ;;  %4866 = vmatprep.subr.bf16.mxu1 %v6305_v61  ;;  %v6168_v10 = vcombine.low %v363_v62, %v367_v63 }
  0x79   :  { %v495_v1 = vld [vmem:[%s9199_s1 + $0xea0] sm:$0xff]  ;;  %4867 = vmatpush2.bf16.msra.mxu1 %v6304_v3 }
  0x7a   :  { %v6297_v5 = vcombine.high %v491_v0, %v495_v1  ;;  %v355_v6 = vld [vmem:[%s9199_s1 + $0xa40] sm:$0xff]  ;;  %4827 = vmatprep.subr.bf16.mxu0 %v6169_v4  ;;  %v6296_v11 = vcombine.low %v491_v0, %v495_v1 }
  0x7b   :  { %v359_v7 = vld [vmem:[%s9199_s1 + $0xa60] sm:$0xff]  ;;  %4828 = vmatpush2.bf16.msra.mxu0 %v6168_v10 }
  0x7c   :  { %v483_v8 = vld [vmem:[%s9199_s1 + $0xe40] sm:$0xff]  ;;  %v6161_v12 = vcombine.high %v355_v6, %v359_v7  ;;  %4868 = vmatprep.subr.bf16.mxu1 %v6297_v5  ;;  %v6160_v53 = vcombine.low %v355_v6, %v359_v7 }
  0x7d   :  { %v487_v9 = vld [vmem:[%s9199_s1 + $0xe60] sm:$0xff]  ;;  %4869 = vmatpush2.bf16.msra.mxu1 %v6296_v11 }
  0x7e   :  { %v6289_v13 = vcombine.high %v483_v8, %v487_v9  ;;  %v347_v14 = vld [vmem:[%s9199_s1 + $0xa00] sm:$0xff]  ;;  %4829 = vmatprep.subr.bf16.mxu0 %v6161_v12  ;;  %v6288_v22 = vcombine.low %v483_v8, %v487_v9 }
  0x7f   :  { %v351_v15 = vld [vmem:[%s9199_s1 + $0xa20] sm:$0xff]  ;;  %4830 = vmatpush2.bf16.msra.mxu0 %v6160_v53 }
  0x80   :  { %v475_v17 = vld [vmem:[%s9199_s1 + $0xe00] sm:$0xff]  ;;  %v6153_v23 = vcombine.high %v347_v14, %v351_v15  ;;  %4870 = vmatprep.subr.bf16.mxu1 %v6289_v13  ;;  %v6152_v30 = vcombine.low %v347_v14, %v351_v15 }
  0x81   :  { %v479_v18 = vld [vmem:[%s9199_s1 + $0xe20] sm:$0xff]  ;;  %4871 = vmatpush2.bf16.msra.mxu1 %v6288_v22 }
  0x82   :  { %v6281_v24 = vcombine.high %v475_v17, %v479_v18  ;;  %v595_v25 = vld [vmem:[%s9199_s1 + $0x11c0] sm:$0xff]  ;;  %4831 = vmatprep.subr.bf16.mxu0 %v6153_v23  ;;  %v6280_v31 = vcombine.low %v475_v17, %v479_v18 }
  0x83   :  { %v599_v54 = vld [vmem:[%s9199_s1 + $0x11e0] sm:$0xff]  ;;  %4832 = vmatpush2.bf16.msra.mxu0 %v6152_v30 }
  0x84   :  { %v723_v27 = vld [vmem:[%s9199_s1 + $0x15c0] sm:$0xff]  ;;  %v6401_v32 = vcombine.high %v595_v25, %v599_v54  ;;  %4872 = vmatprep.subr.bf16.mxu1 %v6281_v24  ;;  %v6400_v19 = vcombine.low %v595_v25, %v599_v54 }
  0x85   :  { %v727_v28 = vld [vmem:[%s9199_s1 + $0x15e0] sm:$0xff]  ;;  %4873 = vmatpush2.bf16.msra.mxu1 %v6280_v31 }
  0x86   :  { %v6529_v33 = vcombine.high %v723_v27, %v727_v28  ;;  %v587_v34 = vld [vmem:[%s9199_s1 + $0x1180] sm:$0xff]  ;;  %4883 = vmatprep.subr.bf16.mxu0 %v6401_v32  ;;  %v6528_v42 = vcombine.low %v723_v27, %v727_v28  ;;  %4834 = vmatmul.mubr.bf16.vlgmr.msra.gmra.mxu0 %v7104_v36 }
  0x87   :  { %v591_v35 = vld [vmem:[%s9199_s1 + $0x11a0] sm:$0xff]  ;;  %4884 = vmatpush1.bf16.msra.mxu0 %v6400_v19 }
  0x88   :  { %v715_v37 = vld [vmem:[%s9199_s1 + $0x1580] sm:$0xff]  ;;  %v6393_v43 = vcombine.high %v587_v34, %v591_v35  ;;  %4924 = vmatprep.subr.bf16.mxu1 %v6529_v33  ;;  %4875 = vmatmul.mubr.bf16.vlgmr.msra.gmra.mxu1 %v7119_v40  ;;  %v6392_v50 = vcombine.low %v587_v34, %v591_v35 }
  0x89   :  { %v719_v38 = vld [vmem:[%s9199_s1 + $0x15a0] sm:$0xff]  ;;  %4925 = vmatpush1.bf16.msra.mxu1 %v6528_v42  ;;  %4956 = vmatprep.mubr.bf16.mxu1 %v7145_v49 }
  0x8a   :  { %v7115_v39 = vld [vmem:[%s9200_s0 + $0x20] sm:$0xff]  ;;  %v6521_v44 = vcombine.high %v715_v37, %v719_v38  ;;  %4885 = vmatprep.subr.bf16.mxu0 %v6393_v43  ;;  %v6520_v51 = vcombine.low %v715_v37, %v719_v38 }
  0x8b   :  { %v579_v45 = vld [vmem:[%s9199_s1 + $0x1140] sm:$0xff]  ;;  %v7134_v46 = vcombine.high %v7115_v39, %v7115_v39  ;;  %4886 = vmatpush1.bf16.msra.mxu0 %v6392_v50 }
  0x8c   :  { %v583_v21 = vld [vmem:[%s9199_s1 + $0x1160] sm:$0xff]  ;;  %4926 = vmatprep.subr.bf16.mxu1 %v6521_v44 }
  0x8d   :  { %v707_v47 = vld [vmem:[%s9199_s1 + $0x1540] sm:$0xff]  ;;  %v6385_v52 = vcombine.high %v579_v45, %v583_v21  ;;  %4915 = vmatprep.mubr.bf16.mxu0 %v7134_v46  ;;  %v6384_v62 = vcombine.low %v579_v45, %v583_v21  ;;  %4927 = vmatpush1.bf16.msra.mxu1 %v6520_v51 }
  0x8e   :  { %v711_v48 = vld [vmem:[%s9199_s1 + $0x1560] sm:$0xff] }
  0x8f   :  { %v6513_v55 = vcombine.high %v707_v47, %v711_v48  ;;  %v571_v56 = vld [vmem:[%s9199_s1 + $0x1100] sm:$0xff]  ;;  %4887 = vmatprep.subr.bf16.mxu0 %v6385_v52  ;;  %v6512_v63 = vcombine.low %v707_v47, %v711_v48 }
  0x90   :  { %v575_v57 = vld [vmem:[%s9199_s1 + $0x1120] sm:$0xff]  ;;  %4888 = vmatpush1.bf16.msra.mxu0 %v6384_v62 }
  0x91   :  { %v699_v60 = vld [vmem:[%s9199_s1 + $0x1500] sm:$0xff]  ;;  %v6377_v0 = vcombine.high %v571_v56, %v575_v57  ;;  %4928 = vmatprep.subr.bf16.mxu1 %v6513_v55  ;;  %v6376_v6 = vcombine.low %v571_v56, %v575_v57 }
  0x92   :  { %v703_v61 = vld [vmem:[%s9199_s1 + $0x1520] sm:$0xff]  ;;  %4929 = vmatpush1.bf16.msra.mxu1 %v6512_v63 }
  0x93   :  { %v6505_v1 = vcombine.high %v699_v60, %v703_v61  ;;  %v563_v2 = vld [vmem:[%s9199_s1 + $0x10c0] sm:$0xff]  ;;  %4889 = vmatprep.subr.bf16.mxu0 %v6377_v0  ;;  %v6504_v7 = vcombine.low %v699_v60, %v703_v61 }
  0x94   :  { %v567_v3 = vld [vmem:[%s9199_s1 + $0x10e0] sm:$0xff]  ;;  %4890 = vmatpush1.bf16.msra.mxu0 %v6376_v6 }
  0x95   :  { %v691_v4 = vld [vmem:[%s9199_s1 + $0x14c0] sm:$0xff]  ;;  %v6369_v8 = vcombine.high %v563_v2, %v567_v3  ;;  %4930 = vmatprep.subr.bf16.mxu1 %v6505_v1  ;;  %v6368_v14 = vcombine.low %v563_v2, %v567_v3 }
  0x96   :  { %v695_v5 = vld [vmem:[%s9199_s1 + $0x14e0] sm:$0xff]  ;;  %4931 = vmatpush1.bf16.msra.mxu1 %v6504_v7 }
  0x97   :  { %v6497_v9 = vcombine.high %v691_v4, %v695_v5  ;;  %v555_v10 = vld [vmem:[%s9199_s1 + $0x1080] sm:$0xff]  ;;  %4891 = vmatprep.subr.bf16.mxu0 %v6369_v8  ;;  %v6496_v15 = vcombine.low %v691_v4, %v695_v5 }
  0x98   :  { %v559_v11 = vld [vmem:[%s9199_s1 + $0x10a0] sm:$0xff]  ;;  %4892 = vmatpush1.bf16.msra.mxu0 %v6368_v14 }
  0x99   :  { %v683_v12 = vld [vmem:[%s9199_s1 + $0x1480] sm:$0xff]  ;;  %v6361_v17 = vcombine.high %v555_v10, %v559_v11  ;;  %4932 = vmatprep.subr.bf16.mxu1 %v6497_v9  ;;  %v6360_v25 = vcombine.low %v555_v10, %v559_v11 }
  0x9a   :  { %v687_v13 = vld [vmem:[%s9199_s1 + $0x14a0] sm:$0xff]  ;;  %4933 = vmatpush1.bf16.msra.mxu1 %v6496_v15 }
  0x9b   :  { %v6489_v18 = vcombine.high %v683_v12, %v687_v13  ;;  %v547_v53 = vld [vmem:[%s9199_s1 + $0x1040] sm:$0xff]  ;;  %4893 = vmatprep.subr.bf16.mxu0 %v6361_v17  ;;  %v6488_v54 = vcombine.low %v683_v12, %v687_v13 }
  0x9c   :  { %v551_v22 = vld [vmem:[%s9199_s1 + $0x1060] sm:$0xff]  ;;  %4894 = vmatpush1.bf16.msra.mxu0 %v6360_v25 }
  0x9d   :  { %v675_v23 = vld [vmem:[%s9199_s1 + $0x1440] sm:$0xff]  ;;  %v6353_v27 = vcombine.high %v547_v53, %v551_v22  ;;  %4934 = vmatprep.subr.bf16.mxu1 %v6489_v18  ;;  %v6352_v34 = vcombine.low %v547_v53, %v551_v22 }
  0x9e   :  { %v679_v24 = vld [vmem:[%s9199_s1 + $0x1460] sm:$0xff]  ;;  %4935 = vmatpush1.bf16.msra.mxu1 %v6488_v54 }
  0x9f   :  { %v6481_v28 = vcombine.high %v675_v23, %v679_v24  ;;  %v539_v30 = vld [vmem:[%s9199_s1 + $0x1000] sm:$0xff]  ;;  %4895 = vmatprep.subr.bf16.mxu0 %v6353_v27  ;;  %v6480_v35 = vcombine.low %v675_v23, %v679_v24 }
  0xa0   :  { %v543_v31 = vld [vmem:[%s9199_s1 + $0x1020] sm:$0xff]  ;;  %4896 = vmatpush1.bf16.msra.mxu0 %v6352_v34 }
  0xa1   :  { %v667_v32 = vld [vmem:[%s9199_s1 + $0x1400] sm:$0xff]  ;;  %v6345_v37 = vcombine.high %v539_v30, %v543_v31  ;;  %4936 = vmatprep.subr.bf16.mxu1 %v6481_v28  ;;  %v6344_v45 = vcombine.low %v539_v30, %v543_v31 }
  0xa2   :  { %v671_v33 = vld [vmem:[%s9199_s1 + $0x1420] sm:$0xff]  ;;  %4937 = vmatpush1.bf16.msra.mxu1 %v6480_v35 }
  0xa3   :  { %v6473_v38 = vcombine.high %v667_v32, %v671_v33  ;;  %v659_v19 = vld [vmem:[%s9199_s1 + $0x13c0] sm:$0xff]  ;;  %4897 = vmatprep.subr.bf16.mxu0 %v6345_v37  ;;  %v6472_v21 = vcombine.low %v667_v32, %v671_v33 }
  0xa4   :  { %v663_v42 = vld [vmem:[%s9199_s1 + $0x13e0] sm:$0xff]  ;;  %4898 = vmatpush1.bf16.msra.mxu0 %v6344_v45 }
  0xa5   :  { %v787_v43 = vld [vmem:[%s9199_s1 + $0x17c0] sm:$0xff]  ;;  %v6465_v47 = vcombine.high %v659_v19, %v663_v42  ;;  %4938 = vmatprep.subr.bf16.mxu1 %v6473_v38  ;;  %v6464_v56 = vcombine.low %v659_v19, %v663_v42 }
  0xa6   :  { %v791_v44 = vld [vmem:[%s9199_s1 + $0x17e0] sm:$0xff]  ;;  %4939 = vmatpush1.bf16.msra.mxu1 %v6472_v21 }
  0xa7   :  { %v6593_v48 = vcombine.high %v787_v43, %v791_v44  ;;  %v651_v50 = vld [vmem:[%s9199_s1 + $0x1380] sm:$0xff]  ;;  %4899 = vmatprep.subr.bf16.mxu0 %v6465_v47  ;;  %v6592_v57 = vcombine.low %v787_v43, %v791_v44 }
  0xa8   :  { %v655_v51 = vld [vmem:[%s9199_s1 + $0x13a0] sm:$0xff]  ;;  %4900 = vmatpush2.bf16.msra.mxu0 %v6464_v56  ;;  %v84_v56 = vld [vmem:[%s9199_s1 + $0x1c8] sm:$0xff] }
  0xa9   :  { %v779_v52 = vld [vmem:[%s9199_s1 + $0x1780] sm:$0xff]  ;;  %v6457_v60 = vcombine.high %v651_v50, %v655_v51  ;;  %4940 = vmatprep.subr.bf16.mxu1 %v6593_v48  ;;  %v6456_v2 = vcombine.low %v651_v50, %v655_v51 }
  0xaa   :  { %v783_v55 = vld [vmem:[%s9199_s1 + $0x17a0] sm:$0xff]  ;;  %4941 = vmatpush2.bf16.msra.mxu1 %v6592_v57  ;;  %v88_v57 = vld [vmem:[%s9199_s1 + $0x1e8] sm:$0xff] }
  0xab   :  { %v6585_v61 = vcombine.high %v779_v52, %v783_v55  ;;  %v643_v62 = vld [vmem:[%s9199_s1 + $0x1340] sm:$0xff]  ;;  %4901 = vmatprep.subr.bf16.mxu0 %v6457_v60  ;;  %v6584_v3 = vcombine.low %v779_v52, %v783_v55  ;;  %v212_v60 = vld [vmem:[%s9199_s1 + $0x5c8] sm:$0xff] }
  0xac   :  { %v647_v63 = vld [vmem:[%s9199_s1 + $0x1360] sm:$0xff]  ;;  %4902 = vmatpush2.bf16.msra.mxu0 %v6456_v2  ;;  %v76_v2 = vld [vmem:[%s9199_s1 + $0x188] sm:$0xff] }
  0xad   :  { %v771_v0 = vld [vmem:[%s9199_s1 + $0x1740] sm:$0xff]  ;;  %v6449_v4 = vcombine.high %v643_v62, %v647_v63  ;;  %4942 = vmatprep.subr.bf16.mxu1 %v6585_v61  ;;  %v6448_v10 = vcombine.low %v643_v62, %v647_v63  ;;  %v216_v61 = vld [vmem:[%s9199_s1 + $0x5e8] sm:$0xff] }
  0xae   :  { %v775_v1 = vld [vmem:[%s9199_s1 + $0x1760] sm:$0xff]  ;;  %4943 = vmatpush2.bf16.msra.mxu1 %v6584_v3  ;;  %v80_v3 = vld [vmem:[%s9199_s1 + $0x1a8] sm:$0xff] }
  0xaf   :  { %v6577_v5 = vcombine.high %v771_v0, %v775_v1  ;;  %v635_v6 = vld [vmem:[%s9199_s1 + $0x1300] sm:$0xff]  ;;  %4903 = vmatprep.subr.bf16.mxu0 %v6449_v4  ;;  %v6576_v11 = vcombine.low %v771_v0, %v775_v1  ;;  %v5891_v0 = vcombine.high %v84_v56, %v88_v57  ;;  %v6019_v1 = vcombine.high %v212_v60, %v216_v61 }
  0xb0   :  { %v639_v7 = vld [vmem:[%s9199_s1 + $0x1320] sm:$0xff]  ;;  %4904 = vmatpush2.bf16.msra.mxu0 %v6448_v10  ;;  %v7326_v4 = vcombine.low %v7115_v39, %v7115_v39  ;;  %v5883_v10 = vcombine.high %v76_v2, %v80_v3 }
  0xb1   :  { %v763_v8 = vld [vmem:[%s9199_s1 + $0x1700] sm:$0xff]  ;;  %v6441_v12 = vcombine.high %v635_v6, %v639_v7  ;;  %4944 = vmatprep.subr.bf16.mxu1 %v6577_v5  ;;  %v6440_v53 = vcombine.low %v635_v6, %v639_v7  ;;  %v204_v5 = vld [vmem:[%s9199_s1 + $0x588] sm:$0xff]  ;;  %v7336_v7 = vcombine.low %v7124_v41, %v7124_v41 }
  0xb2   :  { %v767_v9 = vld [vmem:[%s9199_s1 + $0x1720] sm:$0xff]  ;;  %4945 = vmatpush2.bf16.msra.mxu1 %v6576_v11  ;;  %v208_v6 = vld [vmem:[%s9199_s1 + $0x5a8] sm:$0xff] }
  0xb3   :  { %v6569_v13 = vcombine.high %v763_v8, %v767_v9  ;;  %v627_v14 = vld [vmem:[%s9199_s1 + $0x12c0] sm:$0xff]  ;;  %4905 = vmatprep.subr.bf16.mxu0 %v6441_v12  ;;  %v6568_v22 = vcombine.low %v763_v8, %v767_v9  ;;  %v5890_v8 = vcombine.low %v84_v56, %v88_v57  ;;  %v6018_v9 = vcombine.low %v212_v60, %v216_v61  ;;  %v68_v11 = vld [vmem:[%s9199_s1 + $0x148] sm:$0xff] }
  0xb4   :  { %v631_v15 = vld [vmem:[%s9199_s1 + $0x12e0] sm:$0xff]  ;;  %4906 = vmatpush2.bf16.msra.mxu0 %v6440_v53  ;;  %v6011_v39 = vcombine.high %v204_v5, %v208_v6  ;;  %v72_v12 = vld [vmem:[%s9199_s1 + $0x168] sm:$0xff] }
  0xb5   :  { %v755_v17 = vld [vmem:[%s9199_s1 + $0x16c0] sm:$0xff]  ;;  %v6433_v23 = vcombine.high %v627_v14, %v631_v15  ;;  %4946 = vmatprep.subr.bf16.mxu1 %v6569_v13  ;;  %v6432_v30 = vcombine.low %v627_v14, %v631_v15  ;;  %v196_v41 = vld [vmem:[%s9199_s1 + $0x548] sm:$0xff]  ;;  %v5882_v14 = vcombine.low %v76_v2, %v80_v3  ;;  %v6010_v15 = vcombine.low %v204_v5, %v208_v6 }
  0xb6   :  { %v759_v18 = vld [vmem:[%s9199_s1 + $0x16e0] sm:$0xff]  ;;  %4947 = vmatpush2.bf16.msra.mxu1 %v6568_v22  ;;  %v200_v13 = vld [vmem:[%s9199_s1 + $0x568] sm:$0xff] }
  0xb7   :  { %v6561_v24 = vcombine.high %v755_v17, %v759_v18  ;;  %v619_v25 = vld [vmem:[%s9199_s1 + $0x1280] sm:$0xff]  ;;  %4907 = vmatprep.subr.bf16.mxu0 %v6433_v23  ;;  %v6560_v31 = vcombine.low %v755_v17, %v759_v18  ;;  %v5875_v17 = vcombine.high %v68_v11, %v72_v12  ;;  %v6003_v18 = vcombine.high %v196_v41, %v200_v13  ;;  %v60_v53 = vld [vmem:[%s9199_s1 + $0x108] sm:$0xff] }
  0xb8   :  { %v623_v54 = vld [vmem:[%s9199_s1 + $0x12a0] sm:$0xff]  ;;  %4908 = vmatpush2.bf16.msra.mxu0 %v6432_v30  ;;  %v64_v22 = vld [vmem:[%s9199_s1 + $0x128] sm:$0xff] }
  0xb9   :  { %v747_v27 = vld [vmem:[%s9199_s1 + $0x1680] sm:$0xff]  ;;  %v6425_v32 = vcombine.high %v619_v25, %v623_v54  ;;  %4948 = vmatprep.subr.bf16.mxu1 %v6561_v24  ;;  %v6424_v19 = vcombine.low %v619_v25, %v623_v54  ;;  %v188_v23 = vld [vmem:[%s9199_s1 + $0x508] sm:$0xff]  ;;  %v5874_v25 = vcombine.low %v68_v11, %v72_v12  ;;  %v6002_v54 = vcombine.low %v196_v41, %v200_v13 }
  0xba   :  { %v751_v28 = vld [vmem:[%s9199_s1 + $0x16a0] sm:$0xff]  ;;  %4949 = vmatpush2.bf16.msra.mxu1 %v6560_v31  ;;  %v192_v24 = vld [vmem:[%s9199_s1 + $0x528] sm:$0xff] }
  0xbb   :  { %v6553_v33 = vcombine.high %v747_v27, %v751_v28  ;;  %v611_v34 = vld [vmem:[%s9199_s1 + $0x1240] sm:$0xff]  ;;  %4909 = vmatprep.subr.bf16.mxu0 %v6425_v32  ;;  %v6552_v42 = vcombine.low %v747_v27, %v751_v28  ;;  %v5867_v27 = vcombine.high %v60_v53, %v64_v22  ;;  %v5995_v28 = vcombine.high %v188_v23, %v192_v24  ;;  %v52_v30 = vld [vmem:[%s9199_s1 + $0xc8] sm:$0xff] }
  0xbc   :  { %v615_v35 = vld [vmem:[%s9199_s1 + $0x1260] sm:$0xff]  ;;  %4910 = vmatpush2.bf16.msra.mxu0 %v6424_v19  ;;  %v56_v31 = vld [vmem:[%s9199_s1 + $0xe8] sm:$0xff] }
  0xbd   :  { %v739_v37 = vld [vmem:[%s9199_s1 + $0x1640] sm:$0xff]  ;;  %v6417_v43 = vcombine.high %v611_v34, %v615_v35  ;;  %4950 = vmatprep.subr.bf16.mxu1 %v6553_v33  ;;  %v6416_v50 = vcombine.low %v611_v34, %v615_v35  ;;  %v180_v32 = vld [vmem:[%s9199_s1 + $0x4c8] sm:$0xff]  ;;  %v5866_v34 = vcombine.low %v60_v53, %v64_v22  ;;  %v5994_v35 = vcombine.low %v188_v23, %v192_v24 }
  0xbe   :  { %v743_v38 = vld [vmem:[%s9199_s1 + $0x1660] sm:$0xff]  ;;  %4951 = vmatpush2.bf16.msra.mxu1 %v6552_v42  ;;  %v184_v33 = vld [vmem:[%s9199_s1 + $0x4e8] sm:$0xff] }
  0xbf   :  { %v6545_v44 = vcombine.high %v739_v37, %v743_v38  ;;  %v603_v45 = vld [vmem:[%s9199_s1 + $0x1200] sm:$0xff]  ;;  %4911 = vmatprep.subr.bf16.mxu0 %v6417_v43  ;;  %v6544_v51 = vcombine.low %v739_v37, %v743_v38  ;;  %v5859_v37 = vcombine.high %v52_v30, %v56_v31  ;;  %v5987_v38 = vcombine.high %v180_v32, %v184_v33  ;;  %v44_v19 = vld [vmem:[%s9199_s1 + $0x88] sm:$0xff] }
  0xc0   :  { %v607_v21 = vld [vmem:[%s9199_s1 + $0x1220] sm:$0xff]  ;;  %4912 = vmatpush2.bf16.msra.mxu0 %v6416_v50  ;;  %v48_v42 = vld [vmem:[%s9199_s1 + $0xa8] sm:$0xff] }
  0xc1   :  { %v731_v47 = vld [vmem:[%s9199_s1 + $0x1600] sm:$0xff]  ;;  %v6409_v52 = vcombine.high %v603_v45, %v607_v21  ;;  %4952 = vmatprep.subr.bf16.mxu1 %v6545_v44  ;;  %v6408_v62 = vcombine.low %v603_v45, %v607_v21  ;;  %v172_v43 = vld [vmem:[%s9199_s1 + $0x488] sm:$0xff]  ;;  %v5858_v45 = vcombine.low %v52_v30, %v56_v31  ;;  %v5986_v21 = vcombine.low %v180_v32, %v184_v33 }
  0xc2   :  { %v735_v48 = vld [vmem:[%s9199_s1 + $0x1620] sm:$0xff]  ;;  %4953 = vmatpush2.bf16.msra.mxu1 %v6544_v51  ;;  %v176_v44 = vld [vmem:[%s9199_s1 + $0x4a8] sm:$0xff]  ;;  %v5850_v56 = vcombine.low %v44_v19, %v48_v42 }
  0xc3   :  { %v6537_v55 = vcombine.high %v731_v47, %v735_v48  ;;  %4913 = vmatprep.subr.bf16.mxu0 %v6409_v52  ;;  %v6536_v63 = vcombine.low %v731_v47, %v735_v48  ;;  %v5851_v47 = vcombine.high %v44_v19, %v48_v42  ;;  %v5979_v48 = vcombine.high %v172_v43, %v176_v44  ;;  %v36_v50 = vld [vmem:[%s9199_s1 + $0x48] sm:$0xff] }
  0xc4   :  { %4914 = vmatpush2.bf16.msra.mxu0 %v6408_v62  ;;  %v40_v51 = vld [vmem:[%s9199_s1 + $0x68] sm:$0xff]  ;;  %v5978_v57 = vcombine.low %v172_v43, %v176_v44 }
  0xc5   :  { %4954 = vmatprep.subr.bf16.mxu1 %v6537_v55  ;;  %4965 = vmatprep.subr.bf16.mxu0 %v5891_v0  ;;  %v164_v52 = vld [vmem:[%s9199_s1 + $0x448] sm:$0xff]  ;;  %v5843_v60 = vcombine.high %v36_v50, %v40_v51  ;;  %v5842_v2 = vcombine.low %v36_v50, %v40_v51 }
  0xc6   :  { %4955 = vmatpush2.bf16.msra.mxu1 %v6536_v63  ;;  %v168_v55 = vld [vmem:[%s9199_s1 + $0x468] sm:$0xff] }
  0xc7   :  { %5006 = vmatprep.subr.bf16.mxu1 %v6019_v1  ;;  %4916 = vmatmul.mubr.bf16.vlgmr.msra.gmra.mxu0 %v7326_v4  ;;  %v5971_v61 = vcombine.high %v164_v52, %v168_v55  ;;  %v28_v62 = vld [vmem:[%s9199_s1 + $0x8] sm:$0xff]  ;;  %v5970_v3 = vcombine.low %v164_v52, %v168_v55 }
  0xc8   :  { %4966 = vmatpush1.bf16.msra.mxu0 %v5890_v8  ;;  %4997 = vmatprep.mubr.bf16.mxu0 %v6752_v58  ;;  %v32_v63 = vld [vmem:[%s9199_s1 + $0x28] sm:$0xff] }
  0xc9   :  { %4957 = vmatmul.mubr.bf16.vlgmr.msra.gmra.mxu1 %v7336_v7  ;;  %4967 = vmatprep.subr.bf16.mxu0 %v5883_v10  ;;  %v156_v0 = vld [vmem:[%s9199_s1 + $0x408] sm:$0xff]  ;;  %v5835_v5 = vcombine.high %v28_v62, %v32_v63  ;;  %v5834_v11 = vcombine.low %v28_v62, %v32_v63 }
  0xca   :  { %5007 = vmatpush1.bf16.msra.mxu1 %v6018_v9  ;;  %5038 = vmatprep.mubr.bf16.mxu1 %v6756_v59  ;;  %v160_v1 = vld [vmem:[%s9199_s1 + $0x428] sm:$0xff] }
  0xcb   :  { %5008 = vmatprep.subr.bf16.mxu1 %v6011_v39  ;;  %v5963_v6 = vcombine.high %v156_v0, %v160_v1  ;;  %v148_v8 = vld [vmem:[%s9199_s1 + $0x3c8] sm:$0xff]  ;;  %v5962_v12 = vcombine.low %v156_v0, %v160_v1 }
  0xcc   :  { %4968 = vmatpush1.bf16.msra.mxu0 %v5882_v14  ;;  %v152_v9 = vld [vmem:[%s9199_s1 + $0x3e8] sm:$0xff] }
  0xcd   :  { %4969 = vmatprep.subr.bf16.mxu0 %v5875_v17  ;;  %v276_v10 = vld [vmem:[%s9199_s1 + $0x7c8] sm:$0xff]  ;;  %v5955_v41 = vcombine.high %v148_v8, %v152_v9  ;;  %v5954_v53 = vcombine.low %v148_v8, %v152_v9  ;;  %v797_v9 = vlaneseq }
  0xce   :  { %5009 = vmatpush1.bf16.msra.mxu1 %v6010_v15  ;;  %v280_v39 = vld [vmem:[%s9199_s1 + $0x7e8] sm:$0xff] }
  0xcf   :  { %5010 = vmatprep.subr.bf16.mxu1 %v6003_v18  ;;  %v6083_v13 = vcombine.high %v276_v10, %v280_v39  ;;  %v140_v14 = vld [vmem:[%s9199_s1 + $0x388] sm:$0xff]  ;;  %v6082_v22 = vcombine.low %v276_v10, %v280_v39 }
  0xd0   :  { %4970 = vmatpush1.bf16.msra.mxu0 %v5874_v25  ;;  %v144_v15 = vld [vmem:[%s9199_s1 + $0x3a8] sm:$0xff] }
  0xd1   :  { %4971 = vmatprep.subr.bf16.mxu0 %v5867_v27  ;;  %v268_v17 = vld [vmem:[%s9199_s1 + $0x788] sm:$0xff]  ;;  %v5947_v23 = vcombine.high %v140_v14, %v144_v15  ;;  %v5946_v30 = vcombine.low %v140_v14, %v144_v15 }
  0xd2   :  { %5011 = vmatpush1.bf16.msra.mxu1 %v6002_v54  ;;  %v272_v18 = vld [vmem:[%s9199_s1 + $0x7a8] sm:$0xff] }
  0xd3   :  { %5012 = vmatprep.subr.bf16.mxu1 %v5995_v28  ;;  %v6075_v24 = vcombine.high %v268_v17, %v272_v18  ;;  %v132_v25 = vld [vmem:[%s9199_s1 + $0x348] sm:$0xff]  ;;  %v6074_v31 = vcombine.low %v268_v17, %v272_v18  ;;  %v7510_v17 = vshrl.u32 %v797_v9, 7 }
  0xd4   :  { %4972 = vmatpush1.bf16.msra.mxu0 %v5866_v34  ;;  %v136_v54 = vld [vmem:[%s9199_s1 + $0x368] sm:$0xff] }
  0xd5   :  { %4973 = vmatprep.subr.bf16.mxu0 %v5859_v37  ;;  %v260_v27 = vld [vmem:[%s9199_s1 + $0x748] sm:$0xff]  ;;  %v5939_v32 = vcombine.high %v132_v25, %v136_v54  ;;  %v5938_v19 = vcombine.low %v132_v25, %v136_v54 }
  0xd6   :  { %5013 = vmatpush1.bf16.msra.mxu1 %v5994_v35  ;;  %v264_v28 = vld [vmem:[%s9199_s1 + $0x768] sm:$0xff] }
  0xd7   :  { %5014 = vmatprep.subr.bf16.mxu1 %v5987_v38  ;;  %v6067_v33 = vcombine.high %v260_v27, %v264_v28  ;;  %v124_v34 = vld [vmem:[%s9199_s1 + $0x308] sm:$0xff]  ;;  %v6066_v42 = vcombine.low %v260_v27, %v264_v28  ;;  %v7525_v28 = vsub.s32 0, %v7510_v17 }
  0xd8   :  { %4974 = vmatpush1.bf16.msra.mxu0 %v5858_v45  ;;  %v128_v35 = vld [vmem:[%s9199_s1 + $0x328] sm:$0xff] }
  0xd9   :  { %4975 = vmatprep.subr.bf16.mxu0 %v5851_v47  ;;  %v252_v37 = vld [vmem:[%s9199_s1 + $0x708] sm:$0xff]  ;;  %v5931_v43 = vcombine.high %v124_v34, %v128_v35  ;;  %v5930_v50 = vcombine.low %v124_v34, %v128_v35  ;;  %v803_v34 = vsub.s32 1, %v7510_v17 }
  0xda   :  { %5015 = vmatpush1.bf16.msra.mxu1 %v5986_v21  ;;  %v256_v38 = vld [vmem:[%s9199_s1 + $0x728] sm:$0xff] }
  0xdb   :  { %5016 = vmatprep.subr.bf16.mxu1 %v5979_v48  ;;  %v6059_v44 = vcombine.high %v252_v37, %v256_v38  ;;  %v116_v45 = vld [vmem:[%s9199_s1 + $0x2c8] sm:$0xff]  ;;  %v6058_v51 = vcombine.low %v252_v37, %v256_v38 }
  0xdc   :  { %4976 = vmatpush1.bf16.msra.mxu0 %v5850_v56  ;;  %v120_v21 = vld [vmem:[%s9199_s1 + $0x2e8] sm:$0xff] }
  0xdd   :  { %4977 = vmatprep.subr.bf16.mxu0 %v5843_v60  ;;  %v244_v47 = vld [vmem:[%s9199_s1 + $0x6c8] sm:$0xff]  ;;  %v5923_v52 = vcombine.high %v116_v45, %v120_v21  ;;  %v5922_v62 = vcombine.low %v116_v45, %v120_v21 }
  0xde   :  { %5017 = vmatpush1.bf16.msra.mxu1 %v5978_v57  ;;  %v248_v48 = vld [vmem:[%s9199_s1 + $0x6e8] sm:$0xff] }
  0xdf   :  { %5018 = vmatprep.subr.bf16.mxu1 %v5971_v61  ;;  %v6051_v55 = vcombine.high %v244_v47, %v248_v48  ;;  %v108_v56 = vld [vmem:[%s9199_s1 + $0x288] sm:$0xff]  ;;  %v6050_v63 = vcombine.low %v244_v47, %v248_v48 }
  0xe0   :  { %4978 = vmatpush1.bf16.msra.mxu0 %v5842_v2  ;;  %v112_v57 = vld [vmem:[%s9199_s1 + $0x2a8] sm:$0xff] }
  0xe1   :  { %4979 = vmatprep.subr.bf16.mxu0 %v5835_v5  ;;  %v236_v60 = vld [vmem:[%s9199_s1 + $0x688] sm:$0xff]  ;;  %v5915_v0 = vcombine.high %v108_v56, %v112_v57  ;;  %v5914_v8 = vcombine.low %v108_v56, %v112_v57 }
  0xe2   :  { %5019 = vmatpush1.bf16.msra.mxu1 %v5970_v3  ;;  %v240_v61 = vld [vmem:[%s9199_s1 + $0x6a8] sm:$0xff] }
  0xe3   :  { %5020 = vmatprep.subr.bf16.mxu1 %v5963_v6  ;;  %v6043_v1 = vcombine.high %v236_v60, %v240_v61  ;;  %v100_v2 = vld [vmem:[%s9199_s1 + $0x248] sm:$0xff]  ;;  %v6042_v10 = vcombine.low %v236_v60, %v240_v61 }
  0xe4   :  { %4980 = vmatpush1.bf16.msra.mxu0 %v5834_v11  ;;  %v104_v3 = vld [vmem:[%s9199_s1 + $0x268] sm:$0xff] }
  0xe5   :  { %4981 = vmatprep.subr.bf16.mxu0 %v5955_v41  ;;  %v228_v5 = vld [vmem:[%s9199_s1 + $0x648] sm:$0xff]  ;;  %v5907_v39 = vcombine.high %v100_v2, %v104_v3  ;;  %v5906_v15 = vcombine.low %v100_v2, %v104_v3 }
  0xe6   :  { %5021 = vmatpush1.bf16.msra.mxu1 %v5962_v12  ;;  %v232_v6 = vld [vmem:[%s9199_s1 + $0x668] sm:$0xff] }
  0xe7   :  { %5022 = vmatprep.subr.bf16.mxu1 %v6083_v13  ;;  %v6035_v11 = vcombine.high %v228_v5, %v232_v6  ;;  %v92_v12 = vld [vmem:[%s9199_s1 + $0x208] sm:$0xff]  ;;  %v6034_v18 = vcombine.low %v228_v5, %v232_v6 }
  0xe8   :  { %4982 = vmatpush2.bf16.msra.mxu0 %v5954_v53  ;;  %v96_v41 = vld [vmem:[%s9199_s1 + $0x228] sm:$0xff] }
  0xe9   :  { %4983 = vmatprep.subr.bf16.mxu0 %v5947_v23  ;;  %v220_v13 = vld [vmem:[%s9199_s1 + $0x608] sm:$0xff]  ;;  %v5899_v53 = vcombine.high %v92_v12, %v96_v41  ;;  %v5898_v27 = vcombine.low %v92_v12, %v96_v41 }
  0xea   :  { %5023 = vmatpush2.bf16.msra.mxu1 %v6082_v22  ;;  %v224_v14 = vld [vmem:[%s9199_s1 + $0x628] sm:$0xff] }
  0xeb   :  { %5024 = vmatprep.subr.bf16.mxu1 %v6075_v24  ;;  %v6027_v22 = vcombine.high %v220_v13, %v224_v14  ;;  %v340_v23 = vld [vmem:[%s9199_s1 + $0x9c8] sm:$0xff] }
  0xec   :  { %4984 = vmatpush2.bf16.msra.mxu0 %v5946_v30  ;;  %v344_v24 = vld [vmem:[%s9199_s1 + $0x9e8] sm:$0xff]  ;;  %v6026_v30 = vcombine.low %v220_v13, %v224_v14 }
  0xed   :  { %4985 = vmatprep.subr.bf16.mxu0 %v5939_v32  ;;  %v468_v25 = vld [vmem:[%s9199_s1 + $0xdc8] sm:$0xff]  ;;  %v6147_v32 = vcombine.high %v340_v23, %v344_v24 }
  0xee   :  { %5025 = vmatpush2.bf16.msra.mxu1 %v6074_v31  ;;  %v472_v54 = vld [vmem:[%s9199_s1 + $0xde8] sm:$0xff]  ;;  %v795_v31 = vld [vmem:[%s9201_s2] sm:$0xff] }
  0xef   :  { %5026 = vmatprep.subr.bf16.mxu1 %v6067_v33  ;;  %v6275_v33 = vcombine.high %v468_v25, %v472_v54  ;;  %v332_v35 = vld [vmem:[%s9199_s1 + $0x988] sm:$0xff]  ;;  %v804_v21 = vrot.slane %v795_v31, %v803_v34 }
  0xf0   :  { %4986 = vmatpush2.bf16.msra.mxu0 %v5938_v19  ;;  %v336_v37 = vld [vmem:[%s9199_s1 + $0x9a8] sm:$0xff] }
  0xf1   :  { %4987 = vmatprep.subr.bf16.mxu0 %v5931_v43  ;;  %v460_v38 = vld [vmem:[%s9199_s1 + $0xd88] sm:$0xff]  ;;  %v6146_v43 = vcombine.low %v340_v23, %v344_v24  ;;  %v6139_v45 = vcombine.high %v332_v35, %v336_v37  ;;  %v6138_v60 = vcombine.low %v332_v35, %v336_v37 }
  0xf2   :  { %5027 = vmatpush2.bf16.msra.mxu1 %v6066_v42  ;;  %v464_v19 = vld [vmem:[%s9199_s1 + $0xda8] sm:$0xff]  ;;  %v800_v42 = vrot.slane %v795_v31, %v7525_v28 }
  0xf3   :  { %5028 = vmatprep.subr.bf16.mxu1 %v6059_v44  ;;  %v6274_v44 = vcombine.low %v468_v25, %v472_v54  ;;  %v6267_v47 = vcombine.high %v460_v38, %v464_v19  ;;  %v324_v48 = vld [vmem:[%s9199_s1 + $0x948] sm:$0xff] }
  0xf4   :  { %4988 = vmatpush2.bf16.msra.mxu0 %v5930_v50  ;;  %v328_v50 = vld [vmem:[%s9199_s1 + $0x968] sm:$0xff] }
  0xf5   :  { %4989 = vmatprep.subr.bf16.mxu0 %v5923_v52  ;;  %v452_v52 = vld [vmem:[%s9199_s1 + $0xd48] sm:$0xff]  ;;  %v6130_v12 = vcombine.low %v324_v48, %v328_v50 }
  0xf6   :  { %5029 = vmatpush2.bf16.msra.mxu1 %v6058_v51  ;;  %v316_v5 = vld [vmem:[%s9199_s1 + $0x908] sm:$0xff] }
  0xf7   :  { %5030 = vmatprep.subr.bf16.mxu1 %v6051_v55  ;;  %v456_v55 = vld [vmem:[%s9199_s1 + $0xd68] sm:$0xff] }
  0xf8   :  { %4990 = vmatpush2.bf16.msra.mxu0 %v5922_v62  ;;  %v6266_v62 = vcombine.low %v460_v38, %v464_v19  ;;  %v6259_v3 = vcombine.high %v452_v52, %v456_v55  ;;  %v320_v6 = vld [vmem:[%s9199_s1 + $0x928] sm:$0xff]  ;;  %v6258_v13 = vcombine.low %v452_v52, %v456_v55 }
  0xf9   :  { %4991 = vmatprep.subr.bf16.mxu0 %v5915_v0  ;;  %v444_v9 = vld [vmem:[%s9199_s1 + $0xd08] sm:$0xff]  ;;  %v6123_v14 = vcombine.high %v316_v5, %v320_v6  ;;  %v6122_v25 = vcombine.low %v316_v5, %v320_v6 }
  0xfa   :  { %5031 = vmatpush2.bf16.msra.mxu1 %v6050_v63  ;;  %v6131_v63 = vcombine.high %v324_v48, %v328_v50  ;;  %v436_v23 = vld [vmem:[%s9199_s1 + $0xcc8] sm:$0xff] }
  0xfb   :  { %5032 = vmatprep.subr.bf16.mxu1 %v6043_v1  ;;  %v440_v24 = vld [vmem:[%s9199_s1 + $0xce8] sm:$0xff] }
  0xfc   :  { %4992 = vmatpush2.bf16.msra.mxu0 %v5914_v8  ;;  %v300_v31 = vld [vmem:[%s9199_s1 + $0x888] sm:$0xff]  ;;  %v6242_v37 = vcombine.low %v436_v23, %v440_v24 }
  0xfd   :  { %4993 = vmatprep.subr.bf16.mxu0 %v5907_v39  ;;  %v432_v34 = vld [vmem:[%s9199_s1 + $0xca8] sm:$0xff] }
  0xfe   :  { %5033 = vmatpush2.bf16.msra.mxu1 %v6042_v10  ;;  %v448_v10 = vld [vmem:[%s9199_s1 + $0xd28] sm:$0xff] }
  0xff   :  { %5034 = vmatprep.subr.bf16.mxu1 %v6035_v11  ;;  %v6250_v54 = vcombine.low %v444_v9, %v448_v10  ;;  %v288_v52 = vld [vmem:[%s9199_s1 + $0x828] sm:$0xff] }
 0x100   :  { %4994 = vmatpush2.bf16.msra.mxu0 %v5906_v15  ;;  %v412_v55 = vld [vmem:[%s9199_s1 + $0xc08] sm:$0xff] }
 0x101   :  { %4995 = vmatprep.subr.bf16.mxu0 %v5899_v53  ;;  %v308_v53 = vld [vmem:[%s9199_s1 + $0x8c8] sm:$0xff] }
 0x102   :  { %5035 = vmatpush2.bf16.msra.mxu1 %v6034_v18  ;;  %v6251_v18 = vcombine.high %v444_v9, %v448_v10  ;;  %v396_v10 = vld [vmem:[%s9199_s1 + $0xb88] sm:$0xff] }
 0x103   :  { %5036 = vmatprep.subr.bf16.mxu1 %v6027_v22  ;;  %v312_v22 = vld [vmem:[%s9199_s1 + $0x8e8] sm:$0xff] }
 0x104   :  { %4996 = vmatpush2.bf16.msra.mxu0 %v5898_v27  ;;  %v6115_v27 = vcombine.high %v308_v53, %v312_v22  ;;  %v6114_v35 = vcombine.low %v308_v53, %v312_v22  ;;  %v388_v53 = vld [vmem:[%s9199_s1 + $0xb48] sm:$0xff] }
 0x105   :  { %5047 = vmatprep.subr.bf16.mxu0 %v6147_v32  ;;  %v304_v32 = vld [vmem:[%s9199_s1 + $0x8a8] sm:$0xff] }
 0x106   :  { %5037 = vmatpush2.bf16.msra.mxu1 %v6026_v30  ;;  %v4753_v51 = vpop.f32.mrf.mxu0  ;;  %v6243_v30 = vcombine.high %v436_v23, %v440_v24  ;;  %v6107_v38 = vcombine.high %v300_v31, %v304_v32  ;;  %v392_v22 = vld [vmem:[%s9199_s1 + $0xb68] sm:$0xff] }
 0x107   :  { %5088 = vmatprep.subr.bf16.mxu1 %v6275_v33  ;;  %4998 = vmatmul.mubr.bf16.vlgmr.msra.gmra.mxu0 %v6882_v16  ;;  %v4754_v56 = vadd.f32 %v4753_v51, %v800_v42  ;;  %v428_v33 = vld [vmem:[%s9199_s1 + $0xc88] sm:$0xff] }
 0x108   :  { %v4794_v57 = vpop.f32.mrf.mxu1  ;;  %5048 = vmatpush1.bf16.msra.mxu0 %v6146_v43  ;;  %v4755_v61 = vpop.f32.mrf.mxu0  ;;  %5079 = vmatprep.mubr.bf16.mxu0 %v6912_v26  ;;  %v6235_v19 = vcombine.high %v428_v33, %v432_v34  ;;  %v292_v42 = vld [vmem:[%s9199_s1 + $0x848] sm:$0xff] }
 0x109   :  { %5039 = vmatmul.mubr.bf16.vlgmr.msra.gmra.mxu1 %v6897_v20  ;;  %5049 = vmatprep.subr.bf16.mxu0 %v6139_v45  ;;  %v7558_v0 = vadd.f32 %v4794_v57, %v4754_v56  ;;  %v4756_v1 = vadd.f32 %v4755_v61, %v804_v21  ;;  %v296_v43 = vld [vmem:[%s9199_s1 + $0x868] sm:$0xff]  ;;  %v6106_v21 = vcombine.low %v300_v31, %v304_v32 }
 0x10a   :  { %5089 = vmatpush1.bf16.msra.mxu1 %v6274_v44  ;;  %v4796_v2 = vpop.f32.mrf.mxu1  ;;  %v4757_v8 = vpop.f32.mrf.mxu0  ;;  %5120 = vmatprep.mubr.bf16.mxu1 %v6923_v29  ;;  %v420_v44 = vld [vmem:[%s9199_s1 + $0xc48] sm:$0xff]  ;;  %v6099_v48 = vcombine.high %v292_v42, %v296_v43  ;;  %v6098_v57 = vcombine.low %v292_v42, %v296_v43 }
 0x10b   :  { %5090 = vmatprep.subr.bf16.mxu1 %v6267_v47  ;;  %v7574_v39 = vadd.f32 %v4796_v2, %v4756_v1  ;;  %v424_v45 = vld [vmem:[%s9199_s1 + $0xc68] sm:$0xff]  ;;  %v6234_v47 = vcombine.low %v428_v33, %v432_v34 }
 0x10c   :  { %v4798_v11 = vpop.f32.mrf.mxu1  ;;  %5050 = vmatpush1.bf16.msra.mxu0 %v6138_v60  ;;  %v4758_v41 = vpop.f32.mrf.mxu0  ;;  %v6227_v50 = vcombine.high %v420_v44, %v424_v45  ;;  %v284_v51 = vld [vmem:[%s9199_s1 + $0x808] sm:$0xff]  ;;  %v6226_v60 = vcombine.low %v420_v44, %v424_v45 }
 0x10d   :  { %5051 = vmatprep.subr.bf16.mxu0 %v6131_v63  ;;  %v416_v56 = vld [vmem:[%s9199_s1 + $0xc28] sm:$0xff]  ;;  %v6091_v61 = vcombine.high %v284_v51, %v288_v52  ;;  %v6090_v5 = vcombine.low %v284_v51, %v288_v52 }
 0x10e   :  { %5091 = vmatpush1.bf16.msra.mxu1 %v6266_v62  ;;  %v4799_v15 = vpop.f32.mrf.mxu1  ;;  %v6219_v62 = vcombine.high %v412_v55, %v416_v56  ;;  %v404_v63 = vld [vmem:[%s9199_s1 + $0xbc8] sm:$0xff]  ;;  %v6218_v6 = vcombine.low %v412_v55, %v416_v56 }
 0x10f   :  { %5092 = vmatprep.subr.bf16.mxu1 %v6259_v3  ;;  %v408_v1 = vld [vmem:[%s9199_s1 + $0xbe8] sm:$0xff] }
 0x110   :  { %5052 = vmatpush1.bf16.msra.mxu0 %v6130_v12  ;;  %v532_v2 = vld [vmem:[%s9199_s1 + $0xfc8] sm:$0xff]  ;;  %v6211_v8 = vcombine.high %v404_v63, %v408_v1 }
 0x111   :  { %5053 = vmatprep.subr.bf16.mxu0 %v6123_v14  ;;  %v536_v3 = vld [vmem:[%s9199_s1 + $0xfe8] sm:$0xff] }
 0x112   :  { %5093 = vmatpush1.bf16.msra.mxu1 %v6258_v13  ;;  %v6339_v9 = vcombine.high %v532_v2, %v536_v3  ;;  %v400_v11 = vld [vmem:[%s9199_s1 + $0xba8] sm:$0xff]  ;;  %v6210_v13 = vcombine.low %v404_v63, %v408_v1  ;;  %v6338_v14 = vcombine.low %v532_v2, %v536_v3 }
 0x113   :  { %5094 = vmatprep.subr.bf16.mxu1 %v6251_v18  ;;  %v524_v12 = vld [vmem:[%s9199_s1 + $0xf88] sm:$0xff]  ;;  %v6203_v15 = vcombine.high %v396_v10, %v400_v11 }
 0x114   :  { %5054 = vmatpush1.bf16.msra.mxu0 %v6122_v25  ;;  %v528_v41 = vld [vmem:[%s9199_s1 + $0xfa8] sm:$0xff]  ;;  %v6202_v25 = vcombine.low %v396_v10, %v400_v11 }
 0x115   :  { %5055 = vmatprep.subr.bf16.mxu0 %v6115_v27  ;;  %v6331_v18 = vcombine.high %v524_v12, %v528_v41  ;;  %v516_v23 = vld [vmem:[%s9199_s1 + $0xf48] sm:$0xff]  ;;  %v6195_v27 = vcombine.high %v388_v53, %v392_v22 }
 0x116   :  { %5095 = vmatpush1.bf16.msra.mxu1 %v6250_v54  ;;  %v520_v24 = vld [vmem:[%s9199_s1 + $0xf68] sm:$0xff]  ;;  %v6330_v54 = vcombine.low %v524_v12, %v528_v41 }
 0x117   :  { %5096 = vmatprep.subr.bf16.mxu1 %v6243_v30  ;;  %v6323_v30 = vcombine.high %v516_v23, %v520_v24  ;;  %v380_v31 = vld [vmem:[%s9199_s1 + $0xb08] sm:$0xff] }
 0x118   :  { %5056 = vmatpush1.bf16.msra.mxu0 %v6114_v35  ;;  %v384_v32 = vld [vmem:[%s9199_s1 + $0xb28] sm:$0xff]  ;;  %v6194_v35 = vcombine.low %v388_v53, %v392_v22 }
 0x119   :  { %5057 = vmatprep.subr.bf16.mxu0 %v6107_v38  ;;  %v508_v33 = vld [vmem:[%s9199_s1 + $0xf08] sm:$0xff]  ;;  %v6187_v38 = vcombine.high %v380_v31, %v384_v32 }
 0x11a   :  { %5097 = vmatpush1.bf16.msra.mxu1 %v6242_v37  ;;  %v512_v34 = vld [vmem:[%s9199_s1 + $0xf28] sm:$0xff]  ;;  %v6322_v37 = vcombine.low %v516_v23, %v520_v24 }
 0x11b   :  { %5098 = vmatprep.subr.bf16.mxu1 %v6235_v19  ;;  %v6315_v19 = vcombine.high %v508_v33, %v512_v34  ;;  %v372_v42 = vld [vmem:[%s9199_s1 + $0xac8] sm:$0xff] }
 0x11c   :  { %5058 = vmatpush1.bf16.msra.mxu0 %v6106_v21  ;;  %v376_v43 = vld [vmem:[%s9199_s1 + $0xae8] sm:$0xff]  ;;  %v6186_v21 = vcombine.low %v380_v31, %v384_v32 }
 0x11d   :  { %5059 = vmatprep.subr.bf16.mxu0 %v6099_v48  ;;  %v500_v44 = vld [vmem:[%s9199_s1 + $0xec8] sm:$0xff]  ;;  %v6179_v48 = vcombine.high %v372_v42, %v376_v43 }
 0x11e   :  { %5099 = vmatpush1.bf16.msra.mxu1 %v6234_v47  ;;  %v504_v45 = vld [vmem:[%s9199_s1 + $0xee8] sm:$0xff]  ;;  %v6314_v47 = vcombine.low %v508_v33, %v512_v34 }
 0x11f   :  { %5100 = vmatprep.subr.bf16.mxu1 %v6227_v50  ;;  %v6307_v50 = vcombine.high %v500_v44, %v504_v45  ;;  %v364_v51 = vld [vmem:[%s9199_s1 + $0xa88] sm:$0xff] }
 0x120   :  { %5060 = vmatpush1.bf16.msra.mxu0 %v6098_v57  ;;  %v368_v52 = vld [vmem:[%s9199_s1 + $0xaa8] sm:$0xff]  ;;  %v6178_v57 = vcombine.low %v372_v42, %v376_v43 }
 0x121   :  { %5061 = vmatprep.subr.bf16.mxu0 %v6091_v61  ;;  %v492_v55 = vld [vmem:[%s9199_s1 + $0xe88] sm:$0xff]  ;;  %v6171_v61 = vcombine.high %v364_v51, %v368_v52 }
 0x122   :  { %5101 = vmatpush1.bf16.msra.mxu1 %v6226_v60  ;;  %v496_v56 = vld [vmem:[%s9199_s1 + $0xea8] sm:$0xff]  ;;  %v6306_v60 = vcombine.low %v500_v44, %v504_v45 }
 0x123   :  { %5102 = vmatprep.subr.bf16.mxu1 %v6219_v62  ;;  %v6299_v62 = vcombine.high %v492_v55, %v496_v56  ;;  %v356_v63 = vld [vmem:[%s9199_s1 + $0xa48] sm:$0xff] }
 0x124   :  { %5062 = vmatpush1.bf16.msra.mxu0 %v6090_v5  ;;  %v360_v1 = vld [vmem:[%s9199_s1 + $0xa68] sm:$0xff]  ;;  %v6170_v5 = vcombine.low %v364_v51, %v368_v52 }
 0x125   :  { %5063 = vmatprep.subr.bf16.mxu0 %v6211_v8  ;;  %v484_v2 = vld [vmem:[%s9199_s1 + $0xe48] sm:$0xff]  ;;  %v6163_v8 = vcombine.high %v356_v63, %v360_v1 }
 0x126   :  { %5103 = vmatpush1.bf16.msra.mxu1 %v6218_v6  ;;  %v488_v3 = vld [vmem:[%s9199_s1 + $0xe68] sm:$0xff]  ;;  %v6298_v6 = vcombine.low %v492_v55, %v496_v56 }
 0x127   :  { %5104 = vmatprep.subr.bf16.mxu1 %v6339_v9  ;;  %v6291_v9 = vcombine.high %v484_v2, %v488_v3  ;;  %v348_v10 = vld [vmem:[%s9199_s1 + $0xa08] sm:$0xff] }
 0x128   :  { %5064 = vmatpush2.bf16.msra.mxu0 %v6210_v13  ;;  %v352_v11 = vld [vmem:[%s9199_s1 + $0xa28] sm:$0xff]  ;;  %v6162_v13 = vcombine.low %v356_v63, %v360_v1 }
 0x129   :  { %5065 = vmatprep.subr.bf16.mxu0 %v6203_v15  ;;  %v476_v12 = vld [vmem:[%s9199_s1 + $0xe08] sm:$0xff]  ;;  %v6155_v15 = vcombine.high %v348_v10, %v352_v11 }
 0x12a   :  { %5105 = vmatpush2.bf16.msra.mxu1 %v6338_v14  ;;  %v480_v41 = vld [vmem:[%s9199_s1 + $0xe28] sm:$0xff]  ;;  %v6290_v14 = vcombine.low %v484_v2, %v488_v3 }
 0x12b   :  { %5106 = vmatprep.subr.bf16.mxu1 %v6331_v18  ;;  %v6283_v18 = vcombine.high %v476_v12, %v480_v41  ;;  %v596_v53 = vld [vmem:[%s9199_s1 + $0x11c8] sm:$0xff] }
 0x12c   :  { %5066 = vmatpush2.bf16.msra.mxu0 %v6202_v25  ;;  %v600_v22 = vld [vmem:[%s9199_s1 + $0x11e8] sm:$0xff]  ;;  %v6154_v25 = vcombine.low %v348_v10, %v352_v11 }
 0x12d   :  { %5067 = vmatprep.subr.bf16.mxu0 %v6195_v27  ;;  %v724_v23 = vld [vmem:[%s9199_s1 + $0x15c8] sm:$0xff]  ;;  %v6403_v27 = vcombine.high %v596_v53, %v600_v22 }
 0x12e   :  { %5107 = vmatpush2.bf16.msra.mxu1 %v6330_v54  ;;  %v728_v24 = vld [vmem:[%s9199_s1 + $0x15e8] sm:$0xff]  ;;  %v6282_v54 = vcombine.low %v476_v12, %v480_v41 }
 0x12f   :  { %5108 = vmatprep.subr.bf16.mxu1 %v6323_v30  ;;  %v6531_v30 = vcombine.high %v724_v23, %v728_v24  ;;  %v588_v31 = vld [vmem:[%s9199_s1 + $0x1188] sm:$0xff] }
 0x130   :  { %5068 = vmatpush2.bf16.msra.mxu0 %v6194_v35  ;;  %v592_v32 = vld [vmem:[%s9199_s1 + $0x11a8] sm:$0xff]  ;;  %v6402_v35 = vcombine.low %v596_v53, %v600_v22 }
 0x131   :  { %5069 = vmatprep.subr.bf16.mxu0 %v6187_v38  ;;  %v716_v33 = vld [vmem:[%s9199_s1 + $0x1588] sm:$0xff]  ;;  %v6395_v38 = vcombine.high %v588_v31, %v592_v32 }
 0x132   :  { %5109 = vmatpush2.bf16.msra.mxu1 %v6322_v37  ;;  %v720_v34 = vld [vmem:[%s9199_s1 + $0x15a8] sm:$0xff]  ;;  %v6530_v37 = vcombine.low %v724_v23, %v728_v24 }
 0x133   :  { %5110 = vmatprep.subr.bf16.mxu1 %v6315_v19  ;;  %v6523_v19 = vcombine.high %v716_v33, %v720_v34  ;;  %v580_v42 = vld [vmem:[%s9199_s1 + $0x1148] sm:$0xff]  ;;  %v6522_v52 = vcombine.low %v716_v33, %v720_v34 }
 0x134   :  { %5070 = vmatpush2.bf16.msra.mxu0 %v6186_v21  ;;  %v584_v43 = vld [vmem:[%s9199_s1 + $0x1168] sm:$0xff] }
 0x135   :  { %5071 = vmatprep.subr.bf16.mxu0 %v6179_v48  ;;  %v708_v45 = vld [vmem:[%s9199_s1 + $0x1548] sm:$0xff]  ;;  %v6387_v55 = vcombine.high %v580_v42, %v584_v43 }
 0x136   :  { %5111 = vmatpush2.bf16.msra.mxu1 %v6314_v47  ;;  %v712_v21 = vld [vmem:[%s9199_s1 + $0x1568] sm:$0xff] }
 0x137   :  { %5112 = vmatprep.subr.bf16.mxu1 %v6307_v50  ;;  %v6394_v50 = vcombine.low %v588_v31, %v592_v32  ;;  %v700_v1 = vld [vmem:[%s9199_s1 + $0x1508] sm:$0xff] }
 0x138   :  { %5072 = vmatpush2.bf16.msra.mxu0 %v6178_v57  ;;  %v564_v12 = vld [vmem:[%s9199_s1 + $0x10c8] sm:$0xff] }
 0x139   :  { %5073 = vmatprep.subr.bf16.mxu0 %v6171_v61  ;;  %v6515_v61 = vcombine.high %v708_v45, %v712_v21  ;;  %v568_v41 = vld [vmem:[%s9199_s1 + $0x10e8] sm:$0xff] }
 0x13a   :  { %5113 = vmatpush2.bf16.msra.mxu1 %v6306_v60  ;;  %v6371_v53 = vcombine.high %v564_v12, %v568_v41  ;;  %v556_v23 = vld [vmem:[%s9199_s1 + $0x1088] sm:$0xff] }
 0x13b   :  { %5114 = vmatprep.subr.bf16.mxu1 %v6299_v62  ;;  %v576_v62 = vld [vmem:[%s9199_s1 + $0x1128] sm:$0xff] }
 0x13c   :  { %5074 = vmatpush2.bf16.msra.mxu0 %v6170_v5  ;;  %v6386_v5 = vcombine.low %v580_v42, %v584_v43  ;;  %v560_v24 = vld [vmem:[%s9199_s1 + $0x10a8] sm:$0xff] }
 0x13d   :  { %5075 = vmatprep.subr.bf16.mxu0 %v6163_v8  ;;  %v6514_v8 = vcombine.low %v708_v45, %v712_v21  ;;  %v6363_v31 = vcombine.high %v556_v23, %v560_v24  ;;  %v548_v33 = vld [vmem:[%s9199_s1 + $0x1048] sm:$0xff] }
 0x13e   :  { %5115 = vmatpush2.bf16.msra.mxu1 %v6298_v6  ;;  %v552_v34 = vld [vmem:[%s9199_s1 + $0x1068] sm:$0xff] }
 0x13f   :  { %5116 = vmatprep.subr.bf16.mxu1 %v6291_v9  ;;  %v6355_v42 = vcombine.high %v548_v33, %v552_v34  ;;  %v544_v45 = vld [vmem:[%s9199_s1 + $0x1028] sm:$0xff] }
 0x140   :  { %5076 = vmatpush2.bf16.msra.mxu0 %v6162_v13  ;;  %v692_v13 = vld [vmem:[%s9199_s1 + $0x14c8] sm:$0xff] }
 0x141   :  { %5077 = vmatprep.subr.bf16.mxu0 %v6155_v15  ;;  %v668_v21 = vld [vmem:[%s9199_s1 + $0x1408] sm:$0xff] }
 0x142   :  { %5117 = vmatpush2.bf16.msra.mxu1 %v6290_v14  ;;  %v696_v14 = vld [vmem:[%s9199_s1 + $0x14e8] sm:$0xff] }
 0x143   :  { %5118 = vmatprep.subr.bf16.mxu1 %v6283_v18  ;;  %v6499_v22 = vcombine.high %v692_v13, %v696_v14 }
 0x144   :  { %5078 = vmatpush2.bf16.msra.mxu0 %v6154_v25  ;;  %v684_v25 = vld [vmem:[%s9199_s1 + $0x1488] sm:$0xff] }
 0x145   :  { %5129 = vmatprep.subr.bf16.mxu0 %v6403_v27  ;;  %v6370_v27 = vcombine.low %v564_v12, %v568_v41  ;;  %v644_v12 = vld [vmem:[%s9199_s1 + $0x1348] sm:$0xff] }
 0x146   :  { %5119 = vmatpush2.bf16.msra.mxu1 %v6282_v54  ;;  %v4835_v44 = vpop.f32.mrf.mxu0  ;;  %v688_v54 = vld [vmem:[%s9199_s1 + $0x14a8] sm:$0xff] }
 0x147   :  { %5170 = vmatprep.subr.bf16.mxu1 %v6531_v30  ;;  %5080 = vmatmul.mubr.bf16.vlgmr.msra.gmra.mxu0 %v7104_v36  ;;  %v4836_v47 = vadd.f32 %v4835_v44, %v7558_v0  ;;  %v572_v0 = vld [vmem:[%s9199_s1 + $0x1108] sm:$0xff]  ;;  %v6498_v30 = vcombine.low %v692_v13, %v696_v14  ;;  %v6491_v32 = vcombine.high %v684_v25, %v688_v54 }
 0x148   :  { %v4876_v48 = vpop.f32.mrf.mxu1  ;;  %5130 = vmatpush1.bf16.msra.mxu0 %v6402_v35  ;;  %v4837_v51 = vpop.f32.mrf.mxu0  ;;  %5161 = vmatprep.mubr.bf16.mxu0 %v7134_v46  ;;  %v6379_v9 = vcombine.high %v572_v0, %v576_v62  ;;  %v6378_v15 = vcombine.low %v572_v0, %v576_v62  ;;  %v676_v35 = vld [vmem:[%s9199_s1 + $0x1448] sm:$0xff] }
 0x149   :  { %5121 = vmatmul.mubr.bf16.vlgmr.msra.gmra.mxu1 %v7119_v40  ;;  %5131 = vmatprep.subr.bf16.mxu0 %v6395_v38  ;;  %v7759_v56 = vadd.f32 %v4876_v48, %v4836_v47  ;;  %v4838_v57 = vadd.f32 %v4837_v51, %v7574_v39  ;;  %v704_v39 = vld [vmem:[%s9199_s1 + $0x1528] sm:$0xff]  ;;  %v6362_v38 = vcombine.low %v556_v23, %v560_v24 }
 0x14a   :  { %5171 = vmatpush1.bf16.msra.mxu1 %v6530_v37  ;;  %v4878_v60 = vpop.f32.mrf.mxu1  ;;  %v4839_v63 = vpop.f32.mrf.mxu0  ;;  %5202 = vmatprep.mubr.bf16.mxu1 %v7145_v49  ;;  %v6507_v11 = vcombine.high %v700_v1, %v704_v39  ;;  %v6506_v18 = vcombine.low %v700_v1, %v704_v39  ;;  %v680_v37 = vld [vmem:[%s9199_s1 + $0x1468] sm:$0xff]  ;;  %v6354_v48 = vcombine.low %v548_v33, %v552_v34 }
 0x14b   :  { %5172 = vmatprep.subr.bf16.mxu1 %v6523_v19  ;;  %v7776_v2 = vadd.f32 %v4878_v60, %v4838_v57  ;;  %v6490_v19 = vcombine.low %v684_v25, %v688_v54  ;;  %v6483_v43 = vcombine.high %v676_v35, %v680_v37  ;;  %v540_v44 = vld [vmem:[%s9199_s1 + $0x1008] sm:$0xff] }
 0x14c   :  { %v4880_v3 = vpop.f32.mrf.mxu1  ;;  %5132 = vmatpush1.bf16.msra.mxu0 %v6394_v50  ;;  %v4840_v6 = vpop.f32.mrf.mxu0  ;;  %v672_v47 = vld [vmem:[%s9199_s1 + $0x1428] sm:$0xff]  ;;  %v6482_v50 = vcombine.low %v676_v35, %v680_v37  ;;  %v6347_v51 = vcombine.high %v540_v44, %v544_v45  ;;  %v6346_v0 = vcombine.low %v540_v44, %v544_v45 }
 0x14d   :  { %5133 = vmatprep.subr.bf16.mxu0 %v6387_v55  ;;  %v660_v55 = vld [vmem:[%s9199_s1 + $0x13c8] sm:$0xff]  ;;  %v6474_v62 = vcombine.low %v668_v21, %v672_v47 }
 0x14e   :  { %5173 = vmatpush1.bf16.msra.mxu1 %v6522_v52  ;;  %v4881_v10 = vpop.f32.mrf.mxu1  ;;  %v6475_v52 = vcombine.high %v668_v21, %v672_v47  ;;  %v664_v57 = vld [vmem:[%s9199_s1 + $0x13e8] sm:$0xff] }
 0x14f   :  { %5174 = vmatprep.subr.bf16.mxu1 %v6515_v61  ;;  %v788_v60 = vld [vmem:[%s9199_s1 + $0x17c8] sm:$0xff]  ;;  %v6467_v63 = vcombine.high %v660_v55, %v664_v57 }
 0x150   :  { %5134 = vmatpush1.bf16.msra.mxu0 %v6386_v5  ;;  %v792_v61 = vld [vmem:[%s9199_s1 + $0x17e8] sm:$0xff] }
 0x151   :  { %5135 = vmatprep.subr.bf16.mxu0 %v6379_v9  ;;  %v6595_v1 = vcombine.high %v788_v60, %v792_v61  ;;  %v652_v39 = vld [vmem:[%s9199_s1 + $0x1388] sm:$0xff]  ;;  %v6594_v9 = vcombine.low %v788_v60, %v792_v61 }
 0x152   :  { %5175 = vmatpush1.bf16.msra.mxu1 %v6514_v8  ;;  %v656_v3 = vld [vmem:[%s9199_s1 + $0x13a8] sm:$0xff]  ;;  %v6466_v8 = vcombine.low %v660_v55, %v664_v57 }
 0x153   :  { %5176 = vmatprep.subr.bf16.mxu1 %v6507_v11  ;;  %v780_v5 = vld [vmem:[%s9199_s1 + $0x1788] sm:$0xff]  ;;  %v6459_v10 = vcombine.high %v652_v39, %v656_v3 }
 0x154   :  { %5136 = vmatpush1.bf16.msra.mxu0 %v6378_v15  ;;  %v784_v6 = vld [vmem:[%s9199_s1 + $0x17a8] sm:$0xff]  ;;  %v6458_v15 = vcombine.low %v652_v39, %v656_v3 }
 0x155   :  { %5137 = vmatprep.subr.bf16.mxu0 %v6371_v53  ;;  %v6587_v11 = vcombine.high %v780_v5, %v784_v6  ;;  %v648_v41 = vld [vmem:[%s9199_s1 + $0x1368] sm:$0xff] }
 0x156   :  { %5177 = vmatpush1.bf16.msra.mxu1 %v6506_v18  ;;  %v772_v13 = vld [vmem:[%s9199_s1 + $0x1748] sm:$0xff]  ;;  %v6586_v18 = vcombine.low %v780_v5, %v784_v6  ;;  %v6451_v53 = vcombine.high %v644_v12, %v648_v41 }
 0x157   :  { %5178 = vmatprep.subr.bf16.mxu1 %v6499_v22  ;;  %v776_v14 = vld [vmem:[%s9199_s1 + $0x1768] sm:$0xff] }
 0x158   :  { %5138 = vmatpush1.bf16.msra.mxu0 %v6370_v27  ;;  %v6579_v22 = vcombine.high %v772_v13, %v776_v14  ;;  %v636_v23 = vld [vmem:[%s9199_s1 + $0x1308] sm:$0xff]  ;;  %v6450_v27 = vcombine.low %v644_v12, %v648_v41  ;;  %v85_v12 = vld [vmem:[%s9199_s1 + $0x1d0] sm:$0xff] }
 0x159   :  { %5139 = vmatprep.subr.bf16.mxu0 %v6363_v31  ;;  %v640_v24 = vld [vmem:[%s9199_s1 + $0x1328] sm:$0xff]  ;;  %v89_v41 = vld [vmem:[%s9199_s1 + $0x1f0] sm:$0xff] }
 0x15a   :  { %5179 = vmatpush1.bf16.msra.mxu1 %v6498_v30  ;;  %v764_v25 = vld [vmem:[%s9199_s1 + $0x1708] sm:$0xff]  ;;  %v6578_v30 = vcombine.low %v772_v13, %v776_v14  ;;  %v6443_v31 = vcombine.high %v636_v23, %v640_v24  ;;  %v213_v13 = vld [vmem:[%s9199_s1 + $0x5d0] sm:$0xff] }
 0x15b   :  { %5180 = vmatprep.subr.bf16.mxu1 %v6491_v32  ;;  %v768_v54 = vld [vmem:[%s9199_s1 + $0x1728] sm:$0xff]  ;;  %v217_v14 = vld [vmem:[%s9199_s1 + $0x5f0] sm:$0xff] }
 0x15c   :  { %5140 = vmatpush1.bf16.msra.mxu0 %v6362_v38  ;;  %v6571_v32 = vcombine.high %v764_v25, %v768_v54  ;;  %v628_v33 = vld [vmem:[%s9199_s1 + $0x12c8] sm:$0xff]  ;;  %v6442_v38 = vcombine.low %v636_v23, %v640_v24  ;;  %v6021_v23 = vcombine.high %v213_v13, %v217_v14  ;;  %v77_v24 = vld [vmem:[%s9199_s1 + $0x190] sm:$0xff] }
 0x15d   :  { %5141 = vmatprep.subr.bf16.mxu0 %v6355_v42  ;;  %v632_v34 = vld [vmem:[%s9199_s1 + $0x12e8] sm:$0xff] }
 0x15e   :  { %5181 = vmatpush1.bf16.msra.mxu1 %v6490_v19  ;;  %v756_v35 = vld [vmem:[%s9199_s1 + $0x16c8] sm:$0xff]  ;;  %v6570_v19 = vcombine.low %v764_v25, %v768_v54  ;;  %v6435_v42 = vcombine.high %v628_v33, %v632_v34  ;;  %v81_v25 = vld [vmem:[%s9199_s1 + $0x1b0] sm:$0xff] }
 0x15f   :  { %5182 = vmatprep.subr.bf16.mxu1 %v6483_v43  ;;  %v760_v37 = vld [vmem:[%s9199_s1 + $0x16e8] sm:$0xff] }
 0x160   :  { %5142 = vmatpush1.bf16.msra.mxu0 %v6354_v48  ;;  %v6563_v43 = vcombine.high %v756_v35, %v760_v37  ;;  %v620_v44 = vld [vmem:[%s9199_s1 + $0x1288] sm:$0xff]  ;;  %v6434_v48 = vcombine.low %v628_v33, %v632_v34  ;;  %v6020_v33 = vcombine.low %v213_v13, %v217_v14  ;;  %v5885_v34 = vcombine.high %v77_v24, %v81_v25  ;;  %v53_v14 = vld [vmem:[%s9199_s1 + $0xd0] sm:$0xff] }
 0x161   :  { %5143 = vmatprep.subr.bf16.mxu0 %v6347_v51  ;;  %v624_v45 = vld [vmem:[%s9199_s1 + $0x12a8] sm:$0xff] }
 0x162   :  { %5183 = vmatpush1.bf16.msra.mxu1 %v6482_v50  ;;  %v748_v21 = vld [vmem:[%s9199_s1 + $0x1688] sm:$0xff]  ;;  %v6562_v50 = vcombine.low %v756_v35, %v760_v37  ;;  %v6427_v51 = vcombine.high %v620_v44, %v624_v45  ;;  %v69_v37 = vld [vmem:[%s9199_s1 + $0x150] sm:$0xff] }
 0x163   :  { %5184 = vmatprep.subr.bf16.mxu1 %v6475_v52  ;;  %v752_v47 = vld [vmem:[%s9199_s1 + $0x16a8] sm:$0xff] }
 0x164   :  { %5144 = vmatpush1.bf16.msra.mxu0 %v6346_v0  ;;  %v6555_v52 = vcombine.high %v748_v21, %v752_v47  ;;  %v612_v55 = vld [vmem:[%s9199_s1 + $0x1248] sm:$0xff]  ;;  %v6426_v0 = vcombine.low %v620_v44, %v624_v45  ;;  %v201_v44 = vld [vmem:[%s9199_s1 + $0x570] sm:$0xff] }
 0x165   :  { %5145 = vmatprep.subr.bf16.mxu0 %v6467_v63  ;;  %v616_v57 = vld [vmem:[%s9199_s1 + $0x1268] sm:$0xff] }
 0x166   :  { %5185 = vmatpush1.bf16.msra.mxu1 %v6474_v62  ;;  %v740_v60 = vld [vmem:[%s9199_s1 + $0x1648] sm:$0xff]  ;;  %v6554_v62 = vcombine.low %v748_v21, %v752_v47  ;;  %v6419_v63 = vcombine.high %v612_v55, %v616_v57 }
 0x167   :  { %5186 = vmatprep.subr.bf16.mxu1 %v6595_v1  ;;  %v744_v61 = vld [vmem:[%s9199_s1 + $0x1668] sm:$0xff] }
 0x168   :  { %5146 = vmatpush2.bf16.msra.mxu0 %v6466_v8  ;;  %v6547_v1 = vcombine.high %v740_v60, %v744_v61  ;;  %v604_v39 = vld [vmem:[%s9199_s1 + $0x1208] sm:$0xff]  ;;  %v6418_v8 = vcombine.low %v612_v55, %v616_v57 }
 0x169   :  { %5147 = vmatprep.subr.bf16.mxu0 %v6459_v10  ;;  %v608_v3 = vld [vmem:[%s9199_s1 + $0x1228] sm:$0xff] }
 0x16a   :  { %5187 = vmatpush2.bf16.msra.mxu1 %v6594_v9  ;;  %v732_v5 = vld [vmem:[%s9199_s1 + $0x1608] sm:$0xff]  ;;  %v6546_v9 = vcombine.low %v740_v60, %v744_v61  ;;  %v6411_v10 = vcombine.high %v604_v39, %v608_v3 }
 0x16b   :  { %5188 = vmatprep.subr.bf16.mxu1 %v6587_v11  ;;  %v736_v6 = vld [vmem:[%s9199_s1 + $0x1628] sm:$0xff] }
 0x16c   :  { %5148 = vmatpush2.bf16.msra.mxu0 %v6458_v15  ;;  %v6539_v11 = vcombine.high %v732_v5, %v736_v6  ;;  %v6410_v15 = vcombine.low %v604_v39, %v608_v3 }
 0x16d   :  { %5149 = vmatprep.subr.bf16.mxu0 %v6451_v53  ;;  %v6538_v53 = vcombine.low %v732_v5, %v736_v6 }
 0x16e   :  { %5189 = vmatpush2.bf16.msra.mxu1 %v6586_v18  ;;  %v5711_v18 = vld [vmem:[%s9202_s3] sm:$0xff] }
 0x16f   :  { %5190 = vmatprep.subr.bf16.mxu1 %v6579_v22  ;;  %v5893_v22 = vcombine.high %v85_v12, %v89_v41  ;;  %v7943_v54 = vunpack.c.l.bf16 %v5711_v18  ;;  %v181_v18 = vld [vmem:[%s9199_s1 + $0x4d0] sm:$0xff] }
 0x170   :  { %5150 = vmatpush2.bf16.msra.mxu0 %v6450_v27  ;;  %v205_v27 = vld [vmem:[%s9199_s1 + $0x590] sm:$0xff] }
 0x171   :  { %5151 = vmatprep.subr.bf16.mxu0 %v6443_v31  ;;  %v5892_v31 = vcombine.low %v85_v12, %v89_v41 }
 0x172   :  { %5191 = vmatpush2.bf16.msra.mxu1 %v6578_v30  ;;  %v209_v30 = vld [vmem:[%s9199_s1 + $0x5b0] sm:$0xff] }
 0x173   :  { %5192 = vmatprep.subr.bf16.mxu1 %v6571_v32  ;;  %v7952_v32 = vsub.s32 2, %v7510_v17  ;;  %v6013_v35 = vcombine.high %v205_v27, %v209_v30 }
 0x174   :  { %5152 = vmatpush2.bf16.msra.mxu0 %v6442_v38  ;;  %v73_v38 = vld [vmem:[%s9199_s1 + $0x170] sm:$0xff] }
 0x175   :  { %5153 = vmatprep.subr.bf16.mxu0 %v6435_v42  ;;  %v5719_v42 = vrot.slane %v7943_v54, %v7525_v28  ;;  %v5723_v47 = vrot.slane %v7943_v54, %v7952_v32 }
 0x176   :  { %5193 = vmatpush2.bf16.msra.mxu1 %v6570_v19 }
 0x177   :  { %5194 = vmatprep.subr.bf16.mxu1 %v6563_v43  ;;  %v197_v43 = vld [vmem:[%s9199_s1 + $0x550] sm:$0xff]  ;;  %v5763_v5 = vrot.slane %v5723_v47, %v7525_v28 }
 0x178   :  { %5154 = vmatpush2.bf16.msra.mxu0 %v6434_v48  ;;  %v5884_v48 = vcombine.low %v77_v24, %v81_v25  ;;  %v6005_v61 = vcombine.high %v197_v43, %v201_v44  ;;  %v169_v47 = vld [vmem:[%s9199_s1 + $0x470] sm:$0xff] }
 0x179   :  { %5155 = vmatprep.subr.bf16.mxu0 %v6427_v51  ;;  %v6012_v51 = vcombine.low %v205_v27, %v209_v30 }
 0x17a   :  { %5195 = vmatpush2.bf16.msra.mxu1 %v6562_v50 }
 0x17b   :  { %5196 = vmatprep.subr.bf16.mxu1 %v6555_v52  ;;  %v5877_v52 = vcombine.high %v69_v37, %v73_v38 }
 0x17c   :  { %5156 = vmatpush2.bf16.msra.mxu0 %v6426_v0  ;;  %v65_v0 = vld [vmem:[%s9199_s1 + $0x130] sm:$0xff] }
 0x17d   :  { %5157 = vmatprep.subr.bf16.mxu0 %v6419_v63 }
 0x17e   :  { %5197 = vmatpush2.bf16.msra.mxu1 %v6554_v62  ;;  %v5759_v62 = vrot.slane %v5719_v42, %v7525_v28 }
 0x17f   :  { %5198 = vmatprep.subr.bf16.mxu1 %v6547_v1  ;;  %v193_v1 = vld [vmem:[%s9199_s1 + $0x530] sm:$0xff] }
 0x180   :  { %5158 = vmatpush2.bf16.msra.mxu0 %v6418_v8  ;;  %v5876_v8 = vcombine.low %v69_v37, %v73_v38  ;;  %v177_v37 = vld [vmem:[%s9199_s1 + $0x4b0] sm:$0xff] }
 0x181   :  { %5159 = vmatprep.subr.bf16.mxu0 %v6411_v10  ;;  %v6004_v10 = vcombine.low %v197_v43, %v201_v44  ;;  %v37_v44 = vld [vmem:[%s9199_s1 + $0x50] sm:$0xff] }
 0x182   :  { %5199 = vmatpush2.bf16.msra.mxu1 %v6546_v9 }
 0x183   :  { %5200 = vmatprep.subr.bf16.mxu1 %v6539_v11 }
 0x184   :  { %5160 = vmatpush2.bf16.msra.mxu0 %v6410_v15  ;;  %v57_v15 = vld [vmem:[%s9199_s1 + $0xf0] sm:$0xff] }
 0x185   :  { %5211 = vmatprep.subr.bf16.mxu0 %v5893_v22  ;;  %v5861_v27 = vcombine.high %v53_v14, %v57_v15  ;;  %v5860_v38 = vcombine.low %v53_v14, %v57_v15 }
 0x186   :  { %5201 = vmatpush2.bf16.msra.mxu1 %v6538_v53  ;;  %v185_v53 = vld [vmem:[%s9199_s1 + $0x4f0] sm:$0xff] }
 0x187   :  { %5252 = vmatprep.subr.bf16.mxu1 %v6021_v23  ;;  %v4917_v19 = vpop.f32.mrf.mxu0  ;;  %5162 = vmatmul.mubr.bf16.vlgmr.msra.gmra.mxu0 %v7326_v4 }
 0x188   :  { %v4918_v45 = vadd.f32 %v4917_v19, %v7759_v56  ;;  %5212 = vmatpush1.bf16.msra.mxu0 %v5892_v31  ;;  %v61_v56 = vld [vmem:[%s9199_s1 + $0x110] sm:$0xff]  ;;  %5243 = vmatprep.mubr.bf16.mxu0 %v6752_v58  ;;  %v5989_v31 = vcombine.high %v181_v18, %v185_v53  ;;  %v5988_v19 = vcombine.low %v181_v18, %v185_v53 }
 0x189   :  { %v4958_v21 = vpop.f32.mrf.mxu1  ;;  %5203 = vmatmul.mubr.bf16.vlgmr.msra.gmra.mxu1 %v7336_v7  ;;  %v4919_v50 = vpop.f32.mrf.mxu0  ;;  %5213 = vmatprep.subr.bf16.mxu0 %v5885_v34  ;;  %v5869_v11 = vcombine.high %v61_v56, %v65_v0  ;;  %v5868_v24 = vcombine.low %v61_v56, %v65_v0  ;;  %v49_v34 = vld [vmem:[%s9199_s1 + $0xb0] sm:$0xff] }
 0x18a   :  { %5253 = vmatpush1.bf16.msra.mxu1 %v6020_v33  ;;  %v4959_v55 = vadd.f32 %v4958_v21, %v4918_v45  ;;  %v4920_v57 = vadd.f32 %v4919_v50, %v7776_v2  ;;  %v189_v2 = vld [vmem:[%s9199_s1 + $0x510] sm:$0xff]  ;;  %5284 = vmatprep.mubr.bf16.mxu1 %v6756_v59 }
 0x18b   :  { %v4960_v60 = vpop.f32.mrf.mxu1  ;;  %5254 = vmatprep.subr.bf16.mxu1 %v6013_v35  ;;  %v4921_v63 = vpop.f32.mrf.mxu0  ;;  %v5997_v13 = vcombine.high %v189_v2, %v193_v1  ;;  %v5996_v25 = vcombine.low %v189_v2, %v193_v1  ;;  %v45_v33 = vld [vmem:[%s9199_s1 + $0x90] sm:$0xff] }
 0x18c   :  { %v5703_v39 = vmax.f32 %v4959_v55, 0.0  ;;  %v4961_v3 = vadd.f32 %v4960_v60, %v4920_v57  ;;  %5214 = vmatpush1.bf16.msra.mxu0 %v5884_v48  ;;  %v173_v35 = vld [vmem:[%s9199_s1 + $0x490] sm:$0xff]  ;;  %v5853_v42 = vcombine.high %v45_v33, %v49_v34  ;;  %v5852_v48 = vcombine.low %v45_v33, %v49_v34 }
 0x18d   :  { %v4962_v6 = vpop.f32.mrf.mxu1  ;;  %v4922_v9 = vpop.f32.mrf.mxu0  ;;  %5215 = vmatprep.subr.bf16.mxu0 %v5877_v52  ;;  %v5981_v43 = vcombine.high %v173_v35, %v177_v37  ;;  %v41_v45 = vld [vmem:[%s9199_s1 + $0x70] sm:$0xff]  ;;  %v5980_v50 = vcombine.low %v173_v35, %v177_v37 }
 0x18e   :  { %5255 = vmatpush1.bf16.msra.mxu1 %v6012_v51  ;;  %v5704_v12 = vmax.f32 %v4961_v3, 0.0  ;;  %v5788_v22 = vmul.f32 %v5759_v62, %v5703_v39  ;;  %v165_v21 = vld [vmem:[%s9199_s1 + $0x450] sm:$0xff]  ;;  %v5845_v51 = vcombine.high %v37_v44, %v41_v45  ;;  %v5844_v56 = vcombine.low %v37_v44, %v41_v45 }
 0x18f   :  { %v4963_v41 = vpop.f32.mrf.mxu1  ;;  %5256 = vmatprep.subr.bf16.mxu1 %v6005_v61  ;;  %v5973_v52 = vcombine.high %v165_v21, %v169_v47  ;;  %v29_v55 = vld [vmem:[%s9199_s1 + $0x10] sm:$0xff]  ;;  %v5972_v0 = vcombine.low %v165_v21, %v169_v47 }
 0x190   :  { %v5789_v23 = vmul.f32 %v5763_v5, %v5704_v12  ;;  %5216 = vmatpush1.bf16.msra.mxu0 %v5876_v8  ;;  %v33_v57 = vld [vmem:[%s9199_s1 + $0x30] sm:$0xff] }
 0x191   :  { %5217 = vmatprep.subr.bf16.mxu0 %v5869_v11  ;;  %v157_v60 = vld [vmem:[%s9199_s1 + $0x410] sm:$0xff]  ;;  %v5837_v62 = vcombine.high %v29_v55, %v33_v57  ;;  %v5836_v5 = vcombine.low %v29_v55, %v33_v57 }
 0x192   :  { %5257 = vmatpush1.bf16.msra.mxu1 %v6004_v10  ;;  %v8002_v30 = vadd.f32 %v5789_v23, %v5788_v22  ;;  %v161_v61 = vld [vmem:[%s9199_s1 + $0x430] sm:$0xff] }
 0x193   :  { %5258 = vmatprep.subr.bf16.mxu1 %v5997_v13  ;;  %v5965_v63 = vcombine.high %v157_v60, %v161_v61  ;;  %v149_v2 = vld [vmem:[%s9199_s1 + $0x3d0] sm:$0xff]  ;;  %v5964_v6 = vcombine.low %v157_v60, %v161_v61 }
 0x194   :  { %5218 = vmatpush1.bf16.msra.mxu0 %v5868_v24  ;;  %v153_v1 = vld [vmem:[%s9199_s1 + $0x3f0] sm:$0xff] }
 0x195   :  { %5219 = vmatprep.subr.bf16.mxu0 %v5861_v27  ;;  %v277_v39 = vld [vmem:[%s9199_s1 + $0x7d0] sm:$0xff]  ;;  %v5957_v8 = vcombine.high %v149_v2, %v153_v1  ;;  %v5956_v13 = vcombine.low %v149_v2, %v153_v1 }
 0x196   :  { %5259 = vmatpush1.bf16.msra.mxu1 %v5996_v25  ;;  %v281_v3 = vld [vmem:[%s9199_s1 + $0x7f0] sm:$0xff] }
 0x197   :  { %5260 = vmatprep.subr.bf16.mxu1 %v5989_v31  ;;  %v6085_v9 = vcombine.high %v277_v39, %v281_v3  ;;  %v141_v10 = vld [vmem:[%s9199_s1 + $0x390] sm:$0xff]  ;;  %v6084_v14 = vcombine.low %v277_v39, %v281_v3 }
 0x198   :  { %5220 = vmatpush1.bf16.msra.mxu0 %v5860_v38  ;;  %v145_v11 = vld [vmem:[%s9199_s1 + $0x3b0] sm:$0xff] }
 0x199   :  { %5221 = vmatprep.subr.bf16.mxu0 %v5853_v42  ;;  %v269_v12 = vld [vmem:[%s9199_s1 + $0x790] sm:$0xff]  ;;  %v5949_v15 = vcombine.high %v141_v10, %v145_v11  ;;  %v5948_v25 = vcombine.low %v141_v10, %v145_v11 }
 0x19a   :  { %5261 = vmatpush1.bf16.msra.mxu1 %v5988_v19  ;;  %v273_v41 = vld [vmem:[%s9199_s1 + $0x7b0] sm:$0xff] }
 0x19b   :  { %5262 = vmatprep.subr.bf16.mxu1 %v5981_v43  ;;  %v6077_v18 = vcombine.high %v269_v12, %v273_v41  ;;  %v133_v53 = vld [vmem:[%s9199_s1 + $0x350] sm:$0xff]  ;;  %v6076_v27 = vcombine.low %v269_v12, %v273_v41 }
 0x19c   :  { %5222 = vmatpush1.bf16.msra.mxu0 %v5852_v48  ;;  %v137_v22 = vld [vmem:[%s9199_s1 + $0x370] sm:$0xff] }
 0x19d   :  { %5223 = vmatprep.subr.bf16.mxu0 %v5845_v51  ;;  %v261_v23 = vld [vmem:[%s9199_s1 + $0x750] sm:$0xff]  ;;  %v5941_v31 = vcombine.high %v133_v53, %v137_v22  ;;  %v5940_v19 = vcombine.low %v133_v53, %v137_v22 }
 0x19e   :  { %5263 = vmatpush1.bf16.msra.mxu1 %v5980_v50  ;;  %v265_v24 = vld [vmem:[%s9199_s1 + $0x770] sm:$0xff] }
 0x19f   :  { %5264 = vmatprep.subr.bf16.mxu1 %v5973_v52  ;;  %v6069_v33 = vcombine.high %v261_v23, %v265_v24  ;;  %v125_v34 = vld [vmem:[%s9199_s1 + $0x310] sm:$0xff]  ;;  %v6068_v42 = vcombine.low %v261_v23, %v265_v24 }
 0x1a0   :  { %5224 = vmatpush1.bf16.msra.mxu0 %v5844_v56  ;;  %v129_v35 = vld [vmem:[%s9199_s1 + $0x330] sm:$0xff] }
 0x1a1   :  { %5225 = vmatprep.subr.bf16.mxu0 %v5837_v62  ;;  %v253_v37 = vld [vmem:[%s9199_s1 + $0x710] sm:$0xff]  ;;  %v5933_v43 = vcombine.high %v125_v34, %v129_v35  ;;  %v5932_v50 = vcombine.low %v125_v34, %v129_v35  ;;  %v811_v35 = vsub.s32 3, %v7510_v17 }
 0x1a2   :  { %5265 = vmatpush1.bf16.msra.mxu1 %v5972_v0  ;;  %v257_v38 = vld [vmem:[%s9199_s1 + $0x730] sm:$0xff] }
 0x1a3   :  { %5266 = vmatprep.subr.bf16.mxu1 %v5965_v63  ;;  %v6061_v44 = vcombine.high %v253_v37, %v257_v38  ;;  %v117_v45 = vld [vmem:[%s9199_s1 + $0x2d0] sm:$0xff]  ;;  %v6060_v51 = vcombine.low %v253_v37, %v257_v38 }
 0x1a4   :  { %5226 = vmatpush1.bf16.msra.mxu0 %v5836_v5  ;;  %v121_v21 = vld [vmem:[%s9199_s1 + $0x2f0] sm:$0xff] }
 0x1a5   :  { %5227 = vmatprep.subr.bf16.mxu0 %v5957_v8  ;;  %v245_v47 = vld [vmem:[%s9199_s1 + $0x6d0] sm:$0xff]  ;;  %v5925_v52 = vcombine.high %v117_v45, %v121_v21  ;;  %v5924_v0 = vcombine.low %v117_v45, %v121_v21 }
 0x1a6   :  { %5267 = vmatpush1.bf16.msra.mxu1 %v5964_v6  ;;  %v249_v48 = vld [vmem:[%s9199_s1 + $0x6f0] sm:$0xff] }
 0x1a7   :  { %5268 = vmatprep.subr.bf16.mxu1 %v6085_v9  ;;  %v6053_v55 = vcombine.high %v245_v47, %v249_v48  ;;  %v109_v57 = vld [vmem:[%s9199_s1 + $0x290] sm:$0xff]  ;;  %v6052_v62 = vcombine.low %v245_v47, %v249_v48 }
 0x1a8   :  { %5228 = vmatpush2.bf16.msra.mxu0 %v5956_v13  ;;  %v113_v60 = vld [vmem:[%s9199_s1 + $0x2b0] sm:$0xff] }
 0x1a9   :  { %5229 = vmatprep.subr.bf16.mxu0 %v5949_v15  ;;  %v237_v61 = vld [vmem:[%s9199_s1 + $0x690] sm:$0xff]  ;;  %v5917_v63 = vcombine.high %v109_v57, %v113_v60  ;;  %v5916_v6 = vcombine.low %v109_v57, %v113_v60 }
 0x1aa   :  { %5269 = vmatpush2.bf16.msra.mxu1 %v6084_v14  ;;  %v241_v56 = vld [vmem:[%s9199_s1 + $0x6b0] sm:$0xff] }
 0x1ab   :  { %5270 = vmatprep.subr.bf16.mxu1 %v6077_v18  ;;  %v6045_v2 = vcombine.high %v237_v61, %v241_v56  ;;  %v101_v1 = vld [vmem:[%s9199_s1 + $0x250] sm:$0xff]  ;;  %v6044_v8 = vcombine.low %v237_v61, %v241_v56 }
 0x1ac   :  { %5230 = vmatpush2.bf16.msra.mxu0 %v5948_v25  ;;  %v105_v39 = vld [vmem:[%s9199_s1 + $0x270] sm:$0xff] }
 0x1ad   :  { %5231 = vmatprep.subr.bf16.mxu0 %v5941_v31  ;;  %v229_v3 = vld [vmem:[%s9199_s1 + $0x650] sm:$0xff]  ;;  %v5909_v9 = vcombine.high %v101_v1, %v105_v39  ;;  %v5908_v14 = vcombine.low %v101_v1, %v105_v39 }
 0x1ae   :  { %5271 = vmatpush2.bf16.msra.mxu1 %v6076_v27  ;;  %v233_v5 = vld [vmem:[%s9199_s1 + $0x670] sm:$0xff] }
 0x1af   :  { %5272 = vmatprep.subr.bf16.mxu1 %v6069_v33  ;;  %v6037_v10 = vcombine.high %v229_v3, %v233_v5  ;;  %v93_v11 = vld [vmem:[%s9199_s1 + $0x210] sm:$0xff]  ;;  %v6036_v15 = vcombine.low %v229_v3, %v233_v5 }
 0x1b0   :  { %5232 = vmatpush2.bf16.msra.mxu0 %v5940_v19  ;;  %v97_v12 = vld [vmem:[%s9199_s1 + $0x230] sm:$0xff] }
 0x1b1   :  { %5233 = vmatprep.subr.bf16.mxu0 %v5933_v43  ;;  %v221_v41 = vld [vmem:[%s9199_s1 + $0x610] sm:$0xff]  ;;  %v5901_v18 = vcombine.high %v93_v11, %v97_v12  ;;  %v5900_v27 = vcombine.low %v93_v11, %v97_v12  ;;  %v6617_v43 = vld [vmem:[%s9201_s2] sm:$0xff] }
 0x1b2   :  { %5273 = vmatpush2.bf16.msra.mxu1 %v6068_v42  ;;  %v225_v13 = vld [vmem:[%s9199_s1 + $0x630] sm:$0xff]  ;;  %v812_v48 = vrot.slane %v6617_v43, %v811_v35 }
 0x1b3   :  { %5274 = vmatprep.subr.bf16.mxu1 %v6061_v44  ;;  %v6029_v53 = vcombine.high %v221_v41, %v225_v13  ;;  %v341_v22 = vld [vmem:[%s9199_s1 + $0x9d0] sm:$0xff]  ;;  %v6028_v31 = vcombine.low %v221_v41, %v225_v13  ;;  %v808_v44 = vrot.slane %v6617_v43, %v7952_v32 }
 0x1b4   :  { %5234 = vmatpush2.bf16.msra.mxu0 %v5932_v50  ;;  %v345_v23 = vld [vmem:[%s9199_s1 + $0x9f0] sm:$0xff] }
 0x1b5   :  { %5235 = vmatprep.subr.bf16.mxu0 %v5925_v52  ;;  %v469_v24 = vld [vmem:[%s9199_s1 + $0xdd0] sm:$0xff]  ;;  %v6149_v33 = vcombine.high %v341_v22, %v345_v23  ;;  %v6148_v45 = vcombine.low %v341_v22, %v345_v23 }
 0x1b6   :  { %5275 = vmatpush2.bf16.msra.mxu1 %v6060_v51  ;;  %v473_v25 = vld [vmem:[%s9199_s1 + $0xdf0] sm:$0xff] }
 0x1b7   :  { %5276 = vmatprep.subr.bf16.mxu1 %v6053_v55  ;;  %v6277_v34 = vcombine.high %v469_v24, %v473_v25  ;;  %v333_v37 = vld [vmem:[%s9199_s1 + $0x990] sm:$0xff]  ;;  %v6276_v21 = vcombine.low %v469_v24, %v473_v25 }
 0x1b8   :  { %5236 = vmatpush2.bf16.msra.mxu0 %v5924_v0  ;;  %v337_v38 = vld [vmem:[%s9199_s1 + $0x9b0] sm:$0xff] }
 0x1b9   :  { %5237 = vmatprep.subr.bf16.mxu0 %v5917_v63  ;;  %v461_v19 = vld [vmem:[%s9199_s1 + $0xd90] sm:$0xff]  ;;  %v6141_v47 = vcombine.high %v333_v37, %v337_v38  ;;  %v6140_v0 = vcombine.low %v333_v37, %v337_v38 }
 0x1ba   :  { %5277 = vmatpush2.bf16.msra.mxu1 %v6052_v62  ;;  %v465_v42 = vld [vmem:[%s9199_s1 + $0xdb0] sm:$0xff] }
 0x1bb   :  { %5278 = vmatprep.subr.bf16.mxu1 %v6045_v2  ;;  %v6269_v50 = vcombine.high %v461_v19, %v465_v42  ;;  %v325_v51 = vld [vmem:[%s9199_s1 + $0x950] sm:$0xff]  ;;  %v6268_v63 = vcombine.low %v461_v19, %v465_v42 }
 0x1bc   :  { %5238 = vmatpush2.bf16.msra.mxu0 %v5916_v6  ;;  %v329_v52 = vld [vmem:[%s9199_s1 + $0x970] sm:$0xff] }
 0x1bd   :  { %5239 = vmatprep.subr.bf16.mxu0 %v5909_v9  ;;  %v453_v57 = vld [vmem:[%s9199_s1 + $0xd50] sm:$0xff]  ;;  %v6133_v2 = vcombine.high %v325_v51, %v329_v52  ;;  %v6132_v13 = vcombine.low %v325_v51, %v329_v52 }
 0x1be   :  { %5279 = vmatpush2.bf16.msra.mxu1 %v6044_v8  ;;  %v457_v60 = vld [vmem:[%s9199_s1 + $0xd70] sm:$0xff] }
 0x1bf   :  { %5280 = vmatprep.subr.bf16.mxu1 %v6037_v10  ;;  %v6261_v5 = vcombine.high %v453_v57, %v457_v60  ;;  %v317_v6 = vld [vmem:[%s9199_s1 + $0x910] sm:$0xff] }
 0x1c0   :  { %5240 = vmatpush2.bf16.msra.mxu0 %v5908_v14  ;;  %v321_v8 = vld [vmem:[%s9199_s1 + $0x930] sm:$0xff] }
 0x1c1   :  { %5241 = vmatprep.subr.bf16.mxu0 %v5901_v18  ;;  %v445_v10 = vld [vmem:[%s9199_s1 + $0xd10] sm:$0xff]  ;;  %v6125_v18 = vcombine.high %v317_v6, %v321_v8 }
 0x1c2   :  { %5281 = vmatpush2.bf16.msra.mxu1 %v6036_v15  ;;  %v449_v11 = vld [vmem:[%s9199_s1 + $0xd30] sm:$0xff]  ;;  %v6260_v15 = vcombine.low %v453_v57, %v457_v60 }
 0x1c3   :  { %5282 = vmatprep.subr.bf16.mxu1 %v6029_v53  ;;  %v6253_v22 = vcombine.high %v445_v10, %v449_v11  ;;  %v309_v23 = vld [vmem:[%s9199_s1 + $0x8d0] sm:$0xff] }
 0x1c4   :  { %5242 = vmatpush2.bf16.msra.mxu0 %v5900_v27  ;;  %v313_v24 = vld [vmem:[%s9199_s1 + $0x8f0] sm:$0xff] }
 0x1c5   :  { %5293 = vmatprep.subr.bf16.mxu0 %v6149_v33  ;;  %v437_v25 = vld [vmem:[%s9199_s1 + $0xcd0] sm:$0xff]  ;;  %v6252_v33 = vcombine.low %v445_v10, %v449_v11  ;;  %v6116_v43 = vcombine.low %v309_v23, %v313_v24 }
 0x1c6   :  { %5283 = vmatpush2.bf16.msra.mxu1 %v6028_v31  ;;  %v441_v27 = vld [vmem:[%s9199_s1 + $0xcf0] sm:$0xff]  ;;  %v6124_v31 = vcombine.low %v317_v6, %v321_v8 }
 0x1c7   :  { %5334 = vmatprep.subr.bf16.mxu1 %v6277_v34  ;;  %v4999_v55 = vpop.f32.mrf.mxu0  ;;  %5244 = vmatmul.mubr.bf16.vlgmr.msra.gmra.mxu0 %v6882_v16  ;;  %v6117_v34 = vcombine.high %v309_v23, %v313_v24  ;;  %v6245_v35 = vcombine.high %v437_v25, %v441_v27  ;;  %v301_v37 = vld [vmem:[%s9199_s1 + $0x890] sm:$0xff] }
 0x1c8   :  { %v5000_v61 = vadd.f32 %v4999_v55, %v808_v44  ;;  %5294 = vmatpush1.bf16.msra.mxu0 %v6148_v45  ;;  %5325 = vmatprep.mubr.bf16.mxu0 %v6912_v26  ;;  %v305_v38 = vld [vmem:[%s9199_s1 + $0x8b0] sm:$0xff]  ;;  %v6244_v44 = vcombine.low %v437_v25, %v441_v27 }
 0x1c9   :  { %v5040_v56 = vpop.f32.mrf.mxu1  ;;  %5285 = vmatmul.mubr.bf16.vlgmr.msra.gmra.mxu1 %v6897_v20  ;;  %v5001_v62 = vpop.f32.mrf.mxu0  ;;  %5295 = vmatprep.subr.bf16.mxu0 %v6141_v47  ;;  %v429_v19 = vld [vmem:[%s9199_s1 + $0xc90] sm:$0xff]  ;;  %v6109_v45 = vcombine.high %v301_v37, %v305_v38  ;;  %v6108_v52 = vcombine.low %v301_v37, %v305_v38 }
 0x1ca   :  { %5335 = vmatpush1.bf16.msra.mxu1 %v6276_v21  ;;  %v8179_v1 = vadd.f32 %v5040_v56, %v5000_v61  ;;  %v5002_v39 = vadd.f32 %v5001_v62, %v812_v48  ;;  %5366 = vmatprep.mubr.bf16.mxu1 %v6923_v29  ;;  %v433_v42 = vld [vmem:[%s9199_s1 + $0xcb0] sm:$0xff] }
 0x1cb   :  { %v5042_v3 = vpop.f32.mrf.mxu1  ;;  %5336 = vmatprep.subr.bf16.mxu1 %v6269_v50  ;;  %v5003_v9 = vpop.f32.mrf.mxu0  ;;  %v6237_v21 = vcombine.high %v429_v19, %v433_v42  ;;  %v293_v47 = vld [vmem:[%s9199_s1 + $0x850] sm:$0xff]  ;;  %v6236_v55 = vcombine.low %v429_v19, %v433_v42 }
 0x1cc   :  { %v8195_v12 = vadd.f32 %v5042_v3, %v5002_v39  ;;  %5296 = vmatpush1.bf16.msra.mxu0 %v6140_v0  ;;  %v297_v48 = vld [vmem:[%s9199_s1 + $0x870] sm:$0xff] }
 0x1cd   :  { %v5044_v41 = vpop.f32.mrf.mxu1  ;;  %v5004_v14 = vpop.f32.mrf.mxu0  ;;  %5297 = vmatprep.subr.bf16.mxu0 %v6133_v2  ;;  %v421_v50 = vld [vmem:[%s9199_s1 + $0xc50] sm:$0xff]  ;;  %v6101_v57 = vcombine.high %v293_v47, %v297_v48 }
 0x1ce   :  { %5337 = vmatpush1.bf16.msra.mxu1 %v6268_v63  ;;  %v425_v51 = vld [vmem:[%s9199_s1 + $0xc70] sm:$0xff]  ;;  %v6100_v63 = vcombine.low %v293_v47, %v297_v48 }
 0x1cf   :  { %v5045_v53 = vpop.f32.mrf.mxu1  ;;  %5338 = vmatprep.subr.bf16.mxu1 %v6261_v5  ;;  %v6229_v60 = vcombine.high %v421_v50, %v425_v51  ;;  %v285_v61 = vld [vmem:[%s9199_s1 + $0x810] sm:$0xff]  ;;  %v6228_v2 = vcombine.low %v421_v50, %v425_v51 }
 0x1d0   :  { %5298 = vmatpush1.bf16.msra.mxu0 %v6132_v13  ;;  %v289_v56 = vld [vmem:[%s9199_s1 + $0x830] sm:$0xff] }
 0x1d1   :  { %5299 = vmatprep.subr.bf16.mxu0 %v6125_v18  ;;  %v413_v0 = vld [vmem:[%s9199_s1 + $0xc10] sm:$0xff]  ;;  %v6093_v39 = vcombine.high %v285_v61, %v289_v56  ;;  %v6092_v10 = vcombine.low %v285_v61, %v289_v56 }
 0x1d2   :  { %5339 = vmatpush1.bf16.msra.mxu1 %v6260_v15  ;;  %v417_v62 = vld [vmem:[%s9199_s1 + $0xc30] sm:$0xff] }
 0x1d3   :  { %5340 = vmatprep.subr.bf16.mxu1 %v6253_v22  ;;  %v6221_v3 = vcombine.high %v413_v0, %v417_v62  ;;  %v405_v5 = vld [vmem:[%s9199_s1 + $0xbd0] sm:$0xff]  ;;  %v6220_v11 = vcombine.low %v413_v0, %v417_v62 }
 0x1d4   :  { %5300 = vmatpush1.bf16.msra.mxu0 %v6124_v31  ;;  %v409_v6 = vld [vmem:[%s9199_s1 + $0xbf0] sm:$0xff] }
 0x1d5   :  { %5301 = vmatprep.subr.bf16.mxu0 %v6117_v34  ;;  %v533_v8 = vld [vmem:[%s9199_s1 + $0xfd0] sm:$0xff]  ;;  %v6213_v41 = vcombine.high %v405_v5, %v409_v6  ;;  %v6212_v22 = vcombine.low %v405_v5, %v409_v6 }
 0x1d6   :  { %5341 = vmatpush1.bf16.msra.mxu1 %v6252_v33  ;;  %v537_v9 = vld [vmem:[%s9199_s1 + $0xff0] sm:$0xff] }
 0x1d7   :  { %5342 = vmatprep.subr.bf16.mxu1 %v6245_v35  ;;  %v6341_v13 = vcombine.high %v533_v8, %v537_v9  ;;  %v397_v14 = vld [vmem:[%s9199_s1 + $0xb90] sm:$0xff]  ;;  %v6340_v23 = vcombine.low %v533_v8, %v537_v9 }
 0x1d8   :  { %5302 = vmatpush1.bf16.msra.mxu0 %v6116_v43  ;;  %v401_v15 = vld [vmem:[%s9199_s1 + $0xbb0] sm:$0xff] }
 0x1d9   :  { %5303 = vmatprep.subr.bf16.mxu0 %v6109_v45  ;;  %v525_v18 = vld [vmem:[%s9199_s1 + $0xf90] sm:$0xff]  ;;  %v6205_v24 = vcombine.high %v397_v14, %v401_v15  ;;  %v6204_v35 = vcombine.low %v397_v14, %v401_v15 }
 0x1da   :  { %5343 = vmatpush1.bf16.msra.mxu1 %v6244_v44  ;;  %v529_v53 = vld [vmem:[%s9199_s1 + $0xfb0] sm:$0xff] }
 0x1db   :  { %5344 = vmatprep.subr.bf16.mxu1 %v6237_v21  ;;  %v6333_v25 = vcombine.high %v525_v18, %v529_v53  ;;  %v389_v27 = vld [vmem:[%s9199_s1 + $0xb50] sm:$0xff]  ;;  %v6332_v37 = vcombine.low %v525_v18, %v529_v53 }
 0x1dc   :  { %5304 = vmatpush1.bf16.msra.mxu0 %v6108_v52  ;;  %v393_v31 = vld [vmem:[%s9199_s1 + $0xb70] sm:$0xff] }
 0x1dd   :  { %5305 = vmatprep.subr.bf16.mxu0 %v6101_v57  ;;  %v517_v33 = vld [vmem:[%s9199_s1 + $0xf50] sm:$0xff]  ;;  %v6197_v38 = vcombine.high %v389_v27, %v393_v31  ;;  %v6196_v21 = vcombine.low %v389_v27, %v393_v31 }
 0x1de   :  { %5345 = vmatpush1.bf16.msra.mxu1 %v6236_v55  ;;  %v521_v34 = vld [vmem:[%s9199_s1 + $0xf70] sm:$0xff] }
 0x1df   :  { %5346 = vmatprep.subr.bf16.mxu1 %v6229_v60  ;;  %v6325_v19 = vcombine.high %v517_v33, %v521_v34  ;;  %v381_v42 = vld [vmem:[%s9199_s1 + $0xb10] sm:$0xff]  ;;  %v6324_v47 = vcombine.low %v517_v33, %v521_v34 }
 0x1e0   :  { %5306 = vmatpush1.bf16.msra.mxu0 %v6100_v63  ;;  %v385_v43 = vld [vmem:[%s9199_s1 + $0xb30] sm:$0xff] }
 0x1e1   :  { %5307 = vmatprep.subr.bf16.mxu0 %v6093_v39  ;;  %v509_v44 = vld [vmem:[%s9199_s1 + $0xf10] sm:$0xff]  ;;  %v6189_v48 = vcombine.high %v381_v42, %v385_v43  ;;  %v6188_v60 = vcombine.low %v381_v42, %v385_v43 }
 0x1e2   :  { %5347 = vmatpush1.bf16.msra.mxu1 %v6228_v2  ;;  %v513_v45 = vld [vmem:[%s9199_s1 + $0xf30] sm:$0xff] }
 0x1e3   :  { %5348 = vmatprep.subr.bf16.mxu1 %v6221_v3  ;;  %v6317_v50 = vcombine.high %v509_v44, %v513_v45  ;;  %v373_v51 = vld [vmem:[%s9199_s1 + $0xad0] sm:$0xff]  ;;  %v6316_v61 = vcombine.low %v509_v44, %v513_v45 }
 0x1e4   :  { %5308 = vmatpush1.bf16.msra.mxu0 %v6092_v10  ;;  %v377_v52 = vld [vmem:[%s9199_s1 + $0xaf0] sm:$0xff] }
 0x1e5   :  { %5309 = vmatprep.subr.bf16.mxu0 %v6213_v41  ;;  %v501_v55 = vld [vmem:[%s9199_s1 + $0xed0] sm:$0xff]  ;;  %v6181_v56 = vcombine.high %v373_v51, %v377_v52  ;;  %v6180_v3 = vcombine.low %v373_v51, %v377_v52 }
 0x1e6   :  { %5349 = vmatpush1.bf16.msra.mxu1 %v6220_v11  ;;  %v505_v57 = vld [vmem:[%s9199_s1 + $0xef0] sm:$0xff] }
 0x1e7   :  { %5350 = vmatprep.subr.bf16.mxu1 %v6341_v13  ;;  %v6309_v0 = vcombine.high %v501_v55, %v505_v57  ;;  %v365_v62 = vld [vmem:[%s9199_s1 + $0xa90] sm:$0xff]  ;;  %v6308_v5 = vcombine.low %v501_v55, %v505_v57 }
 0x1e8   :  { %5310 = vmatpush2.bf16.msra.mxu0 %v6212_v22  ;;  %v369_v63 = vld [vmem:[%s9199_s1 + $0xab0] sm:$0xff] }
 0x1e9   :  { %5311 = vmatprep.subr.bf16.mxu0 %v6205_v24  ;;  %v493_v2 = vld [vmem:[%s9199_s1 + $0xe90] sm:$0xff]  ;;  %v6173_v6 = vcombine.high %v365_v62, %v369_v63  ;;  %v6172_v13 = vcombine.low %v365_v62, %v369_v63 }
 0x1ea   :  { %5351 = vmatpush2.bf16.msra.mxu1 %v6340_v23  ;;  %v497_v39 = vld [vmem:[%s9199_s1 + $0xeb0] sm:$0xff] }
 0x1eb   :  { %5352 = vmatprep.subr.bf16.mxu1 %v6333_v25  ;;  %v6301_v8 = vcombine.high %v493_v2, %v497_v39  ;;  %v357_v9 = vld [vmem:[%s9199_s1 + $0xa50] sm:$0xff]  ;;  %v6300_v14 = vcombine.low %v493_v2, %v497_v39 }
 0x1ec   :  { %5312 = vmatpush2.bf16.msra.mxu0 %v6204_v35  ;;  %v361_v10 = vld [vmem:[%s9199_s1 + $0xa70] sm:$0xff] }
 0x1ed   :  { %5313 = vmatprep.subr.bf16.mxu0 %v6197_v38  ;;  %v485_v11 = vld [vmem:[%s9199_s1 + $0xe50] sm:$0xff]  ;;  %v6165_v15 = vcombine.high %v357_v9, %v361_v10  ;;  %v6164_v25 = vcombine.low %v357_v9, %v361_v10 }
 0x1ee   :  { %5353 = vmatpush2.bf16.msra.mxu1 %v6332_v37  ;;  %v489_v41 = vld [vmem:[%s9199_s1 + $0xe70] sm:$0xff] }
 0x1ef   :  { %5354 = vmatprep.subr.bf16.mxu1 %v6325_v19  ;;  %v6293_v18 = vcombine.high %v485_v11, %v489_v41  ;;  %v349_v53 = vld [vmem:[%s9199_s1 + $0xa10] sm:$0xff]  ;;  %v6292_v27 = vcombine.low %v485_v11, %v489_v41 }
 0x1f0   :  { %5314 = vmatpush2.bf16.msra.mxu0 %v6196_v21  ;;  %v353_v22 = vld [vmem:[%s9199_s1 + $0xa30] sm:$0xff] }
 0x1f1   :  { %5315 = vmatprep.subr.bf16.mxu0 %v6189_v48  ;;  %v477_v23 = vld [vmem:[%s9199_s1 + $0xe10] sm:$0xff]  ;;  %v6157_v31 = vcombine.high %v349_v53, %v353_v22  ;;  %v6156_v19 = vcombine.low %v349_v53, %v353_v22 }
 0x1f2   :  { %5355 = vmatpush2.bf16.msra.mxu1 %v6324_v47  ;;  %v481_v24 = vld [vmem:[%s9199_s1 + $0xe30] sm:$0xff] }
 0x1f3   :  { %5356 = vmatprep.subr.bf16.mxu1 %v6317_v50  ;;  %v6285_v33 = vcombine.high %v477_v23, %v481_v24  ;;  %v597_v34 = vld [vmem:[%s9199_s1 + $0x11d0] sm:$0xff]  ;;  %v6284_v42 = vcombine.low %v477_v23, %v481_v24 }
 0x1f4   :  { %5316 = vmatpush2.bf16.msra.mxu0 %v6188_v60  ;;  %v601_v35 = vld [vmem:[%s9199_s1 + $0x11f0] sm:$0xff] }
 0x1f5   :  { %5317 = vmatprep.subr.bf16.mxu0 %v6181_v56  ;;  %v725_v37 = vld [vmem:[%s9199_s1 + $0x15d0] sm:$0xff]  ;;  %v6405_v43 = vcombine.high %v597_v34, %v601_v35  ;;  %v6404_v50 = vcombine.low %v597_v34, %v601_v35 }
 0x1f6   :  { %5357 = vmatpush2.bf16.msra.mxu1 %v6316_v61  ;;  %v729_v38 = vld [vmem:[%s9199_s1 + $0x15f0] sm:$0xff] }
 0x1f7   :  { %5358 = vmatprep.subr.bf16.mxu1 %v6309_v0  ;;  %v6533_v44 = vcombine.high %v725_v37, %v729_v38  ;;  %v589_v45 = vld [vmem:[%s9199_s1 + $0x1190] sm:$0xff]  ;;  %v6532_v51 = vcombine.low %v725_v37, %v729_v38 }
 0x1f8   :  { %5318 = vmatpush2.bf16.msra.mxu0 %v6180_v3  ;;  %v593_v21 = vld [vmem:[%s9199_s1 + $0x11b0] sm:$0xff] }
 0x1f9   :  { %5319 = vmatprep.subr.bf16.mxu0 %v6173_v6  ;;  %v717_v47 = vld [vmem:[%s9199_s1 + $0x1590] sm:$0xff]  ;;  %v6397_v52 = vcombine.high %v589_v45, %v593_v21  ;;  %v6396_v2 = vcombine.low %v589_v45, %v593_v21 }
 0x1fa   :  { %5359 = vmatpush2.bf16.msra.mxu1 %v6308_v5  ;;  %v721_v48 = vld [vmem:[%s9199_s1 + $0x15b0] sm:$0xff] }
 0x1fb   :  { %5360 = vmatprep.subr.bf16.mxu1 %v6301_v8  ;;  %v6525_v55 = vcombine.high %v717_v47, %v721_v48  ;;  %v581_v57 = vld [vmem:[%s9199_s1 + $0x1150] sm:$0xff]  ;;  %v6524_v3 = vcombine.low %v717_v47, %v721_v48 }
 0x1fc   :  { %5320 = vmatpush2.bf16.msra.mxu0 %v6172_v13  ;;  %v585_v60 = vld [vmem:[%s9199_s1 + $0x1170] sm:$0xff] }
 0x1fd   :  { %5321 = vmatprep.subr.bf16.mxu0 %v6165_v15  ;;  %v709_v56 = vld [vmem:[%s9199_s1 + $0x1550] sm:$0xff]  ;;  %v6389_v5 = vcombine.high %v581_v57, %v585_v60 }
 0x1fe   :  { %5361 = vmatpush2.bf16.msra.mxu1 %v6300_v14  ;;  %v713_v0 = vld [vmem:[%s9199_s1 + $0x1570] sm:$0xff] }
 0x1ff   :  { %5362 = vmatprep.subr.bf16.mxu1 %v6293_v18  ;;  %v6517_v10 = vcombine.high %v709_v56, %v713_v0  ;;  %v577_v11 = vld [vmem:[%s9199_s1 + $0x1130] sm:$0xff]  ;;  %v6388_v18 = vcombine.low %v581_v57, %v585_v60  ;;  %v6516_v22 = vcombine.low %v709_v56, %v713_v0 }
 0x200   :  { %5322 = vmatpush2.bf16.msra.mxu0 %v6164_v25  ;;  %v701_v13 = vld [vmem:[%s9199_s1 + $0x1510] sm:$0xff] }
 0x201   :  { %5323 = vmatprep.subr.bf16.mxu0 %v6157_v31  ;;  %v569_v31 = vld [vmem:[%s9199_s1 + $0x10f0] sm:$0xff] }
 0x202   :  { %5363 = vmatpush2.bf16.msra.mxu1 %v6292_v27  ;;  %v565_v27 = vld [vmem:[%s9199_s1 + $0x10d0] sm:$0xff] }
 0x203   :  { %5364 = vmatprep.subr.bf16.mxu1 %v6285_v33  ;;  %v693_v33 = vld [vmem:[%s9199_s1 + $0x14d0] sm:$0xff]  ;;  %v6373_v38 = vcombine.high %v565_v27, %v569_v31  ;;  %v6372_v21 = vcombine.low %v565_v27, %v569_v31 }
 0x204   :  { %5324 = vmatpush2.bf16.msra.mxu0 %v6156_v19  ;;  %v697_v34 = vld [vmem:[%s9199_s1 + $0x14f0] sm:$0xff] }
 0x205   :  { %5375 = vmatprep.subr.bf16.mxu0 %v6405_v43  ;;  %v6501_v19 = vcombine.high %v693_v33, %v697_v34  ;;  %v561_v43 = vld [vmem:[%s9199_s1 + $0x10b0] sm:$0xff]  ;;  %v6500_v47 = vcombine.low %v693_v33, %v697_v34 }
 0x206   :  { %5365 = vmatpush2.bf16.msra.mxu1 %v6284_v42  ;;  %v557_v42 = vld [vmem:[%s9199_s1 + $0x1090] sm:$0xff] }
 0x207   :  { %5416 = vmatprep.subr.bf16.mxu1 %v6533_v44  ;;  %v5081_v61 = vpop.f32.mrf.mxu0  ;;  %5326 = vmatmul.mubr.bf16.vlgmr.msra.gmra.mxu0 %v7104_v36  ;;  %v685_v44 = vld [vmem:[%s9199_s1 + $0x1490] sm:$0xff]  ;;  %v6365_v48 = vcombine.high %v557_v42, %v561_v43  ;;  %v6364_v60 = vcombine.low %v557_v42, %v561_v43 }
 0x208   :  { %v5082_v62 = vadd.f32 %v5081_v61, %v8179_v1  ;;  %5376 = vmatpush1.bf16.msra.mxu0 %v6404_v50  ;;  %v573_v1 = vld [vmem:[%s9199_s1 + $0x1110] sm:$0xff]  ;;  %5407 = vmatprep.mubr.bf16.mxu0 %v7134_v46 }
 0x209   :  { %v5122_v63 = vpop.f32.mrf.mxu1  ;;  %5367 = vmatmul.mubr.bf16.vlgmr.msra.gmra.mxu1 %v7119_v40  ;;  %v5083_v39 = vpop.f32.mrf.mxu0  ;;  %5377 = vmatprep.subr.bf16.mxu0 %v6397_v52  ;;  %v6381_v23 = vcombine.high %v573_v1, %v577_v11  ;;  %v6380_v35 = vcombine.low %v573_v1, %v577_v11  ;;  %v689_v45 = vld [vmem:[%s9199_s1 + $0x14b0] sm:$0xff] }
 0x20a   :  { %5417 = vmatpush1.bf16.msra.mxu1 %v6532_v51  ;;  %v8380_v6 = vadd.f32 %v5122_v63, %v5082_v62  ;;  %v5084_v8 = vadd.f32 %v5083_v39, %v8195_v12  ;;  %v705_v12 = vld [vmem:[%s9199_s1 + $0x1530] sm:$0xff]  ;;  %5448 = vmatprep.mubr.bf16.mxu1 %v7145_v49  ;;  %v6493_v50 = vcombine.high %v685_v44, %v689_v45 }
 0x20b   :  { %v5124_v9 = vpop.f32.mrf.mxu1  ;;  %5418 = vmatprep.subr.bf16.mxu1 %v6525_v55  ;;  %v5085_v41 = vpop.f32.mrf.mxu0  ;;  %v6509_v25 = vcombine.high %v701_v13, %v705_v12  ;;  %v6508_v37 = vcombine.low %v701_v13, %v705_v12  ;;  %v549_v51 = vld [vmem:[%s9199_s1 + $0x1050] sm:$0xff]  ;;  %v6492_v61 = vcombine.low %v685_v44, %v689_v45 }
 0x20c   :  { %v8397_v14 = vadd.f32 %v5124_v9, %v5084_v8  ;;  %5378 = vmatpush1.bf16.msra.mxu0 %v6396_v2  ;;  %v553_v52 = vld [vmem:[%s9199_s1 + $0x1070] sm:$0xff] }
 0x20d   :  { %v5126_v15 = vpop.f32.mrf.mxu1  ;;  %v5086_v53 = vpop.f32.mrf.mxu0  ;;  %5379 = vmatprep.subr.bf16.mxu0 %v6389_v5  ;;  %v677_v55 = vld [vmem:[%s9199_s1 + $0x1450] sm:$0xff]  ;;  %v6357_v56 = vcombine.high %v549_v51, %v553_v52 }
 0x20e   :  { %5419 = vmatpush1.bf16.msra.mxu1 %v6524_v3  ;;  %v681_v57 = vld [vmem:[%s9199_s1 + $0x1470] sm:$0xff]  ;;  %v6356_v3 = vcombine.low %v549_v51, %v553_v52 }
 0x20f   :  { %v5127_v24 = vpop.f32.mrf.mxu1  ;;  %5420 = vmatprep.subr.bf16.mxu1 %v6517_v10  ;;  %v6485_v0 = vcombine.high %v677_v55, %v681_v57  ;;  %v541_v62 = vld [vmem:[%s9199_s1 + $0x1010] sm:$0xff]  ;;  %v6484_v5 = vcombine.low %v677_v55, %v681_v57 }
 0x210   :  { %5380 = vmatpush1.bf16.msra.mxu0 %v6388_v18  ;;  %v545_v63 = vld [vmem:[%s9199_s1 + $0x1030] sm:$0xff] }
 0x211   :  { %5381 = vmatprep.subr.bf16.mxu0 %v6381_v23  ;;  %v669_v2 = vld [vmem:[%s9199_s1 + $0x1410] sm:$0xff]  ;;  %v6349_v8 = vcombine.high %v541_v62, %v545_v63  ;;  %v6348_v13 = vcombine.low %v541_v62, %v545_v63 }
 0x212   :  { %5421 = vmatpush1.bf16.msra.mxu1 %v6516_v22  ;;  %v673_v39 = vld [vmem:[%s9199_s1 + $0x1430] sm:$0xff] }
 0x213   :  { %5422 = vmatprep.subr.bf16.mxu1 %v6509_v25  ;;  %v6477_v9 = vcombine.high %v669_v2, %v673_v39  ;;  %v661_v10 = vld [vmem:[%s9199_s1 + $0x13d0] sm:$0xff]  ;;  %v6476_v12 = vcombine.low %v669_v2, %v673_v39 }
 0x214   :  { %5382 = vmatpush1.bf16.msra.mxu0 %v6380_v35  ;;  %v665_v1 = vld [vmem:[%s9199_s1 + $0x13f0] sm:$0xff] }
 0x215   :  { %5383 = vmatprep.subr.bf16.mxu0 %v6373_v38  ;;  %v789_v11 = vld [vmem:[%s9199_s1 + $0x17d0] sm:$0xff]  ;;  %v6469_v15 = vcombine.high %v661_v10, %v665_v1  ;;  %v6468_v25 = vcombine.low %v661_v10, %v665_v1 }
 0x216   :  { %5423 = vmatpush1.bf16.msra.mxu1 %v6508_v37  ;;  %v793_v41 = vld [vmem:[%s9199_s1 + $0x17f0] sm:$0xff] }
 0x217   :  { %5424 = vmatprep.subr.bf16.mxu1 %v6501_v19  ;;  %v6597_v18 = vcombine.high %v789_v11, %v793_v41  ;;  %v653_v53 = vld [vmem:[%s9199_s1 + $0x1390] sm:$0xff]  ;;  %v6596_v27 = vcombine.low %v789_v11, %v793_v41 }
 0x218   :  { %5384 = vmatpush1.bf16.msra.mxu0 %v6372_v21  ;;  %v657_v22 = vld [vmem:[%s9199_s1 + $0x13b0] sm:$0xff] }
 0x219   :  { %5385 = vmatprep.subr.bf16.mxu0 %v6365_v48  ;;  %v781_v23 = vld [vmem:[%s9199_s1 + $0x1790] sm:$0xff]  ;;  %v6461_v31 = vcombine.high %v653_v53, %v657_v22  ;;  %v6460_v19 = vcombine.low %v653_v53, %v657_v22 }
 0x21a   :  { %5425 = vmatpush1.bf16.msra.mxu1 %v6500_v47  ;;  %v785_v24 = vld [vmem:[%s9199_s1 + $0x17b0] sm:$0xff] }
 0x21b   :  { %5426 = vmatprep.subr.bf16.mxu1 %v6493_v50  ;;  %v6589_v33 = vcombine.high %v781_v23, %v785_v24  ;;  %v645_v34 = vld [vmem:[%s9199_s1 + $0x1350] sm:$0xff]  ;;  %v6588_v42 = vcombine.low %v781_v23, %v785_v24 }
 0x21c   :  { %5386 = vmatpush1.bf16.msra.mxu0 %v6364_v60  ;;  %v649_v35 = vld [vmem:[%s9199_s1 + $0x1370] sm:$0xff] }
 0x21d   :  { %5387 = vmatprep.subr.bf16.mxu0 %v6357_v56  ;;  %v773_v37 = vld [vmem:[%s9199_s1 + $0x1750] sm:$0xff]  ;;  %v6453_v43 = vcombine.high %v645_v34, %v649_v35  ;;  %v6452_v50 = vcombine.low %v645_v34, %v649_v35 }
 0x21e   :  { %5427 = vmatpush1.bf16.msra.mxu1 %v6492_v61  ;;  %v777_v38 = vld [vmem:[%s9199_s1 + $0x1770] sm:$0xff] }
 0x21f   :  { %5428 = vmatprep.subr.bf16.mxu1 %v6485_v0  ;;  %v6581_v44 = vcombine.high %v773_v37, %v777_v38  ;;  %v637_v45 = vld [vmem:[%s9199_s1 + $0x1310] sm:$0xff]  ;;  %v6580_v51 = vcombine.low %v773_v37, %v777_v38  ;;  %v86_v38 = vld [vmem:[%s9199_s1 + $0x1d8] sm:$0xff] }
 0x220   :  { %5388 = vmatpush1.bf16.msra.mxu0 %v6356_v3  ;;  %v641_v21 = vld [vmem:[%s9199_s1 + $0x1330] sm:$0xff] }
 0x221   :  { %5389 = vmatprep.subr.bf16.mxu0 %v6349_v8  ;;  %v765_v47 = vld [vmem:[%s9199_s1 + $0x1710] sm:$0xff]  ;;  %v6445_v52 = vcombine.high %v637_v45, %v641_v21  ;;  %v6444_v0 = vcombine.low %v637_v45, %v641_v21  ;;  %v8556_v21 = vsub.s32 4, %v7510_v17 }
 0x222   :  { %5429 = vmatpush1.bf16.msra.mxu1 %v6484_v5  ;;  %v769_v48 = vld [vmem:[%s9199_s1 + $0x1730] sm:$0xff] }
 0x223   :  { %5430 = vmatprep.subr.bf16.mxu1 %v6477_v9  ;;  %v6573_v55 = vcombine.high %v765_v47, %v769_v48  ;;  %v629_v57 = vld [vmem:[%s9199_s1 + $0x12d0] sm:$0xff]  ;;  %v6572_v62 = vcombine.low %v765_v47, %v769_v48 }
 0x224   :  { %5390 = vmatpush1.bf16.msra.mxu0 %v6348_v13  ;;  %v633_v60 = vld [vmem:[%s9199_s1 + $0x12f0] sm:$0xff] }
 0x225   :  { %5391 = vmatprep.subr.bf16.mxu0 %v6469_v15  ;;  %v757_v61 = vld [vmem:[%s9199_s1 + $0x16d0] sm:$0xff]  ;;  %v6437_v63 = vcombine.high %v629_v57, %v633_v60  ;;  %v6436_v9 = vcombine.low %v629_v57, %v633_v60  ;;  %v8571_v60 = vsub.s32 6, %v7510_v17 }
 0x226   :  { %5431 = vmatpush1.bf16.msra.mxu1 %v6476_v12  ;;  %v761_v56 = vld [vmem:[%s9199_s1 + $0x16f0] sm:$0xff] }
 0x227   :  { %5432 = vmatprep.subr.bf16.mxu1 %v6597_v18  ;;  %v6565_v2 = vcombine.high %v757_v61, %v761_v56  ;;  %v621_v39 = vld [vmem:[%s9199_s1 + $0x1290] sm:$0xff]  ;;  %v6564_v10 = vcombine.low %v757_v61, %v761_v56  ;;  %v5727_v61 = vrot.slane %v7943_v54, %v8556_v21 }
 0x228   :  { %5392 = vmatpush2.bf16.msra.mxu0 %v6468_v25  ;;  %v625_v3 = vld [vmem:[%s9199_s1 + $0x12b0] sm:$0xff] }
 0x229   :  { %5393 = vmatprep.subr.bf16.mxu0 %v6461_v31  ;;  %v749_v5 = vld [vmem:[%s9199_s1 + $0x1690] sm:$0xff]  ;;  %v6429_v1 = vcombine.high %v621_v39, %v625_v3  ;;  %v6428_v18 = vcombine.low %v621_v39, %v625_v3  ;;  %v198_v3 = vld [vmem:[%s9199_s1 + $0x558] sm:$0xff] }
 0x22a   :  { %5433 = vmatpush2.bf16.msra.mxu1 %v6596_v27  ;;  %v753_v8 = vld [vmem:[%s9199_s1 + $0x16b0] sm:$0xff] }
 0x22b   :  { %5434 = vmatprep.subr.bf16.mxu1 %v6589_v33  ;;  %v6557_v11 = vcombine.high %v749_v5, %v753_v8  ;;  %v613_v41 = vld [vmem:[%s9199_s1 + $0x1250] sm:$0xff]  ;;  %v6556_v53 = vcombine.low %v749_v5, %v753_v8  ;;  %v202_v5 = vld [vmem:[%s9199_s1 + $0x578] sm:$0xff] }
 0x22c   :  { %5394 = vmatpush2.bf16.msra.mxu0 %v6460_v19  ;;  %v617_v13 = vld [vmem:[%s9199_s1 + $0x1270] sm:$0xff]  ;;  %v90_v19 = vld [vmem:[%s9199_s1 + $0x1f8] sm:$0xff] }
 0x22d   :  { %5395 = vmatprep.subr.bf16.mxu0 %v6453_v43  ;;  %v741_v12 = vld [vmem:[%s9199_s1 + $0x1650] sm:$0xff]  ;;  %v6421_v22 = vcombine.high %v613_v41, %v617_v13  ;;  %v6420_v33 = vcombine.low %v613_v41, %v617_v13  ;;  %v218_v43 = vld [vmem:[%s9199_s1 + $0x5f8] sm:$0xff]  ;;  %v5895_v47 = vcombine.high %v86_v38, %v90_v19  ;;  %v5894_v57 = vcombine.low %v86_v38, %v90_v19 }
 0x22e   :  { %5435 = vmatpush2.bf16.msra.mxu1 %v6588_v42  ;;  %v745_v15 = vld [vmem:[%s9199_s1 + $0x1670] sm:$0xff]  ;;  %v214_v42 = vld [vmem:[%s9199_s1 + $0x5d8] sm:$0xff] }
 0x22f   :  { %5436 = vmatprep.subr.bf16.mxu1 %v6581_v44  ;;  %v6549_v23 = vcombine.high %v741_v12, %v745_v15  ;;  %v605_v24 = vld [vmem:[%s9199_s1 + $0x1210] sm:$0xff]  ;;  %v6548_v34 = vcombine.low %v741_v12, %v745_v15  ;;  %v6023_v48 = vcombine.high %v214_v42, %v218_v43  ;;  %v6022_v56 = vcombine.low %v214_v42, %v218_v43 }
 0x230   :  { %5396 = vmatpush2.bf16.msra.mxu0 %v6452_v50  ;;  %v609_v25 = vld [vmem:[%s9199_s1 + $0x1230] sm:$0xff]  ;;  %v78_v50 = vld [vmem:[%s9199_s1 + $0x198] sm:$0xff] }
 0x231   :  { %5397 = vmatprep.subr.bf16.mxu0 %v6445_v52  ;;  %v733_v27 = vld [vmem:[%s9199_s1 + $0x1610] sm:$0xff]  ;;  %v6413_v35 = vcombine.high %v605_v24, %v609_v25  ;;  %v6412_v44 = vcombine.low %v605_v24, %v609_v25  ;;  %v206_v52 = vld [vmem:[%s9199_s1 + $0x598] sm:$0xff] }
 0x232   :  { %5437 = vmatpush2.bf16.msra.mxu1 %v6580_v51  ;;  %v737_v31 = vld [vmem:[%s9199_s1 + $0x1630] sm:$0xff]  ;;  %v82_v51 = vld [vmem:[%s9199_s1 + $0x1b8] sm:$0xff] }
 0x233   :  { %5438 = vmatprep.subr.bf16.mxu1 %v6573_v55  ;;  %v6541_v37 = vcombine.high %v733_v27, %v737_v31  ;;  %v6540_v45 = vcombine.low %v733_v27, %v737_v31  ;;  %v210_v55 = vld [vmem:[%s9199_s1 + $0x5b8] sm:$0xff] }
 0x234   :  { %5398 = vmatpush2.bf16.msra.mxu0 %v6444_v0  ;;  %v5887_v0 = vcombine.high %v78_v50, %v82_v51  ;;  %v6014_v13 = vcombine.low %v206_v52, %v210_v55  ;;  %v190_v24 = vld [vmem:[%s9199_s1 + $0x518] sm:$0xff] }
 0x235   :  { %5399 = vmatprep.subr.bf16.mxu0 %v6437_v63  ;;  %v70_v63 = vld [vmem:[%s9199_s1 + $0x158] sm:$0xff] }
 0x236   :  { %5439 = vmatpush2.bf16.msra.mxu1 %v6572_v62  ;;  %v6015_v62 = vcombine.high %v206_v52, %v210_v55 }
 0x237   :  { %5440 = vmatprep.subr.bf16.mxu1 %v6565_v2  ;;  %v74_v2 = vld [vmem:[%s9199_s1 + $0x178] sm:$0xff] }
 0x238   :  { %5400 = vmatpush2.bf16.msra.mxu0 %v6436_v9  ;;  %v5879_v12 = vcombine.high %v70_v63, %v74_v2 }
 0x239   :  { %5401 = vmatprep.subr.bf16.mxu0 %v6429_v1  ;;  %v5886_v1 = vcombine.low %v78_v50, %v82_v51 }
 0x23a   :  { %5441 = vmatpush2.bf16.msra.mxu1 %v6564_v10  ;;  %v5731_v10 = vrot.slane %v7943_v54, %v8571_v60  ;;  %v66_v54 = vld [vmem:[%s9199_s1 + $0x138] sm:$0xff] }
 0x23b   :  { %5442 = vmatprep.subr.bf16.mxu1 %v6557_v11  ;;  %v5767_v11 = vrot.slane %v5727_v61, %v7525_v28 }
 0x23c   :  { %5402 = vmatpush2.bf16.msra.mxu0 %v6428_v18  ;;  %v5771_v31 = vrot.slane %v5731_v10, %v7525_v28  ;;  %v170_v10 = vld [vmem:[%s9199_s1 + $0x478] sm:$0xff] }
 0x23d   :  { %5403 = vmatprep.subr.bf16.mxu0 %v6421_v22  ;;  %v62_v22 = vld [vmem:[%s9199_s1 + $0x118] sm:$0xff] }
 0x23e   :  { %5443 = vmatpush2.bf16.msra.mxu1 %v6556_v53  ;;  %v5870_v51 = vcombine.low %v62_v22, %v66_v54 }
 0x23f   :  { %5444 = vmatprep.subr.bf16.mxu1 %v6549_v23 }
 0x240   :  { %5404 = vmatpush2.bf16.msra.mxu0 %v6420_v33 }
 0x241   :  { %5405 = vmatprep.subr.bf16.mxu0 %v6413_v35  ;;  %v6006_v35 = vcombine.low %v198_v3, %v202_v5 }
 0x242   :  { %5445 = vmatpush2.bf16.msra.mxu1 %v6548_v34  ;;  %v5878_v34 = vcombine.low %v70_v63, %v74_v2 }
 0x243   :  { %5446 = vmatprep.subr.bf16.mxu1 %v6541_v37  ;;  %v5871_v37 = vcombine.high %v62_v22, %v66_v54 }
 0x244   :  { %5406 = vmatpush2.bf16.msra.mxu0 %v6412_v44  ;;  %v58_v44 = vld [vmem:[%s9199_s1 + $0xf8] sm:$0xff] }
 0x245   :  { %5457 = vmatprep.subr.bf16.mxu0 %v5895_v47  ;;  %v186_v47 = vld [vmem:[%s9199_s1 + $0x4f8] sm:$0xff] }
 0x246   :  { %5447 = vmatpush2.bf16.msra.mxu1 %v6540_v45  ;;  %v182_v45 = vld [vmem:[%s9199_s1 + $0x4d8] sm:$0xff] }
 0x247   :  { %5498 = vmatprep.subr.bf16.mxu1 %v6023_v48  ;;  %v5163_v39 = vpop.f32.mrf.mxu0  ;;  %5408 = vmatmul.mubr.bf16.vlgmr.msra.gmra.mxu0 %v7326_v4  ;;  %v5991_v61 = vcombine.high %v182_v45, %v186_v47  ;;  %v5990_v2 = vcombine.low %v182_v45, %v186_v47  ;;  %v134_v45 = vld [vmem:[%s9199_s1 + $0x358] sm:$0xff] }
 0x248   :  { %v5164_v8 = vadd.f32 %v5163_v39, %v8380_v6  ;;  %5458 = vmatpush1.bf16.msra.mxu0 %v5894_v57  ;;  %v6007_v6 = vcombine.high %v198_v3, %v202_v5  ;;  %5489 = vmatprep.mubr.bf16.mxu0 %v6752_v58  ;;  %v38_v5 = vld [vmem:[%s9199_s1 + $0x58] sm:$0xff] }
 0x249   :  { %v5204_v9 = vpop.f32.mrf.mxu1  ;;  %5449 = vmatmul.mubr.bf16.vlgmr.msra.gmra.mxu1 %v7336_v7  ;;  %v5165_v41 = vpop.f32.mrf.mxu0  ;;  %5459 = vmatprep.subr.bf16.mxu0 %v5887_v0  ;;  %v50_v0 = vld [vmem:[%s9199_s1 + $0xb8] sm:$0xff] }
 0x24a   :  { %5499 = vmatpush1.bf16.msra.mxu1 %v6022_v56  ;;  %v5205_v15 = vadd.f32 %v5204_v9, %v5164_v8  ;;  %v5166_v18 = vadd.f32 %v5165_v41, %v8397_v14  ;;  %v194_v14 = vld [vmem:[%s9199_s1 + $0x538] sm:$0xff]  ;;  %5530 = vmatprep.mubr.bf16.mxu1 %v6756_v59 }
 0x24b   :  { %v5206_v53 = vpop.f32.mrf.mxu1  ;;  %5500 = vmatprep.subr.bf16.mxu1 %v6015_v62  ;;  %v5167_v23 = vpop.f32.mrf.mxu0  ;;  %v5999_v43 = vcombine.high %v190_v24, %v194_v14  ;;  %v54_v59 = vld [vmem:[%s9199_s1 + $0xd8] sm:$0xff]  ;;  %v5998_v52 = vcombine.low %v190_v24, %v194_v14 }
 0x24c   :  { %v5705_v25 = vmax.f32 %v5205_v15, 0.0  ;;  %v5207_v27 = vadd.f32 %v5206_v53, %v5166_v18  ;;  %5460 = vmatpush1.bf16.msra.mxu0 %v5886_v1  ;;  %v5863_v55 = vcombine.high %v54_v59, %v58_v44  ;;  %v46_v56 = vld [vmem:[%s9199_s1 + $0x98] sm:$0xff]  ;;  %v5862_v63 = vcombine.low %v54_v59, %v58_v44 }
 0x24d   :  { %v5208_v33 = vpop.f32.mrf.mxu1  ;;  %v5168_v58 = vpop.f32.mrf.mxu0  ;;  %5461 = vmatprep.subr.bf16.mxu0 %v5879_v12  ;;  %v178_v62 = vld [vmem:[%s9199_s1 + $0x4b8] sm:$0xff]  ;;  %v5855_v39 = vcombine.high %v46_v56, %v50_v0  ;;  %v5854_v1 = vcombine.low %v46_v56, %v50_v0 }
 0x24e   :  { %5501 = vmatpush1.bf16.msra.mxu1 %v6014_v13  ;;  %v5790_v38 = vmul.f32 %v5767_v11, %v5705_v25  ;;  %v5706_v19 = vmax.f32 %v5207_v27, 0.0  ;;  %v42_v8 = vld [vmem:[%s9199_s1 + $0x78] sm:$0xff] }
 0x24f   :  { %v5209_v42 = vpop.f32.mrf.mxu1  ;;  %5502 = vmatprep.subr.bf16.mxu1 %v6007_v6  ;;  %v166_v9 = vld [vmem:[%s9199_s1 + $0x458] sm:$0xff]  ;;  %v5847_v41 = vcombine.high %v38_v5, %v42_v8  ;;  %v5846_v6 = vcombine.low %v38_v5, %v42_v8 }
 0x250   :  { %v5797_v48 = vadd.f32 %v8002_v30, %v5790_v38  ;;  %v5791_v50 = vmul.f32 %v5771_v31, %v5706_v19  ;;  %5462 = vmatpush1.bf16.msra.mxu0 %v5878_v34  ;;  %v174_v30 = vld [vmem:[%s9199_s1 + $0x498] sm:$0xff]  ;;  %v5975_v13 = vcombine.high %v166_v9, %v170_v10  ;;  %v5974_v22 = vcombine.low %v166_v9, %v170_v10 }
 0x251   :  { %5463 = vmatprep.subr.bf16.mxu0 %v5871_v37  ;;  %v5983_v3 = vcombine.high %v174_v30, %v178_v62  ;;  %v5982_v11 = vcombine.low %v174_v30, %v178_v62  ;;  %v30_v12 = vld [vmem:[%s9199_s1 + $0x18] sm:$0xff] }
 0x252   :  { %5503 = vmatpush1.bf16.msra.mxu1 %v6006_v35  ;;  %v8622_v57 = vadd.f32 %v5797_v48, %v5791_v50  ;;  %v34_v15 = vld [vmem:[%s9199_s1 + $0x38] sm:$0xff] }
 0x253   :  { %5504 = vmatprep.subr.bf16.mxu1 %v5999_v43  ;;  %v158_v18 = vld [vmem:[%s9199_s1 + $0x418] sm:$0xff]  ;;  %v5839_v54 = vcombine.high %v30_v12, %v34_v15  ;;  %v5838_v31 = vcombine.low %v30_v12, %v34_v15 }
 0x254   :  { %5464 = vmatpush1.bf16.msra.mxu0 %v5870_v51  ;;  %v162_v53 = vld [vmem:[%s9199_s1 + $0x438] sm:$0xff] }
 0x255   :  { %5465 = vmatprep.subr.bf16.mxu0 %v5863_v55  ;;  %v5967_v23 = vcombine.high %v158_v18, %v162_v53  ;;  %v150_v24 = vld [vmem:[%s9199_s1 + $0x3d8] sm:$0xff]  ;;  %v5966_v33 = vcombine.low %v158_v18, %v162_v53 }
 0x256   :  { %5505 = vmatpush1.bf16.msra.mxu1 %v5998_v52  ;;  %v154_v14 = vld [vmem:[%s9199_s1 + $0x3f8] sm:$0xff] }
 0x257   :  { %5506 = vmatprep.subr.bf16.mxu1 %v5991_v61  ;;  %v278_v25 = vld [vmem:[%s9199_s1 + $0x7d8] sm:$0xff]  ;;  %v5959_v34 = vcombine.high %v150_v24, %v154_v14  ;;  %v5958_v42 = vcombine.low %v150_v24, %v154_v14 }
 0x258   :  { %5466 = vmatpush1.bf16.msra.mxu0 %v5862_v63  ;;  %v282_v27 = vld [vmem:[%s9199_s1 + $0x7f8] sm:$0xff] }
 0x259   :  { %5467 = vmatprep.subr.bf16.mxu0 %v5855_v39  ;;  %v6087_v58 = vcombine.high %v278_v25, %v282_v27  ;;  %v142_v35 = vld [vmem:[%s9199_s1 + $0x398] sm:$0xff]  ;;  %v6086_v43 = vcombine.low %v278_v25, %v282_v27 }
 0x25a   :  { %5507 = vmatpush1.bf16.msra.mxu1 %v5990_v2  ;;  %v146_v37 = vld [vmem:[%s9199_s1 + $0x3b8] sm:$0xff] }
 0x25b   :  { %5508 = vmatprep.subr.bf16.mxu1 %v5983_v3  ;;  %v270_v38 = vld [vmem:[%s9199_s1 + $0x798] sm:$0xff]  ;;  %v5951_v59 = vcombine.high %v142_v35, %v146_v37  ;;  %v5950_v51 = vcombine.low %v142_v35, %v146_v37 }
 0x25c   :  { %5468 = vmatpush1.bf16.msra.mxu0 %v5854_v1  ;;  %v274_v19 = vld [vmem:[%s9199_s1 + $0x7b8] sm:$0xff] }
 0x25d   :  { %5469 = vmatprep.subr.bf16.mxu0 %v5847_v41  ;;  %v6079_v44 = vcombine.high %v270_v38, %v274_v19  ;;  %v138_v47 = vld [vmem:[%s9199_s1 + $0x378] sm:$0xff]  ;;  %v6078_v52 = vcombine.low %v270_v38, %v274_v19 }
 0x25e   :  { %5509 = vmatpush1.bf16.msra.mxu1 %v5982_v11  ;;  %v262_v48 = vld [vmem:[%s9199_s1 + $0x758] sm:$0xff]  ;;  %v5943_v55 = vcombine.high %v134_v45, %v138_v47  ;;  %v5942_v63 = vcombine.low %v134_v45, %v138_v47 }
 0x25f   :  { %5510 = vmatprep.subr.bf16.mxu1 %v5975_v13  ;;  %v266_v50 = vld [vmem:[%s9199_s1 + $0x778] sm:$0xff] }
 0x260   :  { %5470 = vmatpush1.bf16.msra.mxu0 %v5846_v6  ;;  %v6071_v61 = vcombine.high %v262_v48, %v266_v50  ;;  %v126_v56 = vld [vmem:[%s9199_s1 + $0x318] sm:$0xff]  ;;  %v6070_v2 = vcombine.low %v262_v48, %v266_v50 }
 0x261   :  { %5471 = vmatprep.subr.bf16.mxu0 %v5839_v54  ;;  %v130_v0 = vld [vmem:[%s9199_s1 + $0x338] sm:$0xff] }
 0x262   :  { %5511 = vmatpush1.bf16.msra.mxu1 %v5974_v22  ;;  %v254_v30 = vld [vmem:[%s9199_s1 + $0x718] sm:$0xff]  ;;  %v5935_v39 = vcombine.high %v126_v56, %v130_v0  ;;  %v5934_v1 = vcombine.low %v126_v56, %v130_v0  ;;  %v819_v56 = vsub.s32 5, %v7510_v17 }
 0x263   :  { %5512 = vmatprep.subr.bf16.mxu1 %v5967_v23  ;;  %v258_v62 = vld [vmem:[%s9199_s1 + $0x738] sm:$0xff] }
 0x264   :  { %5472 = vmatpush1.bf16.msra.mxu0 %v5838_v31  ;;  %v6063_v3 = vcombine.high %v254_v30, %v258_v62  ;;  %v118_v5 = vld [vmem:[%s9199_s1 + $0x2d8] sm:$0xff]  ;;  %v6062_v11 = vcombine.low %v254_v30, %v258_v62 }
 0x265   :  { %5473 = vmatprep.subr.bf16.mxu0 %v5959_v34  ;;  %v122_v8 = vld [vmem:[%s9199_s1 + $0x2f8] sm:$0xff] }
 0x266   :  { %5513 = vmatpush1.bf16.msra.mxu1 %v5966_v33  ;;  %v246_v9 = vld [vmem:[%s9199_s1 + $0x6d8] sm:$0xff]  ;;  %v5927_v41 = vcombine.high %v118_v5, %v122_v8  ;;  %v5926_v6 = vcombine.low %v118_v5, %v122_v8 }
 0x267   :  { %5514 = vmatprep.subr.bf16.mxu1 %v6087_v58  ;;  %v250_v10 = vld [vmem:[%s9199_s1 + $0x6f8] sm:$0xff] }
 0x268   :  { %5474 = vmatpush2.bf16.msra.mxu0 %v5958_v42  ;;  %v6055_v13 = vcombine.high %v246_v9, %v250_v10  ;;  %v110_v12 = vld [vmem:[%s9199_s1 + $0x298] sm:$0xff]  ;;  %v6054_v22 = vcombine.low %v246_v9, %v250_v10 }
 0x269   :  { %5475 = vmatprep.subr.bf16.mxu0 %v5951_v59  ;;  %v114_v15 = vld [vmem:[%s9199_s1 + $0x2b8] sm:$0xff] }
 0x26a   :  { %5515 = vmatpush2.bf16.msra.mxu1 %v6086_v43  ;;  %v238_v18 = vld [vmem:[%s9199_s1 + $0x698] sm:$0xff]  ;;  %v5919_v54 = vcombine.high %v110_v12, %v114_v15  ;;  %v5918_v31 = vcombine.low %v110_v12, %v114_v15 }
 0x26b   :  { %5516 = vmatprep.subr.bf16.mxu1 %v6079_v44  ;;  %v242_v53 = vld [vmem:[%s9199_s1 + $0x6b8] sm:$0xff] }
 0x26c   :  { %5476 = vmatpush2.bf16.msra.mxu0 %v5950_v51  ;;  %v6047_v23 = vcombine.high %v238_v18, %v242_v53  ;;  %v102_v24 = vld [vmem:[%s9199_s1 + $0x258] sm:$0xff]  ;;  %v6046_v33 = vcombine.low %v238_v18, %v242_v53 }
 0x26d   :  { %5477 = vmatprep.subr.bf16.mxu0 %v5943_v55  ;;  %v106_v14 = vld [vmem:[%s9199_s1 + $0x278] sm:$0xff] }
 0x26e   :  { %5517 = vmatpush2.bf16.msra.mxu1 %v6078_v52  ;;  %v230_v25 = vld [vmem:[%s9199_s1 + $0x658] sm:$0xff]  ;;  %v5911_v34 = vcombine.high %v102_v24, %v106_v14  ;;  %v5910_v42 = vcombine.low %v102_v24, %v106_v14 }
 0x26f   :  { %5518 = vmatprep.subr.bf16.mxu1 %v6071_v61  ;;  %v234_v27 = vld [vmem:[%s9199_s1 + $0x678] sm:$0xff] }
 0x270   :  { %5478 = vmatpush2.bf16.msra.mxu0 %v5942_v63  ;;  %v6039_v58 = vcombine.high %v230_v25, %v234_v27  ;;  %v94_v35 = vld [vmem:[%s9199_s1 + $0x218] sm:$0xff]  ;;  %v6038_v43 = vcombine.low %v230_v25, %v234_v27 }
 0x271   :  { %5479 = vmatprep.subr.bf16.mxu0 %v5935_v39  ;;  %v98_v37 = vld [vmem:[%s9199_s1 + $0x238] sm:$0xff] }
 0x272   :  { %5519 = vmatpush2.bf16.msra.mxu1 %v6070_v2  ;;  %v222_v38 = vld [vmem:[%s9199_s1 + $0x618] sm:$0xff]  ;;  %v5903_v59 = vcombine.high %v94_v35, %v98_v37  ;;  %v5902_v51 = vcombine.low %v94_v35, %v98_v37  ;;  %v8784_v2 = vld [vmem:[%s9201_s2] sm:$0xff] }
 0x273   :  { %5520 = vmatprep.subr.bf16.mxu1 %v6063_v3  ;;  %v226_v19 = vld [vmem:[%s9199_s1 + $0x638] sm:$0xff]  ;;  %v816_v39 = vrot.slane %v8784_v2, %v8556_v21  ;;  %v820_v9 = vrot.slane %v8784_v2, %v819_v56 }
 0x274   :  { %5480 = vmatpush2.bf16.msra.mxu0 %v5934_v1  ;;  %v6031_v44 = vcombine.high %v222_v38, %v226_v19  ;;  %v342_v45 = vld [vmem:[%s9199_s1 + $0x9d8] sm:$0xff]  ;;  %v6030_v52 = vcombine.low %v222_v38, %v226_v19 }
 0x275   :  { %5481 = vmatprep.subr.bf16.mxu0 %v5927_v41  ;;  %v346_v47 = vld [vmem:[%s9199_s1 + $0x9f8] sm:$0xff] }
 0x276   :  { %5521 = vmatpush2.bf16.msra.mxu1 %v6062_v11  ;;  %v470_v48 = vld [vmem:[%s9199_s1 + $0xdd8] sm:$0xff]  ;;  %v6151_v55 = vcombine.high %v342_v45, %v346_v47  ;;  %v6150_v3 = vcombine.low %v342_v45, %v346_v47 }
 0x277   :  { %5522 = vmatprep.subr.bf16.mxu1 %v6055_v13  ;;  %v474_v50 = vld [vmem:[%s9199_s1 + $0xdf8] sm:$0xff] }
 0x278   :  { %5482 = vmatpush2.bf16.msra.mxu0 %v5926_v6  ;;  %v6279_v61 = vcombine.high %v470_v48, %v474_v50  ;;  %v334_v0 = vld [vmem:[%s9199_s1 + $0x998] sm:$0xff]  ;;  %v6278_v5 = vcombine.low %v470_v48, %v474_v50 }
 0x279   :  { %5483 = vmatprep.subr.bf16.mxu0 %v5919_v54  ;;  %v338_v30 = vld [vmem:[%s9199_s1 + $0x9b8] sm:$0xff] }
 0x27a   :  { %5523 = vmatpush2.bf16.msra.mxu1 %v6054_v22  ;;  %v462_v62 = vld [vmem:[%s9199_s1 + $0xd98] sm:$0xff]  ;;  %v6143_v8 = vcombine.high %v334_v0, %v338_v30  ;;  %v6142_v53 = vcombine.low %v334_v0, %v338_v30 }
 0x27b   :  { %5524 = vmatprep.subr.bf16.mxu1 %v6047_v23  ;;  %v466_v63 = vld [vmem:[%s9199_s1 + $0xdb8] sm:$0xff] }
 0x27c   :  { %5484 = vmatpush2.bf16.msra.mxu0 %v5918_v31  ;;  %v6271_v10 = vcombine.high %v462_v62, %v466_v63  ;;  %v326_v1 = vld [vmem:[%s9199_s1 + $0x958] sm:$0xff]  ;;  %v6270_v22 = vcombine.low %v462_v62, %v466_v63 }
 0x27d   :  { %5485 = vmatprep.subr.bf16.mxu0 %v5911_v34  ;;  %v330_v11 = vld [vmem:[%s9199_s1 + $0x978] sm:$0xff] }
 0x27e   :  { %5525 = vmatpush2.bf16.msra.mxu1 %v6046_v33  ;;  %v454_v13 = vld [vmem:[%s9199_s1 + $0xd58] sm:$0xff]  ;;  %v6135_v54 = vcombine.high %v326_v1, %v330_v11  ;;  %v6134_v35 = vcombine.low %v326_v1, %v330_v11 }
 0x27f   :  { %5526 = vmatprep.subr.bf16.mxu1 %v6039_v58  ;;  %v458_v12 = vld [vmem:[%s9199_s1 + $0xd78] sm:$0xff] }
 0x280   :  { %5486 = vmatpush2.bf16.msra.mxu0 %v5910_v42  ;;  %v6263_v14 = vcombine.high %v454_v13, %v458_v12  ;;  %v318_v25 = vld [vmem:[%s9199_s1 + $0x918] sm:$0xff] }
 0x281   :  { %5487 = vmatprep.subr.bf16.mxu0 %v5903_v59  ;;  %v446_v31 = vld [vmem:[%s9199_s1 + $0xd18] sm:$0xff] }
 0x282   :  { %5527 = vmatpush2.bf16.msra.mxu1 %v6038_v43  ;;  %v450_v33 = vld [vmem:[%s9199_s1 + $0xd38] sm:$0xff] }
 0x283   :  { %5528 = vmatprep.subr.bf16.mxu1 %v6031_v44  ;;  %v6255_v42 = vcombine.high %v446_v31, %v450_v33  ;;  %v310_v43 = vld [vmem:[%s9199_s1 + $0x8d8] sm:$0xff]  ;;  %v6254_v47 = vcombine.low %v446_v31, %v450_v33 }
 0x284   :  { %5488 = vmatpush2.bf16.msra.mxu0 %v5902_v51  ;;  %v438_v59 = vld [vmem:[%s9199_s1 + $0xcd8] sm:$0xff] }
 0x285   :  { %5539 = vmatprep.subr.bf16.mxu0 %v6151_v55  ;;  %v442_v44 = vld [vmem:[%s9199_s1 + $0xcf8] sm:$0xff] }
 0x286   :  { %5529 = vmatpush2.bf16.msra.mxu1 %v6030_v52  ;;  %v6247_v50 = vcombine.high %v438_v59, %v442_v44  ;;  %v302_v51 = vld [vmem:[%s9199_s1 + $0x898] sm:$0xff]  ;;  %v6246_v0 = vcombine.low %v438_v59, %v442_v44 }
 0x287   :  { %5580 = vmatprep.subr.bf16.mxu1 %v6279_v61  ;;  %v5245_v41 = vpop.f32.mrf.mxu0  ;;  %5490 = vmatmul.mubr.bf16.vlgmr.msra.gmra.mxu0 %v6882_v16  ;;  %v306_v52 = vld [vmem:[%s9199_s1 + $0x8b8] sm:$0xff] }
 0x288   :  { %v5246_v15 = vadd.f32 %v5245_v41, %v816_v39  ;;  %5540 = vmatpush1.bf16.msra.mxu0 %v6150_v3  ;;  %5571 = vmatprep.mubr.bf16.mxu0 %v6912_v26  ;;  %v6262_v26 = vcombine.low %v454_v13, %v458_v12  ;;  %v430_v55 = vld [vmem:[%s9199_s1 + $0xc98] sm:$0xff]  ;;  %v6111_v30 = vcombine.high %v302_v51, %v306_v52 }
 0x289   :  { %v5286_v18 = vpop.f32.mrf.mxu1  ;;  %5531 = vmatmul.mubr.bf16.vlgmr.msra.gmra.mxu1 %v6897_v20  ;;  %v5247_v6 = vpop.f32.mrf.mxu0  ;;  %5541 = vmatprep.subr.bf16.mxu0 %v6143_v8  ;;  %v322_v20 = vld [vmem:[%s9199_s1 + $0x938] sm:$0xff]  ;;  %v6110_v8 = vcombine.low %v302_v51, %v306_v52 }
 0x28a   :  { %5581 = vmatpush1.bf16.msra.mxu1 %v6278_v5  ;;  %v8803_v16 = vadd.f32 %v5286_v18, %v5246_v15  ;;  %v5248_v23 = vadd.f32 %v5247_v6, %v820_v9  ;;  %5612 = vmatprep.mubr.bf16.mxu1 %v6923_v29  ;;  %v6127_v38 = vcombine.high %v318_v25, %v322_v20  ;;  %v314_v29 = vld [vmem:[%s9199_s1 + $0x8f8] sm:$0xff] }
 0x28b   :  { %v5288_v24 = vpop.f32.mrf.mxu1  ;;  %5582 = vmatprep.subr.bf16.mxu1 %v6271_v10  ;;  %v5249_v27 = vpop.f32.mrf.mxu0  ;;  %v6126_v45 = vcombine.low %v318_v25, %v322_v20  ;;  %v6119_v48 = vcombine.high %v310_v43, %v314_v29  ;;  %v434_v61 = vld [vmem:[%s9199_s1 + $0xcb8] sm:$0xff]  ;;  %v6118_v56 = vcombine.low %v310_v43, %v314_v29 }
 0x28c   :  { %v8819_v34 = vadd.f32 %v5288_v24, %v5248_v23  ;;  %5542 = vmatpush1.bf16.msra.mxu0 %v6142_v53  ;;  %v6239_v62 = vcombine.high %v430_v55, %v434_v61  ;;  %v294_v63 = vld [vmem:[%s9199_s1 + $0x858] sm:$0xff]  ;;  %v6238_v9 = vcombine.low %v430_v55, %v434_v61 }
 0x28d   :  { %v5290_v58 = vpop.f32.mrf.mxu1  ;;  %v5250_v37 = vpop.f32.mrf.mxu0  ;;  %5543 = vmatprep.subr.bf16.mxu0 %v6135_v54  ;;  %v298_v39 = vld [vmem:[%s9199_s1 + $0x878] sm:$0xff] }
 0x28e   :  { %5583 = vmatpush1.bf16.msra.mxu1 %v6270_v22  ;;  %v422_v3 = vld [vmem:[%s9199_s1 + $0xc58] sm:$0xff]  ;;  %v6103_v10 = vcombine.high %v294_v63, %v298_v39  ;;  %v6102_v15 = vcombine.low %v294_v63, %v298_v39 }
 0x28f   :  { %v5291_v19 = vpop.f32.mrf.mxu1  ;;  %5584 = vmatprep.subr.bf16.mxu1 %v6263_v14  ;;  %v426_v5 = vld [vmem:[%s9199_s1 + $0xc78] sm:$0xff] }
 0x290   :  { %5544 = vmatpush1.bf16.msra.mxu0 %v6134_v35  ;;  %v6231_v1 = vcombine.high %v422_v3, %v426_v5  ;;  %v286_v11 = vld [vmem:[%s9199_s1 + $0x818] sm:$0xff]  ;;  %v6230_v18 = vcombine.low %v422_v3, %v426_v5 }
 0x291   :  { %5545 = vmatprep.subr.bf16.mxu0 %v6127_v38  ;;  %v290_v41 = vld [vmem:[%s9199_s1 + $0x838] sm:$0xff] }
 0x292   :  { %5585 = vmatpush1.bf16.msra.mxu1 %v6262_v26  ;;  %v414_v13 = vld [vmem:[%s9199_s1 + $0xc18] sm:$0xff]  ;;  %v6095_v53 = vcombine.high %v286_v11, %v290_v41  ;;  %v6094_v14 = vcombine.low %v286_v11, %v290_v41 }
 0x293   :  { %5586 = vmatprep.subr.bf16.mxu1 %v6255_v42  ;;  %v418_v12 = vld [vmem:[%s9199_s1 + $0xc38] sm:$0xff] }
 0x294   :  { %5546 = vmatpush1.bf16.msra.mxu0 %v6126_v45  ;;  %v6223_v6 = vcombine.high %v414_v13, %v418_v12  ;;  %v406_v22 = vld [vmem:[%s9199_s1 + $0xbd8] sm:$0xff]  ;;  %v6222_v25 = vcombine.low %v414_v13, %v418_v12 }
 0x295   :  { %5547 = vmatprep.subr.bf16.mxu0 %v6119_v48  ;;  %v410_v54 = vld [vmem:[%s9199_s1 + $0xbf8] sm:$0xff] }
 0x296   :  { %5587 = vmatpush1.bf16.msra.mxu1 %v6254_v47  ;;  %v534_v23 = vld [vmem:[%s9199_s1 + $0xfd8] sm:$0xff]  ;;  %v6215_v20 = vcombine.high %v406_v22, %v410_v54  ;;  %v6214_v37 = vcombine.low %v406_v22, %v410_v54 }
 0x297   :  { %5588 = vmatprep.subr.bf16.mxu1 %v6247_v50  ;;  %v538_v24 = vld [vmem:[%s9199_s1 + $0xff8] sm:$0xff] }
 0x298   :  { %5548 = vmatpush1.bf16.msra.mxu0 %v6118_v56  ;;  %v6343_v27 = vcombine.high %v534_v23, %v538_v24  ;;  %v398_v31 = vld [vmem:[%s9199_s1 + $0xb98] sm:$0xff]  ;;  %v6342_v26 = vcombine.low %v534_v23, %v538_v24 }
 0x299   :  { %5549 = vmatprep.subr.bf16.mxu0 %v6111_v30  ;;  %v402_v33 = vld [vmem:[%s9199_s1 + $0xbb8] sm:$0xff] }
 0x29a   :  { %5589 = vmatpush1.bf16.msra.mxu1 %v6246_v0  ;;  %v526_v58 = vld [vmem:[%s9199_s1 + $0xf98] sm:$0xff]  ;;  %v6207_v38 = vcombine.high %v398_v31, %v402_v33  ;;  %v6206_v44 = vcombine.low %v398_v31, %v402_v33 }
 0x29b   :  { %5590 = vmatprep.subr.bf16.mxu1 %v6239_v62  ;;  %v530_v35 = vld [vmem:[%s9199_s1 + $0xfb8] sm:$0xff] }
 0x29c   :  { %5550 = vmatpush1.bf16.msra.mxu0 %v6110_v8  ;;  %v6335_v19 = vcombine.high %v526_v58, %v530_v35  ;;  %v390_v42 = vld [vmem:[%s9199_s1 + $0xb58] sm:$0xff]  ;;  %v6334_v45 = vcombine.low %v526_v58, %v530_v35 }
 0x29d   :  { %5551 = vmatprep.subr.bf16.mxu0 %v6103_v10  ;;  %v394_v43 = vld [vmem:[%s9199_s1 + $0xb78] sm:$0xff] }
 0x29e   :  { %5591 = vmatpush1.bf16.msra.mxu1 %v6238_v9  ;;  %v518_v29 = vld [vmem:[%s9199_s1 + $0xf58] sm:$0xff]  ;;  %v6199_v47 = vcombine.high %v390_v42, %v394_v43  ;;  %v6198_v61 = vcombine.low %v390_v42, %v394_v43 }
 0x29f   :  { %5592 = vmatprep.subr.bf16.mxu1 %v6231_v1  ;;  %v522_v59 = vld [vmem:[%s9199_s1 + $0xf78] sm:$0xff] }
 0x2a0   :  { %5552 = vmatpush1.bf16.msra.mxu0 %v6102_v15  ;;  %v6327_v48 = vcombine.high %v518_v29, %v522_v59  ;;  %v382_v50 = vld [vmem:[%s9199_s1 + $0xb18] sm:$0xff]  ;;  %v6326_v56 = vcombine.low %v518_v29, %v522_v59 }
 0x2a1   :  { %5553 = vmatprep.subr.bf16.mxu0 %v6095_v53  ;;  %v386_v51 = vld [vmem:[%s9199_s1 + $0xb38] sm:$0xff] }
 0x2a2   :  { %5593 = vmatpush1.bf16.msra.mxu1 %v6230_v18  ;;  %v510_v52 = vld [vmem:[%s9199_s1 + $0xf18] sm:$0xff]  ;;  %v6191_v0 = vcombine.high %v382_v50, %v386_v51  ;;  %v6190_v5 = vcombine.low %v382_v50, %v386_v51 }
 0x2a3   :  { %5594 = vmatprep.subr.bf16.mxu1 %v6223_v6  ;;  %v514_v55 = vld [vmem:[%s9199_s1 + $0xf38] sm:$0xff] }
 0x2a4   :  { %5554 = vmatpush1.bf16.msra.mxu0 %v6094_v14  ;;  %v6319_v30 = vcombine.high %v510_v52, %v514_v55  ;;  %v374_v62 = vld [vmem:[%s9199_s1 + $0xad8] sm:$0xff]  ;;  %v6318_v8 = vcombine.low %v510_v52, %v514_v55 }
 0x2a5   :  { %5555 = vmatprep.subr.bf16.mxu0 %v6215_v20  ;;  %v378_v63 = vld [vmem:[%s9199_s1 + $0xaf8] sm:$0xff] }
 0x2a6   :  { %5595 = vmatpush1.bf16.msra.mxu1 %v6222_v25  ;;  %v502_v39 = vld [vmem:[%s9199_s1 + $0xed8] sm:$0xff]  ;;  %v6183_v9 = vcombine.high %v374_v62, %v378_v63  ;;  %v6182_v12 = vcombine.low %v374_v62, %v378_v63 }
 0x2a7   :  { %5596 = vmatprep.subr.bf16.mxu1 %v6343_v27  ;;  %v506_v3 = vld [vmem:[%s9199_s1 + $0xef8] sm:$0xff] }
 0x2a8   :  { %5556 = vmatpush2.bf16.msra.mxu0 %v6214_v37  ;;  %v6311_v10 = vcombine.high %v502_v39, %v506_v3  ;;  %v366_v1 = vld [vmem:[%s9199_s1 + $0xa98] sm:$0xff]  ;;  %v6310_v15 = vcombine.low %v502_v39, %v506_v3 }
 0x2a9   :  { %5557 = vmatprep.subr.bf16.mxu0 %v6207_v38  ;;  %v370_v11 = vld [vmem:[%s9199_s1 + $0xab8] sm:$0xff] }
 0x2aa   :  { %5597 = vmatpush2.bf16.msra.mxu1 %v6342_v26  ;;  %v494_v41 = vld [vmem:[%s9199_s1 + $0xe98] sm:$0xff]  ;;  %v6175_v18 = vcombine.high %v366_v1, %v370_v11  ;;  %v6174_v24 = vcombine.low %v366_v1, %v370_v11 }
 0x2ab   :  { %5598 = vmatprep.subr.bf16.mxu1 %v6335_v19  ;;  %v498_v13 = vld [vmem:[%s9199_s1 + $0xeb8] sm:$0xff] }
 0x2ac   :  { %5558 = vmatpush2.bf16.msra.mxu0 %v6206_v44  ;;  %v6303_v53 = vcombine.high %v494_v41, %v498_v13  ;;  %v358_v6 = vld [vmem:[%s9199_s1 + $0xa58] sm:$0xff]  ;;  %v6302_v14 = vcombine.low %v494_v41, %v498_v13 }
 0x2ad   :  { %5559 = vmatprep.subr.bf16.mxu0 %v6199_v47  ;;  %v362_v22 = vld [vmem:[%s9199_s1 + $0xa78] sm:$0xff] }
 0x2ae   :  { %5599 = vmatpush2.bf16.msra.mxu1 %v6334_v45  ;;  %v486_v54 = vld [vmem:[%s9199_s1 + $0xe58] sm:$0xff]  ;;  %v6167_v25 = vcombine.high %v358_v6, %v362_v22  ;;  %v6166_v35 = vcombine.low %v358_v6, %v362_v22 }
 0x2af   :  { %5600 = vmatprep.subr.bf16.mxu1 %v6327_v48  ;;  %v490_v23 = vld [vmem:[%s9199_s1 + $0xe78] sm:$0xff] }
 0x2b0   :  { %5560 = vmatpush2.bf16.msra.mxu0 %v6198_v61  ;;  %v6295_v20 = vcombine.high %v486_v54, %v490_v23  ;;  %v350_v27 = vld [vmem:[%s9199_s1 + $0xa18] sm:$0xff]  ;;  %v6294_v37 = vcombine.low %v486_v54, %v490_v23 }
 0x2b1   :  { %5561 = vmatprep.subr.bf16.mxu0 %v6191_v0  ;;  %v354_v31 = vld [vmem:[%s9199_s1 + $0xa38] sm:$0xff] }
 0x2b2   :  { %5601 = vmatpush2.bf16.msra.mxu1 %v6326_v56  ;;  %v478_v33 = vld [vmem:[%s9199_s1 + $0xe18] sm:$0xff]  ;;  %v6159_v26 = vcombine.high %v350_v27, %v354_v31  ;;  %v6158_v59 = vcombine.low %v350_v27, %v354_v31 }
 0x2b3   :  { %5602 = vmatprep.subr.bf16.mxu1 %v6319_v30  ;;  %v482_v58 = vld [vmem:[%s9199_s1 + $0xe38] sm:$0xff] }
 0x2b4   :  { %5562 = vmatpush2.bf16.msra.mxu0 %v6190_v5  ;;  %v6287_v38 = vcombine.high %v478_v33, %v482_v58  ;;  %v598_v19 = vld [vmem:[%s9199_s1 + $0x11d8] sm:$0xff]  ;;  %v6286_v44 = vcombine.low %v478_v33, %v482_v58 }
 0x2b5   :  { %5563 = vmatprep.subr.bf16.mxu0 %v6183_v9  ;;  %v602_v42 = vld [vmem:[%s9199_s1 + $0x11f8] sm:$0xff] }
 0x2b6   :  { %5603 = vmatpush2.bf16.msra.mxu1 %v6318_v8  ;;  %v726_v43 = vld [vmem:[%s9199_s1 + $0x15d8] sm:$0xff]  ;;  %v6407_v45 = vcombine.high %v598_v19, %v602_v42  ;;  %v6406_v55 = vcombine.low %v598_v19, %v602_v42 }
 0x2b7   :  { %5604 = vmatprep.subr.bf16.mxu1 %v6311_v10  ;;  %v730_v29 = vld [vmem:[%s9199_s1 + $0x15f8] sm:$0xff] }
 0x2b8   :  { %5564 = vmatpush2.bf16.msra.mxu0 %v6182_v12  ;;  %v6535_v47 = vcombine.high %v726_v43, %v730_v29  ;;  %v590_v48 = vld [vmem:[%s9199_s1 + $0x1198] sm:$0xff]  ;;  %v6534_v61 = vcombine.low %v726_v43, %v730_v29 }
 0x2b9   :  { %5565 = vmatprep.subr.bf16.mxu0 %v6175_v18  ;;  %v594_v50 = vld [vmem:[%s9199_s1 + $0x11b8] sm:$0xff] }
 0x2ba   :  { %5605 = vmatpush2.bf16.msra.mxu1 %v6310_v15  ;;  %v718_v51 = vld [vmem:[%s9199_s1 + $0x1598] sm:$0xff]  ;;  %v6399_v56 = vcombine.high %v590_v48, %v594_v50  ;;  %v6398_v9 = vcombine.low %v590_v48, %v594_v50 }
 0x2bb   :  { %5606 = vmatprep.subr.bf16.mxu1 %v6303_v53  ;;  %v722_v52 = vld [vmem:[%s9199_s1 + $0x15b8] sm:$0xff] }
 0x2bc   :  { %5566 = vmatpush2.bf16.msra.mxu0 %v6174_v24  ;;  %v6527_v0 = vcombine.high %v718_v51, %v722_v52  ;;  %v582_v30 = vld [vmem:[%s9199_s1 + $0x1158] sm:$0xff]  ;;  %v6526_v1 = vcombine.low %v718_v51, %v722_v52 }
 0x2bd   :  { %5567 = vmatprep.subr.bf16.mxu0 %v6167_v25  ;;  %v586_v62 = vld [vmem:[%s9199_s1 + $0x1178] sm:$0xff] }
 0x2be   :  { %5607 = vmatpush2.bf16.msra.mxu1 %v6302_v14  ;;  %v710_v39 = vld [vmem:[%s9199_s1 + $0x1558] sm:$0xff]  ;;  %v6390_v22 = vcombine.low %v582_v30, %v586_v62 }
 0x2bf   :  { %5608 = vmatprep.subr.bf16.mxu1 %v6295_v20  ;;  %v714_v3 = vld [vmem:[%s9199_s1 + $0x1578] sm:$0xff] }
 0x2c0   :  { %5568 = vmatpush2.bf16.msra.mxu0 %v6166_v35  ;;  %v6519_v12 = vcombine.high %v710_v39, %v714_v3  ;;  %v702_v18 = vld [vmem:[%s9199_s1 + $0x1518] sm:$0xff] }
 0x2c1   :  { %5569 = vmatprep.subr.bf16.mxu0 %v6159_v26  ;;  %v566_v25 = vld [vmem:[%s9199_s1 + $0x10d8] sm:$0xff] }
 0x2c2   :  { %5609 = vmatpush2.bf16.msra.mxu1 %v6294_v37  ;;  %v694_v20 = vld [vmem:[%s9199_s1 + $0x14d8] sm:$0xff] }
 0x2c3   :  { %5610 = vmatprep.subr.bf16.mxu1 %v6287_v38  ;;  %v698_v27 = vld [vmem:[%s9199_s1 + $0x14f8] sm:$0xff] }
 0x2c4   :  { %5570 = vmatpush2.bf16.msra.mxu0 %v6158_v59  ;;  %v6503_v35 = vcombine.high %v694_v20, %v698_v27  ;;  %v558_v37 = vld [vmem:[%s9199_s1 + $0x1098] sm:$0xff]  ;;  %v6502_v43 = vcombine.low %v694_v20, %v698_v27 }
 0x2c5   :  { %5621 = vmatprep.subr.bf16.mxu0 %v6407_v45  ;;  %v562_v26 = vld [vmem:[%s9199_s1 + $0x10b8] sm:$0xff] }
 0x2c6   :  { %5611 = vmatpush2.bf16.msra.mxu1 %v6286_v44  ;;  %v686_v38 = vld [vmem:[%s9199_s1 + $0x1498] sm:$0xff]  ;;  %v6367_v29 = vcombine.high %v558_v37, %v562_v26  ;;  %v6366_v50 = vcombine.low %v558_v37, %v562_v26 }
 0x2c7   :  { %5662 = vmatprep.subr.bf16.mxu1 %v6535_v47  ;;  %v5327_v63 = vpop.f32.mrf.mxu0  ;;  %5572 = vmatmul.mubr.bf16.vlgmr.msra.gmra.mxu0 %v7104_v36  ;;  %v6391_v36 = vcombine.high %v582_v30, %v586_v62  ;;  %v690_v19 = vld [vmem:[%s9199_s1 + $0x14b8] sm:$0xff] }
 0x2c8   :  { %v5328_v5 = vadd.f32 %v5327_v63, %v8803_v16  ;;  %5622 = vmatpush1.bf16.msra.mxu0 %v6406_v55  ;;  %v574_v16 = vld [vmem:[%s9199_s1 + $0x1118] sm:$0xff]  ;;  %5653 = vmatprep.mubr.bf16.mxu0 %v7134_v46  ;;  %v6518_v46 = vcombine.low %v710_v39, %v714_v3  ;;  %v6495_v59 = vcombine.high %v686_v38, %v690_v19 }
 0x2c9   :  { %v5368_v8 = vpop.f32.mrf.mxu1  ;;  %5613 = vmatmul.mubr.bf16.vlgmr.msra.gmra.mxu1 %v7119_v40  ;;  %v5329_v10 = vpop.f32.mrf.mxu0  ;;  %5623 = vmatprep.subr.bf16.mxu0 %v6399_v56  ;;  %v578_v40 = vld [vmem:[%s9199_s1 + $0x1138] sm:$0xff]  ;;  %v6494_v51 = vcombine.low %v686_v38, %v690_v19 }
 0x2ca   :  { %5663 = vmatpush1.bf16.msra.mxu1 %v6534_v61  ;;  %v9004_v11 = vadd.f32 %v5368_v8, %v5328_v5  ;;  %v5330_v41 = vadd.f32 %v5329_v10, %v8819_v34  ;;  %v706_v34 = vld [vmem:[%s9199_s1 + $0x1538] sm:$0xff]  ;;  %5694 = vmatprep.mubr.bf16.mxu1 %v7145_v49  ;;  %v6383_v23 = vcombine.high %v574_v16, %v578_v40 }
 0x2cb   :  { %v5370_v13 = vpop.f32.mrf.mxu1  ;;  %5664 = vmatprep.subr.bf16.mxu1 %v6527_v0  ;;  %v5331_v15 = vpop.f32.mrf.mxu0  ;;  %v6511_v14 = vcombine.high %v702_v18, %v706_v34  ;;  %v570_v49 = vld [vmem:[%s9199_s1 + $0x10f8] sm:$0xff]  ;;  %v6382_v31 = vcombine.low %v574_v16, %v578_v40  ;;  %v6510_v33 = vcombine.low %v702_v18, %v706_v34 }
 0x2cc   :  { %v9021_v53 = vadd.f32 %v5370_v13, %v5330_v41  ;;  %5624 = vmatpush1.bf16.msra.mxu0 %v6398_v9  ;;  %v6375_v58 = vcombine.high %v566_v25, %v570_v49  ;;  %v6374_v42 = vcombine.low %v566_v25, %v570_v49  ;;  %v550_v44 = vld [vmem:[%s9199_s1 + $0x1058] sm:$0xff] }
 0x2cd   :  { %v5372_v6 = vpop.f32.mrf.mxu1  ;;  %v5332_v54 = vpop.f32.mrf.mxu0  ;;  %5625 = vmatprep.subr.bf16.mxu0 %v6391_v36  ;;  %v554_v45 = vld [vmem:[%s9199_s1 + $0x1078] sm:$0xff] }
 0x2ce   :  { %5665 = vmatpush1.bf16.msra.mxu1 %v6526_v1  ;;  %v678_v47 = vld [vmem:[%s9199_s1 + $0x1458] sm:$0xff]  ;;  %v6359_v52 = vcombine.high %v550_v44, %v554_v45  ;;  %v6358_v62 = vcombine.low %v550_v44, %v554_v45 }
 0x2cf   :  { %v5373_v24 = vpop.f32.mrf.mxu1  ;;  %5666 = vmatprep.subr.bf16.mxu1 %v6519_v12  ;;  %v682_v48 = vld [vmem:[%s9199_s1 + $0x1478] sm:$0xff] }
 0x2d0   :  { %5626 = vmatpush1.bf16.msra.mxu0 %v6390_v22  ;;  %v6487_v55 = vcombine.high %v678_v47, %v682_v48  ;;  %v542_v61 = vld [vmem:[%s9199_s1 + $0x1018] sm:$0xff]  ;;  %v6486_v63 = vcombine.low %v678_v47, %v682_v48 }
 0x2d1   :  { %5627 = vmatprep.subr.bf16.mxu0 %v6383_v23  ;;  %v546_v56 = vld [vmem:[%s9199_s1 + $0x1038] sm:$0xff] }
 0x2d2   :  { %5667 = vmatpush1.bf16.msra.mxu1 %v6518_v46  ;;  %v670_v0 = vld [vmem:[%s9199_s1 + $0x1418] sm:$0xff]  ;;  %v6351_v39 = vcombine.high %v542_v61, %v546_v56  ;;  %v6350_v1 = vcombine.low %v542_v61, %v546_v56 }
 0x2d3   :  { %5668 = vmatprep.subr.bf16.mxu1 %v6511_v14  ;;  %v674_v30 = vld [vmem:[%s9199_s1 + $0x1438] sm:$0xff] }
 0x2d4   :  { %5628 = vmatpush1.bf16.msra.mxu0 %v6382_v31  ;;  %v6479_v3 = vcombine.high %v670_v0, %v674_v30  ;;  %v662_v5 = vld [vmem:[%s9199_s1 + $0x13d8] sm:$0xff]  ;;  %v6478_v36 = vcombine.low %v670_v0, %v674_v30 }
 0x2d5   :  { %5629 = vmatprep.subr.bf16.mxu0 %v6375_v58  ;;  %v666_v8 = vld [vmem:[%s9199_s1 + $0x13f8] sm:$0xff] }
 0x2d6   :  { %5669 = vmatpush1.bf16.msra.mxu1 %v6510_v33  ;;  %v790_v9 = vld [vmem:[%s9199_s1 + $0x17d8] sm:$0xff]  ;;  %v6471_v41 = vcombine.high %v662_v5, %v666_v8  ;;  %v6470_v18 = vcombine.low %v662_v5, %v666_v8 }
 0x2d7   :  { %5670 = vmatprep.subr.bf16.mxu1 %v6503_v35  ;;  %v794_v10 = vld [vmem:[%s9199_s1 + $0x17f8] sm:$0xff] }
 0x2d8   :  { %5630 = vmatpush1.bf16.msra.mxu0 %v6374_v42  ;;  %v6599_v13 = vcombine.high %v790_v9, %v794_v10  ;;  %v654_v12 = vld [vmem:[%s9199_s1 + $0x1398] sm:$0xff]  ;;  %v6598_v34 = vcombine.low %v790_v9, %v794_v10 }
 0x2d9   :  { %5631 = vmatprep.subr.bf16.mxu0 %v6367_v29  ;;  %v658_v16 = vld [vmem:[%s9199_s1 + $0x13b8] sm:$0xff] }
 0x2da   :  { %5671 = vmatpush1.bf16.msra.mxu1 %v6502_v43  ;;  %v782_v40 = vld [vmem:[%s9199_s1 + $0x1798] sm:$0xff]  ;;  %v6463_v6 = vcombine.high %v654_v12, %v658_v16  ;;  %v6462_v14 = vcombine.low %v654_v12, %v658_v16 }
 0x2db   :  { %5672 = vmatprep.subr.bf16.mxu1 %v6495_v59  ;;  %v786_v15 = vld [vmem:[%s9199_s1 + $0x17b8] sm:$0xff] }
 0x2dc   :  { %5632 = vmatpush1.bf16.msra.mxu0 %v6366_v50  ;;  %v6591_v22 = vcombine.high %v782_v40, %v786_v15  ;;  %v646_v54 = vld [vmem:[%s9199_s1 + $0x1358] sm:$0xff]  ;;  %v6590_v25 = vcombine.low %v782_v40, %v786_v15 }
 0x2dd   :  { %5633 = vmatprep.subr.bf16.mxu0 %v6359_v52  ;;  %v650_v46 = vld [vmem:[%s9199_s1 + $0x1378] sm:$0xff] }
 0x2de   :  { %5673 = vmatpush1.bf16.msra.mxu1 %v6494_v51  ;;  %v774_v23 = vld [vmem:[%s9199_s1 + $0x1758] sm:$0xff]  ;;  %v6455_v49 = vcombine.high %v646_v54, %v650_v46  ;;  %v6454_v35 = vcombine.low %v646_v54, %v650_v46 }
 0x2df   :  { %5674 = vmatprep.subr.bf16.mxu1 %v6487_v55  ;;  %v778_v24 = vld [vmem:[%s9199_s1 + $0x1778] sm:$0xff] }
 0x2e0   :  { %5634 = vmatpush1.bf16.msra.mxu0 %v6358_v62  ;;  %v6583_v20 = vcombine.high %v774_v23, %v778_v24  ;;  %v638_v27 = vld [vmem:[%s9199_s1 + $0x1318] sm:$0xff]  ;;  %v6582_v37 = vcombine.low %v774_v23, %v778_v24 }
 0x2e1   :  { %5635 = vmatprep.subr.bf16.mxu0 %v6351_v39  ;;  %v642_v31 = vld [vmem:[%s9199_s1 + $0x1338] sm:$0xff] }
 0x2e2   :  { %5675 = vmatpush1.bf16.msra.mxu1 %v6486_v63  ;;  %v766_v33 = vld [vmem:[%s9199_s1 + $0x1718] sm:$0xff]  ;;  %v6447_v26 = vcombine.high %v638_v27, %v642_v31  ;;  %v6446_v59 = vcombine.low %v638_v27, %v642_v31 }
 0x2e3   :  { %5676 = vmatprep.subr.bf16.mxu1 %v6479_v3  ;;  %v770_v58 = vld [vmem:[%s9199_s1 + $0x1738] sm:$0xff] }
 0x2e4   :  { %5636 = vmatpush1.bf16.msra.mxu0 %v6350_v1  ;;  %v6575_v38 = vcombine.high %v766_v33, %v770_v58  ;;  %v630_v19 = vld [vmem:[%s9199_s1 + $0x12d8] sm:$0xff]  ;;  %v6574_v44 = vcombine.low %v766_v33, %v770_v58 }
 0x2e5   :  { %5637 = vmatprep.subr.bf16.mxu0 %v6471_v41  ;;  %v634_v42 = vld [vmem:[%s9199_s1 + $0x12f8] sm:$0xff] }
 0x2e6   :  { %5677 = vmatpush1.bf16.msra.mxu1 %v6478_v36  ;;  %v758_v43 = vld [vmem:[%s9199_s1 + $0x16d8] sm:$0xff]  ;;  %v6439_v45 = vcombine.high %v630_v19, %v634_v42  ;;  %v6438_v55 = vcombine.low %v630_v19, %v634_v42  ;;  %v827_v42 = vsub.s32 7, %v7510_v17 }
 0x2e7   :  { %5678 = vmatprep.subr.bf16.mxu1 %v6599_v13  ;;  %v762_v29 = vld [vmem:[%s9199_s1 + $0x16f8] sm:$0xff] }
 0x2e8   :  { %5638 = vmatpush2.bf16.msra.mxu0 %v6470_v18  ;;  %v6567_v47 = vcombine.high %v758_v43, %v762_v29  ;;  %v622_v48 = vld [vmem:[%s9199_s1 + $0x1298] sm:$0xff]  ;;  %v6566_v61 = vcombine.low %v758_v43, %v762_v29  ;;  %v828_v43 = vrot.slane %v8784_v2, %v827_v42 }
 0x2e9   :  { %5639 = vmatprep.subr.bf16.mxu0 %v6463_v6  ;;  %v626_v50 = vld [vmem:[%s9199_s1 + $0x12b8] sm:$0xff] }
 0x2ea   :  { %5679 = vmatpush2.bf16.msra.mxu1 %v6598_v34  ;;  %v750_v51 = vld [vmem:[%s9199_s1 + $0x1698] sm:$0xff]  ;;  %v6431_v56 = vcombine.high %v622_v48, %v626_v50  ;;  %v6430_v3 = vcombine.low %v622_v48, %v626_v50  ;;  %v6619_v34 = vld [vmem:[%s9202_s3] sm:$0xff] }
 0x2eb   :  { %5680 = vmatprep.subr.bf16.mxu1 %v6591_v22  ;;  %v754_v52 = vld [vmem:[%s9199_s1 + $0x16b8] sm:$0xff]  ;;  %v9170_v6 = vunpack.c.h.bf16 %v6619_v34 }
 0x2ec   :  { %5640 = vmatpush2.bf16.msra.mxu0 %v6462_v14  ;;  %v6559_v0 = vcombine.high %v750_v51, %v754_v52  ;;  %v614_v30 = vld [vmem:[%s9199_s1 + $0x1258] sm:$0xff]  ;;  %v6558_v5 = vcombine.low %v750_v51, %v754_v52 }
 0x2ed   :  { %5641 = vmatprep.subr.bf16.mxu0 %v6455_v49  ;;  %v618_v62 = vld [vmem:[%s9199_s1 + $0x1278] sm:$0xff]  ;;  %v5735_v22 = vrot.slane %v9170_v6, %v7525_v28  ;;  %v5739_v24 = vrot.slane %v9170_v6, %v7952_v32 }
 0x2ee   :  { %5681 = vmatpush2.bf16.msra.mxu1 %v6590_v25  ;;  %v742_v63 = vld [vmem:[%s9199_s1 + $0x1658] sm:$0xff]  ;;  %v6423_v8 = vcombine.high %v614_v30, %v618_v62  ;;  %v6422_v13 = vcombine.low %v614_v30, %v618_v62 }
 0x2ef   :  { %5682 = vmatprep.subr.bf16.mxu1 %v6583_v20  ;;  %v746_v39 = vld [vmem:[%s9199_s1 + $0x1678] sm:$0xff]  ;;  %v5775_v49 = vrot.slane %v5735_v22, %v7525_v28 }
 0x2f0   :  { %5642 = vmatpush2.bf16.msra.mxu0 %v6454_v35  ;;  %v6551_v9 = vcombine.high %v742_v63, %v746_v39  ;;  %v606_v10 = vld [vmem:[%s9199_s1 + $0x1218] sm:$0xff]  ;;  %v6550_v12 = vcombine.low %v742_v63, %v746_v39 }
 0x2f1   :  { %5643 = vmatprep.subr.bf16.mxu0 %v6447_v26  ;;  %v610_v1 = vld [vmem:[%s9199_s1 + $0x1238] sm:$0xff] }
 0x2f2   :  { %5683 = vmatpush2.bf16.msra.mxu1 %v6582_v37  ;;  %v734_v36 = vld [vmem:[%s9199_s1 + $0x1618] sm:$0xff]  ;;  %v6415_v16 = vcombine.high %v606_v10, %v610_v1  ;;  %v6414_v15 = vcombine.low %v606_v10, %v610_v1 }
 0x2f3   :  { %5684 = vmatprep.subr.bf16.mxu1 %v6575_v38  ;;  %v738_v41 = vld [vmem:[%s9199_s1 + $0x1638] sm:$0xff] }
 0x2f4   :  { %5644 = vmatpush2.bf16.msra.mxu0 %v6446_v59  ;;  %v6543_v40 = vcombine.high %v734_v36, %v738_v41  ;;  %v6542_v18 = vcombine.low %v734_v36, %v738_v41 }
 0x2f5   :  { %5645 = vmatprep.subr.bf16.mxu0 %v6439_v45 }
 0x2f6   :  { %5685 = vmatpush2.bf16.msra.mxu1 %v6574_v44 }
 0x2f7   :  { %5686 = vmatprep.subr.bf16.mxu1 %v6567_v47 }
 0x2f8   :  { %5646 = vmatpush2.bf16.msra.mxu0 %v6438_v55 }
 0x2f9   :  { %5647 = vmatprep.subr.bf16.mxu0 %v6431_v56 }
 0x2fa   :  { %5687 = vmatpush2.bf16.msra.mxu1 %v6566_v61 }
 0x2fb   :  { %5688 = vmatprep.subr.bf16.mxu1 %v6559_v0 }
 0x2fc   :  { %5648 = vmatpush2.bf16.msra.mxu0 %v6430_v3 }
 0x2fd   :  { %5649 = vmatprep.subr.bf16.mxu0 %v6423_v8 }
 0x2fe   :  { %5689 = vmatpush2.bf16.msra.mxu1 %v6558_v5 }
 0x2ff   :  { %5690 = vmatprep.subr.bf16.mxu1 %v6551_v9  ;;  %v5743_v9 = vrot.slane %v9170_v6, %v8556_v21 }
 0x300   :  { %5650 = vmatpush2.bf16.msra.mxu0 %v6422_v13  ;;  %v5747_v13 = vrot.slane %v9170_v6, %v8571_v60 }
 0x301   :  { %5651 = vmatprep.subr.bf16.mxu0 %v6415_v16 }
 0x302   :  { %5691 = vmatpush2.bf16.msra.mxu1 %v6550_v12 }
 0x303   :  { %5692 = vmatprep.subr.bf16.mxu1 %v6543_v40  ;;  %v5783_v40 = vrot.slane %v5743_v9, %v7525_v28 }
 0x304   :  { %5652 = vmatpush2.bf16.msra.mxu0 %v6414_v15 }
 0x306   :  { %5693 = vmatpush2.bf16.msra.mxu1 %v6542_v18 }
 0x307   :  { %v5409_v54 = vpop.f32.mrf.mxu0  ;;  %5654 = vmatmul.mubr.bf16.vlgmr.msra.gmra.mxu0 %v7326_v4  ;;  %v5779_v4 = vrot.slane %v5739_v24, %v7525_v28 }
 0x308   :  { %v5410_v46 = vadd.f32 %v5409_v54, %v9004_v11 }
 0x309   :  { %v5450_v23 = vpop.f32.mrf.mxu1  ;;  %5695 = vmatmul.mubr.bf16.vlgmr.msra.gmra.mxu1 %v7336_v7  ;;  %v5411_v14 = vpop.f32.mrf.mxu0 }
 0x30a   :  { %v5451_v25 = vadd.f32 %v5450_v23, %v5410_v46  ;;  %v5412_v20 = vadd.f32 %v5411_v14, %v9021_v53  ;;  %v824_v53 = vrot.slane %v8784_v2, %v8571_v60  ;;  %v5787_v23 = vrot.slane %v5747_v13, %v7525_v28 }
 0x30b   :  { %v5452_v27 = vpop.f32.mrf.mxu1  ;;  %v5413_v31 = vpop.f32.mrf.mxu0  ;;  %v5806_v60 = vstv %s9203_s4 }
 0x30c   :  { %v5707_v33 = vmax.f32 %v5451_v25, 0.0  ;;  %v5453_v58 = vadd.f32 %v5452_v27, %v5412_v20 }
 0x30d   :  { %v5454_v35 = vpop.f32.mrf.mxu1  ;;  %v5414_v11 = vpop.f32.mrf.mxu0 }
 0x30e   :  { %v5792_v37 = vmul.f32 %v5775_v49, %v5707_v33  ;;  %v5708_v26 = vmax.f32 %v5453_v58, 0.0 }
 0x30f   :  { %v5455_v7 = vpop.f32.mrf.mxu1 }
 0x310   :  { %v5799_v38 = vadd.f32 %v8622_v57, %v5792_v37  ;;  %v5793_v32 = vmul.f32 %v5779_v4, %v5708_v26 }
 0x312   :  { %v5800_v19 = vadd.f32 %v5799_v38, %v5793_v32 }
 0x347   :  { %v5491_v29 = vpop.f32.mrf.mxu0 }
 0x348   :  { %v5492_v59 = vadd.f32 %v5491_v29, %v824_v53 }
 0x349   :  { %v5532_v44 = vpop.f32.mrf.mxu1  ;;  %v5493_v45 = vpop.f32.mrf.mxu0 }
 0x34a   :  { %v5533_v47 = vadd.f32 %v5532_v44, %v5492_v59  ;;  %v5494_v48 = vadd.f32 %v5493_v45, %v828_v43 }
 0x34b   :  { %v5534_v50 = vpop.f32.mrf.mxu1  ;;  %v5495_v51 = vpop.f32.mrf.mxu0 }
 0x34c   :  { %v5535_v52 = vadd.f32 %v5534_v50, %v5494_v48 }
 0x34d   :  { %v5536_v55 = vpop.f32.mrf.mxu1  ;;  %v5496_v57 = vpop.f32.mrf.mxu0 }
 0x34f   :  { %v5537_v61 = vpop.f32.mrf.mxu1 }
 0x387   :  { %v5573_v56 = vpop.f32.mrf.mxu0 }
 0x388   :  { %v5574_v3 = vadd.f32 %v5573_v56, %v5533_v47 }
 0x389   :  { %v5614_v0 = vpop.f32.mrf.mxu1  ;;  %v5575_v17 = vpop.f32.mrf.mxu0 }
 0x38a   :  { %v5576_v5 = vadd.f32 %v5575_v17, %v5535_v52  ;;  %v5615_v8 = vadd.f32 %v5614_v0, %v5574_v3 }
 0x38b   :  { %v5616_v30 = vpop.f32.mrf.mxu1  ;;  %v5577_v62 = vpop.f32.mrf.mxu0 }
 0x38c   :  { %v5617_v1 = vadd.f32 %v5616_v30, %v5576_v5 }
 0x38d   :  { %v5618_v63 = vpop.f32.mrf.mxu1  ;;  %v5578_v39 = vpop.f32.mrf.mxu0 }
 0x38f   :  { %v5619_v2 = vpop.f32.mrf.mxu1 }
 0x3c7   :  { %v5655_v10 = vpop.f32.mrf.mxu0 }
 0x3c8   :  { %v5656_v36 = vadd.f32 %v5655_v10, %v5615_v8 }
 0x3c9   :  { %v5696_v41 = vpop.f32.mrf.mxu1  ;;  %v5657_v12 = vpop.f32.mrf.mxu0 }
 0x3ca   :  { %v5697_v16 = vadd.f32 %v5696_v41, %v5656_v36  ;;  %v5658_v15 = vadd.f32 %v5657_v12, %v5617_v1 }
 0x3cb   :  { %v5698_v18 = vpop.f32.mrf.mxu1  ;;  %v5659_v34 = vpop.f32.mrf.mxu0 }
 0x3cc   :  { %v5709_v22 = vmax.f32 %v5697_v16, 0.0  ;;  %v5699_v54 = vadd.f32 %v5698_v18, %v5658_v15 }
 0x3cd   :  { %v5700_v46 = vpop.f32.mrf.mxu1  ;;  %v5660_v21 = vpop.f32.mrf.mxu0 }
 0x3ce   :  { %v5794_v24 = vmul.f32 %v5783_v40, %v5709_v22  ;;  %v5710_v14 = vmax.f32 %v5699_v54, 0.0 }
 0x3cf   :  { %v5701_v25 = vpop.f32.mrf.mxu1 }
 0x3d0   :  { %v5795_v49 = vmul.f32 %v5787_v23, %v5710_v14  ;;  %v5801_v20 = vadd.f32 %v5800_v19, %v5794_v24 }
 0x3d2   :  { %v5802_v27 = vadd.f32 %v5801_v20, %v5795_v49 }
 0x3d4   :  { %5803 = vadd.xlane.f32.xlu0 %v5802_v27 }
 0x45d   :  { %v5804_v6 = vpop.xlane.xlu0 %5803 }
 0x45e   :  { %v5807_v31 = vadd.f32 %v5806_v60, %v5804_v6 }
 0x460   :  { %v6600_v33 = vmul.f32 -1.442695, %v5807_v31 }
 0x462   :  { %6613 = vpow2.f32 %v6600_v33 }
 0x46f   :  { %v6614_v58 = vpop.eup %6613 }
 0x470   :  { %v5811_v4 = vadd.f32 1.0, %v6614_v58 }
 0x472   :  { %6615 = vrcp.f32 %v5811_v4 }
 0x47f   :  { %v6616_v28 = vpop.eup %6615 }
 0x480   :  { %5815 = vst.msk [vmem:[%s9204_s5] sm:$0xff] %vm5814_vm0, %v6616_v28 }

</bundles_post_ra>
